<compile_context>
chip_gen: v5e
topology: v5e:2x2
jax: 0.10.0
libtpu: 0.0.40
codegen_flags: <defaults>
</compile_context>

<pallas_src>
import functools

import jax
import jax.numpy as jnp
from jax.experimental import pallas as pl
from jax.experimental.pallas import tpu as pltpu

_SLOPE = 0.2
_EPS = 1e-5


def _vmem_limit_bytes():
    """Generation-aware scoped-VMEM limit (v5e/v6e: 64 MiB, v7x: ~48 MiB)."""
    try:
        info = pltpu.get_tpu_info()
        cap = None
        for name in ("vmem_capacity_bytes", "vmem_size_bytes", "vmem_bytes"):
            if hasattr(info, name):
                cap = int(getattr(info, name))
                break
        if not cap:
            raise ValueError("unknown VMEM capacity")
        return max(32 * 2**20, min(cap * 3 // 4, 64 * 2**20))
    except Exception:
        return 48 * 2**20  # safe on every current generation


_VMEM_LIMIT = _vmem_limit_bytes()


def _compiler_params():
    return pltpu.CompilerParams(dimension_semantics=("parallel",),
                                vmem_limit_bytes=_VMEM_LIMIT)


def _pick_row_tile(m, cap):
    """Largest divisor of m that is a multiple of 8 and <= cap (else m)."""
    best = None
    for d in range(8, min(m, cap) + 1, 8):
        if m % d == 0:
            best = d
    return best if best is not None else m


def _pick_divisor(n, cap, need_mult8=False):
    best = None
    for d in range(1, min(n, cap) + 1):
        if n % d == 0 and (not need_mult8 or d % 8 == 0 or d == n):
            best = d
    return best if best is not None else n


# ---------------------------------------------------------------------------
# Kernel 1: conv1 im2col-matmul + bias + LeakyReLU + per-tile BN statistics
# ---------------------------------------------------------------------------
def _conv1_kernel(a_ref, w_ref, b_ref, y_ref, s_ref, *, slope):
    z = jnp.dot(a_ref[...], w_ref[...], preferred_element_type=jnp.float32)
    z = z + b_ref[...]
    z = jnp.where(z >= 0.0, z, slope * z)                  # LeakyReLU(0.2)
    y_ref[...] = z.astype(y_ref.dtype)
    # Per-tile partial statistics (all rows valid: the tile divides M exactly).
    s_ref[0:1, 0:1, :] = jnp.sum(z, axis=0, keepdims=True)[None]
    s_ref[0:1, 1:2, :] = jnp.sum(z * z, axis=0, keepdims=True)[None]


def conv1_act_stats(a, w, bias, *, slope=_SLOPE, tm_max=2048):
    M, K = a.shape
    N = w.shape[1]
    tm = _pick_row_tile(M, tm_max)
    nt = M // tm
    return pl.pallas_call(
        functools.partial(_conv1_kernel, slope=float(slope)),
        out_shape=(jax.ShapeDtypeStruct((M, N), jnp.bfloat16),
                   jax.ShapeDtypeStruct((nt, 2, N), jnp.float32)),
        grid=(nt,),
        in_specs=[pl.BlockSpec((tm, K), lambda i: (i, 0)),     # A streams
                  pl.BlockSpec((K, N), lambda i: (0, 0)),      # W resident
                  pl.BlockSpec((1, N), lambda i: (0, 0))],     # bias resident
        out_specs=(pl.BlockSpec((tm, N), lambda i: (i, 0)),
                   pl.BlockSpec((1, 2, N), lambda i: (i, 0, 0))),
        compiler_params=_compiler_params(),
    )(a, w, bias)


# ---------------------------------------------------------------------------
# Kernel 2: fused BN1-normalize + zero-pad + conv2 + bias + LeakyReLU + stats
#
# y1 is carried in space-to-depth layout (B, 7, 7, 256) with feature order
# (dy, dx, c), so the stride-2 5x5 conv becomes a stride-1 3x3 conv: 9 unit-
# stride taps of a zero-padded VMEM scratch, each one MXU matmul of K=256.
# ---------------------------------------------------------------------------
def _conv2_fused_kernel(z1_ref, sc_ref, sh_ref, w_ref, b_ref,
                        y_ref, s_ref, pad_ref, acc_ref, *, slope):
    bt = z1_ref.shape[0]
    rows = bt * 7 * 8

    # BN1 normalize (folded per-channel affine) then place into the zero-padded
    # scratch; padding is applied AFTER normalization, matching nn.Conv2d's
    # zero padding of the BatchNorm output.  Re-zero every step so the kernel
    # is safe under core-parallel grid sharding.
    pad_ref[...] = jnp.zeros_like(pad_ref)
    zn = z1_ref[...].astype(jnp.float32) * sc_ref[...] + sh_ref[...]
    pad_ref[:, 1:8, 1:8, :] = zn

    acc_ref[...] = jnp.zeros_like(acc_ref)
    for a in range(3):
        for cc in range(3):
            tap = pad_ref[:, a:a + 7, cc:cc + 8, :]        # (bt,7,8,256) f32
            lhs = tap.reshape(rows, 256).astype(jnp.bfloat16)
            t = a * 3 + cc
            acc_ref[...] += jnp.dot(lhs, w_ref[t * 256:(t + 1) * 256, :],
                                    preferred_element_type=jnp.float32)

    z = acc_ref[...] + b_ref[...]
    z = jnp.where(z >= 0.0, z, slope * z)                  # LeakyReLU(0.2)
    y_ref[...] = z.astype(y_ref.dtype)

    # Per-tile BN2 partial statistics.  Every 8th row (q == 7) is a synthetic
    # pad column that does not exist in the real 7x7 output -> mask it out.
    q = jax.lax.broadcasted_iota(jnp.int32, (rows, 1), 0) % 8
    zm = jnp.where(q < 7, z, 0.0)
    s_ref[0:1, 0:1, :] = jnp.sum(zm, axis=0, keepdims=True)[None]
    s_ref[0:1, 1:2, :] = jnp.sum(zm * zm, axis=0, keepdims=True)[None]


def conv2_fused(z1, scale, shift, w, bias, *, slope=_SLOPE, bt_max=8):
    B = z1.shape[0]
    bt = _pick_divisor(B, bt_max)
    nt = B // bt
    return pl.pallas_call(
        functools.partial(_conv2_fused_kernel, slope=float(slope)),
        out_shape=(jax.ShapeDtypeStruct((B * 56, 128), jnp.bfloat16),
                   jax.ShapeDtypeStruct((nt, 2, 128), jnp.float32)),
        grid=(nt,),
        in_specs=[pl.BlockSpec((bt, 7, 7, 256), lambda i: (i, 0, 0, 0)),
                  pl.BlockSpec((1, 256), lambda i: (0, 0)),
                  pl.BlockSpec((1, 256), lambda i: (0, 0)),
                  pl.BlockSpec((2304, 128), lambda i: (0, 0)),   # W resident
                  pl.BlockSpec((1, 128), lambda i: (0, 0))],
        out_specs=(pl.BlockSpec((bt * 56, 128), lambda i: (i, 0)),
                   pl.BlockSpec((1, 2, 128), lambda i: (i, 0, 0))),
        scratch_shapes=[pltpu.VMEM((bt, 9, 10, 256), jnp.float32),
                        pltpu.VMEM((bt * 56, 128), jnp.float32)],
        compiler_params=_compiler_params(),
    )(z1, scale, shift, w, bias)


# ---------------------------------------------------------------------------
# Kernel 3: BN2 (pre-folded into the linear weight) + Flatten + Linear(6272,1)
# ---------------------------------------------------------------------------
def _bn_linear_kernel(y_ref, w_ref, c0_ref, o_ref):
    y = y_ref[...].astype(jnp.float32)          # (bt, 7, 8, 128)
    t = y * w_ref[...]                          # scaled linear weight
    s = jnp.sum(t, axis=1)                      # (bt, 8, 128)
    s = jnp.sum(s, axis=1)                      # (bt, 128)
    o_ref[...] = jnp.sum(s, axis=1, keepdims=True) + c0_ref[...]


def bn_linear(y2, w3s, c0, *, bt_max=128):
    B = y2.shape[0]
    bt = _pick_divisor(B, bt_max, need_mult8=True)
    nt = B // bt
    return pl.pallas_call(
        _bn_linear_kernel,
        out_shape=jax.ShapeDtypeStruct((B, 1), jnp.float32),
        grid=(nt,),
        in_specs=[pl.BlockSpec((bt, 7, 8, 128), lambda i: (i, 0, 0, 0)),
                  pl.BlockSpec((7, 8, 128), lambda i: (0, 0, 0)),
                  pl.BlockSpec((1, 1), lambda i: (0, 0))],
        out_specs=pl.BlockSpec((bt, 1), lambda i: (i, 0)),
        compiler_params=_compiler_params(),
    )(y2, w3s, c0)


# ---------------------------------------------------------------------------
# Parameters (PyTorch layouts generated, then permuted once to kernel layouts)
# ---------------------------------------------------------------------------
def init_params(key):
    ks = jax.random.split(key, 6)
    s = 0.05
    w1_t = s * jax.random.normal(ks[0], (64, 1, 5, 5), jnp.float32)     # Conv2d(1,64,5)
    w2_t = s * jax.random.normal(ks[1], (128, 64, 5, 5), jnp.float32)   # Conv2d(64,128,5)
    w3_t = s * jax.random.normal(ks[2], (1, 7 * 7 * 128), jnp.float32)  # Linear(6272,1)

    # Conv1: (Cout,Cin,kH,kW) -> (kH*kW*Cin, Cout), K padded 25 -> 32.
    w1 = w1_t.transpose(2, 3, 1, 0).reshape(25, 64)
    w1 = jnp.pad(w1, ((0, 7), (0, 0)))

    # Conv2 rearranged for the space-to-depth (stride-1, 3x3) formulation:
    # rows ordered (a, b, dy, dx, cin) with kernel taps (i, j) = (2a+dy, 2b+dx),
    # zero rows where i > 4 or j > 4.
    w2p = jnp.pad(w2_t, ((0, 0), (0, 0), (0, 1), (0, 1)))               # (128,64,6,6)
    w2z = w2p.reshape(128, 64, 3, 2, 3, 2).transpose(2, 4, 3, 5, 1, 0)
    w2z = w2z.reshape(2304, 128)

    # Linear weight over the NCHW flatten (c,h,w) -> (h, w, c); pad w 7 -> 8 with
    # zeros so the kernel's synthetic q == 7 output column is inert.
    w3 = w3_t.reshape(128, 7, 7).transpose(1, 2, 0)
    w3 = jnp.pad(w3, ((0, 0), (0, 1), (0, 0)))                          # (7,8,128)

    return {
        "w1": w1.astype(jnp.bfloat16),
        "b1": (s * jax.random.normal(ks[3], (64,), jnp.float32)).reshape(1, 64),
        "g1": jnp.ones((64,), jnp.float32),
        "be1": jnp.zeros((64,), jnp.float32),
        "w2": w2z.astype(jnp.bfloat16),
        "b2": (s * jax.random.normal(ks[4], (128,), jnp.float32)).reshape(1, 128),
        "g2": jnp.ones((128,), jnp.float32),
        "be2": jnp.zeros((128,), jnp.float32),
        "w3": w3,
        "b3": (s * jax.random.normal(ks[5], (1,), jnp.float32)).reshape(1, 1),
    }


# ---------------------------------------------------------------------------
# Discriminator forward
# ---------------------------------------------------------------------------
def discriminator_forward(x, params):
    """x: (B, 1, 28, 28) NCHW float32 -> (B, 1) logits."""
    B = x.shape[0]

    # Conv1 im2col stays in XLA (the input is tiny: ~20 KB/image); rows are
    # built directly in space-to-depth order (b, p, q, dy, dx) so conv2 never
    # needs a transpose or gather of y1 in HBM.
    xp = jnp.pad(x[:, 0], ((0, 0), (2, 2), (2, 2)))                 # (B,32,32)
    cols = [xp[:, i:i + 28:2, j:j + 28:2] for i in range(5) for j in range(5)]
    a1 = jnp.stack(cols, axis=-1)                                   # (B,14,14,25)
    a1 = a1.reshape(B, 7, 2, 7, 2, 25).transpose(0, 1, 3, 2, 4, 5)
    a1 = a1.reshape(B * 196, 25)
    a1 = jnp.pad(a1, ((0, 0), (0, 7))).astype(jnp.bfloat16)         # K 25 -> 32

    # Conv2d(1,64) + LeakyReLU + per-tile batch statistics (fused)
    y1, s1p = conv1_act_stats(a1, params["w1"], params["b1"])

    # BN1 training-mode batch stats -> folded per-channel affine, tiled to the
    # space-to-depth feature order (dy, dx, c).
    s1 = jnp.sum(s1p, axis=0)
    n1 = float(B * 196)
    mean1 = s1[0] / n1
    var1 = jnp.maximum(s1[1] / n1 - mean1 * mean1, 0.0)
    scale1 = params["g1"] * jax.lax.rsqrt(var1 + _EPS)
    shift1 = params["be1"] - mean1 * scale1
    scale256 = jnp.tile(scale1, 4).reshape(1, 256)
    shift256 = jnp.tile(shift1, 4).reshape(1, 256)

    z1 = y1.reshape(B, 7, 7, 256)          # free reshape (row order matches)

    # BN1 + Conv2d(64,128) + LeakyReLU + per-tile batch statistics (fused)
    y2, s2p = conv2_fused(z1, scale256, shift256, params["w2"], params["b2"])

    # BN2 training-mode batch stats, folded into the linear weight.
    s2 = jnp.sum(s2p, axis=0)
    n2 = float(B * 49)
    mean2 = s2[0] / n2
    var2 = jnp.maximum(s2[1] / n2 - mean2 * mean2, 0.0)
    scale2 = params["g2"] * jax.lax.rsqrt(var2 + _EPS)
    shift2 = params["be2"] - mean2 * scale2
    w3s = params["w3"] * scale2                                      # (7,8,128)
    c0 = (jnp.sum(params["w3"] * shift2) + params["b3"]).reshape(1, 1)

    y2r = y2.reshape(B, 7, 8, 128)         # free reshape (row order matches)

    # BN2 + Flatten + Linear(7*7*128, 1) (fused)
    return bn_linear(y2r, w3s, c0)


if __name__ == "__main__":
    key = jax.random.PRNGKey(0)
    kx, kp = jax.random.split(key)
    # MNIST-sized input implied by Linear(7*7*128, 1): (B, 1, 28, 28)
    x = jax.random.normal(kx, (2, 1, 28, 28), dtype=jnp.float32)
    params = init_params(kp)

    fwd = jax.jit(discriminator_forward)
    out = jax.block_until_ready(fwd(x, params))
    assert out.shape == (2, 1) and out.dtype == jnp.float32
    print("KERNEL_OK")
</pallas_src>

<mosaic_0001>
module attributes {stable_mosaic.version = 11 : i64} {
  func.func @_conv1_kernel(%arg0: i32, %arg1: memref<392x32xbf16, #tpu.memory_space<vmem>>, %arg2: memref<32x64xbf16, #tpu.memory_space<vmem>>, %arg3: memref<1x64xf32, #tpu.memory_space<vmem>>, %arg4: memref<392x64xbf16, #tpu.memory_space<vmem>>, %arg5: memref<1x2x64xf32, #tpu.memory_space<vmem>>) attributes {dimension_semantics = [#tpu.dimension_semantics<parallel>], iteration_bounds = array<i64: 1>, scalar_prefetch = 0 : i64, scratch_operands = 0 : i64, tpu.core_type = #tpu.core_type<tc>, window_params = [{transform_indices = @transform_0, window_bounds = array<i64: 392, 32>}, {pipeline_mode = #tpu.pipeline_mode<synchronous>, transform_indices = @transform_1, window_bounds = array<i64: 32, 64>}, {pipeline_mode = #tpu.pipeline_mode<synchronous>, transform_indices = @transform_2, window_bounds = array<i64: 1, 64>}, {transform_indices = @transform_3, window_bounds = array<i64: 392, 64>}, {transform_indices = @transform_4, window_bounds = array<i64: 1, 2, 64>}]} {
    %c0 = arith.constant 0 : index
    %c0_0 = arith.constant 0 : index
    %0 = vector.load %arg1[%c0, %c0_0] : memref<392x32xbf16, #tpu.memory_space<vmem>>, vector<392x32xbf16>
    %c0_1 = arith.constant 0 : index
    %c0_2 = arith.constant 0 : index
    %1 = vector.load %arg2[%c0_1, %c0_2] : memref<32x64xbf16, #tpu.memory_space<vmem>>, vector<32x64xbf16>
    %cst = arith.constant dense<0.000000e+00> : vector<392x64xf32>
    %2 = tpu.matmul %0, %1, %cst {dimension_numbers = #tpu.dot_dimension_numbers<[1], [0], [0], [1], [0, 0, 1, 1], [], []>} : vector<392x32xbf16>, vector<32x64xbf16>, vector<392x64xf32> -> vector<392x64xf32>
    %c0_3 = arith.constant 0 : index
    %c0_4 = arith.constant 0 : index
    %3 = vector.load %arg3[%c0_3, %c0_4] : memref<1x64xf32, #tpu.memory_space<vmem>>, vector<1x64xf32>
    %4 = vector.broadcast %3 : vector<1x64xf32> to vector<392x64xf32>
    %5 = arith.addf %2, %4 : vector<392x64xf32>
    %cst_5 = arith.constant 0.000000e+00 : f32
    %6 = vector.broadcast %cst_5 : f32 to vector<392x64xf32>
    %7 = arith.cmpf oge, %5, %6 : vector<392x64xf32>
    %cst_6 = arith.constant 2.000000e-01 : f32
    %8 = vector.broadcast %cst_6 : f32 to vector<392x64xf32>
    %9 = arith.mulf %8, %5 : vector<392x64xf32>
    %10 = arith.select %7, %5, %9 : vector<392x64xi1>, vector<392x64xf32>
    %11 = arith.truncf %10 : vector<392x64xf32> to vector<392x64xbf16>
    %c0_7 = arith.constant 0 : index
    %c0_8 = arith.constant 0 : index
    %12 = vector.load %arg4[%c0_7, %c0_8] : memref<392x64xbf16, #tpu.memory_space<vmem>>, vector<392x64xbf16>
    tpu.vector_store %arg4[%c0_7, %c0_8], %11 {strides = array<i32>} : memref<392x64xbf16, #tpu.memory_space<vmem>>, vector<392x64xbf16>,
    %cst_9 = arith.constant dense<0.000000e+00> : vector<64xf32>
    %13 = vector.multi_reduction <add>, %10, %cst_9 [0] : vector<392x64xf32> to vector<64xf32>
    %14 = vector.shape_cast %13 : vector<64xf32> to vector<1x64xf32>
    %15 = vector.shape_cast %14 : vector<1x64xf32> to vector<1x1x64xf32>
    %c0_10 = arith.constant 0 : index
    %c0_11 = arith.constant 0 : index
    %c0_12 = arith.constant 0 : index
    %16 = vector.load %arg5[%c0_10, %c0_11, %c0_12] : memref<1x2x64xf32, #tpu.memory_space<vmem>>, vector<1x1x64xf32>
    tpu.vector_store %arg5[%c0_10, %c0_11, %c0_12], %15 {strides = array<i32>} : memref<1x2x64xf32, #tpu.memory_space<vmem>>, vector<1x1x64xf32>,
    %17 = arith.mulf %10, %10 : vector<392x64xf32>
    %cst_13 = arith.constant dense<0.000000e+00> : vector<64xf32>
    %18 = vector.multi_reduction <add>, %17, %cst_13 [0] : vector<392x64xf32> to vector<64xf32>
    %19 = vector.shape_cast %18 : vector<64xf32> to vector<1x64xf32>
    %20 = vector.shape_cast %19 : vector<1x64xf32> to vector<1x1x64xf32>
    %c0_14 = arith.constant 0 : index
    %c1 = arith.constant 1 : index
    %c0_15 = arith.constant 0 : index
    %21 = vector.load %arg5[%c0_14, %c1, %c0_15] : memref<1x2x64xf32, #tpu.memory_space<vmem>>, vector<1x1x64xf32>
    tpu.vector_store %arg5[%c0_14, %c1, %c0_15], %20 {strides = array<i32>} : memref<1x2x64xf32, #tpu.memory_space<vmem>>, vector<1x1x64xf32>,
    return
  }
  func.func @transform_0(%arg0: i32) -> (i32, i32) {
    %c0_i32 = arith.constant 0 : i32
    %c0_i32_0 = arith.constant 0 : i32
    return %arg0, %c0_i32 : i32, i32
  }
  func.func @transform_1(%arg0: i32) -> (i32, i32) {
    %c0_i32 = arith.constant 0 : i32
    %c0_i32_0 = arith.constant 0 : i32
    %c0_i32_1 = arith.constant 0 : i32
    return %c0_i32, %c0_i32_0 : i32, i32
  }
  func.func @transform_2(%arg0: i32) -> (i32, i32) {
    %c0_i32 = arith.constant 0 : i32
    %c0_i32_0 = arith.constant 0 : i32
    %c0_i32_1 = arith.constant 0 : i32
    return %c0_i32, %c0_i32_0 : i32, i32
  }
  func.func @transform_3(%arg0: i32) -> (i32, i32) {
    %c0_i32 = arith.constant 0 : i32
    %c0_i32_0 = arith.constant 0 : i32
    return %arg0, %c0_i32 : i32, i32
  }
  func.func @transform_4(%arg0: i32) -> (i32, i32, i32) {
    %c0_i32 = arith.constant 0 : i32
    %c0_i32_0 = arith.constant 0 : i32
    %c0_i32_1 = arith.constant 0 : i32
    return %arg0, %c0_i32, %c0_i32_0 : i32, i32, i32
  }
}

module attributes {stable_mosaic.version = 11 : i64} {
  func.func @_bn_linear_kernel(%arg0: i32, %arg1: memref<2x7x8x128xbf16, #tpu.memory_space<vmem>>, %arg2: memref<7x8x128xf32, #tpu.memory_space<vmem>>, %arg3: memref<1x1xf32, #tpu.memory_space<vmem>>, %arg4: memref<2x1xf32, #tpu.memory_space<vmem>>) attributes {dimension_semantics = [#tpu.dimension_semantics<parallel>], iteration_bounds = array<i64: 1>, scalar_prefetch = 0 : i64, scratch_operands = 0 : i64, tpu.core_type = #tpu.core_type<tc>, window_params = [{transform_indices = @transform_0, window_bounds = array<i64: 2, 7, 8, 128>}, {pipeline_mode = #tpu.pipeline_mode<synchronous>, transform_indices = @transform_1, window_bounds = array<i64: 7, 8, 128>}, {pipeline_mode = #tpu.pipeline_mode<synchronous>, transform_indices = @transform_2, window_bounds = array<i64: 1, 1>}, {transform_indices = @transform_3, window_bounds = array<i64: 2, 1>}]} {
    %c0 = arith.constant 0 : index
    %c0_0 = arith.constant 0 : index
    %c0_1 = arith.constant 0 : index
    %c0_2 = arith.constant 0 : index
    %0 = vector.load %arg1[%c0, %c0_0, %c0_1, %c0_2] : memref<2x7x8x128xbf16, #tpu.memory_space<vmem>>, vector<2x7x8x128xbf16>
    %1 = arith.extf %0 : vector<2x7x8x128xbf16> to vector<2x7x8x128xf32>
    %c0_3 = arith.constant 0 : index
    %c0_4 = arith.constant 0 : index
    %c0_5 = arith.constant 0 : index
    %2 = vector.load %arg2[%c0_3, %c0_4, %c0_5] : memref<7x8x128xf32, #tpu.memory_space<vmem>>, vector<7x8x128xf32>
    %3 = vector.shape_cast %2 : vector<7x8x128xf32> to vector<1x7x8x128xf32>
    %4 = vector.broadcast %3 : vector<1x7x8x128xf32> to vector<2x7x8x128xf32>
    %5 = arith.mulf %1, %4 : vector<2x7x8x128xf32>
    %cst = arith.constant dense<0.000000e+00> : vector<2x8x128xf32>
    %6 = vector.multi_reduction <add>, %5, %cst [1] : vector<2x7x8x128xf32> to vector<2x8x128xf32>
    %cst_6 = arith.constant dense<0.000000e+00> : vector<2x128xf32>
    %7 = vector.multi_reduction <add>, %6, %cst_6 [1] : vector<2x8x128xf32> to vector<2x128xf32>
    %cst_7 = arith.constant dense<0.000000e+00> : vector<2xf32>
    %8 = vector.multi_reduction <add>, %7, %cst_7 [1] : vector<2x128xf32> to vector<2xf32>
    %9 = vector.shape_cast %8 : vector<2xf32> to vector<2x1xf32>
    %c0_8 = arith.constant 0 : index
    %c0_9 = arith.constant 0 : index
    %10 = vector.load %arg3[%c0_8, %c0_9] : memref<1x1xf32, #tpu.memory_space<vmem>>, vector<1x1xf32>
    %11 = vector.broadcast %10 : vector<1x1xf32> to vector<2x1xf32>
    %12 = arith.addf %9, %11 : vector<2x1xf32>
    %c0_10 = arith.constant 0 : index
    %c0_11 = arith.constant 0 : index
    %13 = vector.load %arg4[%c0_10, %c0_11] : memref<2x1xf32, #tpu.memory_space<vmem>>, vector<2x1xf32>
    tpu.vector_store %arg4[%c0_10, %c0_11], %12 {strides = array<i32>} : memref<2x1xf32, #tpu.memory_space<vmem>>, vector<2x1xf32>,
    return
  }
  func.func @transform_0(%arg0: i32) -> (i32, i32, i32, i32) {
    %c0_i32 = arith.constant 0 : i32
    %c0_i32_0 = arith.constant 0 : i32
    %c0_i32_1 = arith.constant 0 : i32
    %c0_i32_2 = arith.constant 0 : i32
    return %arg0, %c0_i32, %c0_i32_0, %c0_i32_1 : i32, i32, i32, i32
  }
  func.func @transform_1(%arg0: i32) -> (i32, i32, i32) {
    %c0_i32 = arith.constant 0 : i32
    %c0_i32_0 = arith.constant 0 : i32
    %c0_i32_1 = arith.constant 0 : i32
    %c0_i32_2 = arith.constant 0 : i32
    return %c0_i32, %c0_i32_0, %c0_i32_1 : i32, i32, i32
  }
  func.func @transform_2(%arg0: i32) -> (i32, i32) {
    %c0_i32 = arith.constant 0 : i32
    %c0_i32_0 = arith.constant 0 : i32
    %c0_i32_1 = arith.constant 0 : i32
    return %c0_i32, %c0_i32_0 : i32, i32
  }
  func.func @transform_3(%arg0: i32) -> (i32, i32) {
    %c0_i32 = arith.constant 0 : i32
    %c0_i32_0 = arith.constant 0 : i32
    return %arg0, %c0_i32 : i32, i32
  }
}

module attributes {stable_mosaic.version = 11 : i64} {
  func.func @_conv2_fused_kernel(%arg0: i32, %arg1: memref<2x7x7x256xbf16, #tpu.memory_space<vmem>>, %arg2: memref<1x256xf32, #tpu.memory_space<vmem>>, %arg3: memref<1x256xf32, #tpu.memory_space<vmem>>, %arg4: memref<2304x128xbf16, #tpu.memory_space<vmem>>, %arg5: memref<1x128xf32, #tpu.memory_space<vmem>>, %arg6: memref<112x128xbf16, #tpu.memory_space<vmem>>, %arg7: memref<1x2x128xf32, #tpu.memory_space<vmem>>, %arg8: memref<2x9x10x256xf32, #tpu.memory_space<vmem>>, %arg9: memref<112x128xf32, #tpu.memory_space<vmem>>) attributes {dimension_semantics = [#tpu.dimension_semantics<parallel>], iteration_bounds = array<i64: 1>, scalar_prefetch = 0 : i64, scratch_operands = 2 : i64, tpu.core_type = #tpu.core_type<tc>, window_params = [{transform_indices = @transform_0, window_bounds = array<i64: 2, 7, 7, 256>}, {pipeline_mode = #tpu.pipeline_mode<synchronous>, transform_indices = @transform_1, window_bounds = array<i64: 1, 256>}, {pipeline_mode = #tpu.pipeline_mode<synchronous>, transform_indices = @transform_2, window_bounds = array<i64: 1, 256>}, {pipeline_mode = #tpu.pipeline_mode<synchronous>, transform_indices = @transform_3, window_bounds = array<i64: 2304, 128>}, {pipeline_mode = #tpu.pipeline_mode<synchronous>, transform_indices = @transform_4, window_bounds = array<i64: 1, 128>}, {transform_indices = @transform_5, window_bounds = array<i64: 112, 128>}, {transform_indices = @transform_6, window_bounds = array<i64: 1, 2, 128>}]} {
    %cst = arith.constant 0.000000e+00 : f32
    %0 = vector.broadcast %cst : f32 to vector<2x9x10x256xf32>
    %c0 = arith.constant 0 : index
    %c0_0 = arith.constant 0 : index
    %c0_1 = arith.constant 0 : index
    %c0_2 = arith.constant 0 : index
    %1 = vector.load %arg8[%c0, %c0_0, %c0_1, %c0_2] : memref<2x9x10x256xf32, #tpu.memory_space<vmem>>, vector<2x9x10x256xf32>
    tpu.vector_store %arg8[%c0, %c0_0, %c0_1, %c0_2], %0 {strides = array<i32>} : memref<2x9x10x256xf32, #tpu.memory_space<vmem>>, vector<2x9x10x256xf32>,
    %c0_3 = arith.constant 0 : index
    %c0_4 = arith.constant 0 : index
    %c0_5 = arith.constant 0 : index
    %c0_6 = arith.constant 0 : index
    %2 = vector.load %arg1[%c0_3, %c0_4, %c0_5, %c0_6] : memref<2x7x7x256xbf16, #tpu.memory_space<vmem>>, vector<2x7x7x256xbf16>
    %3 = arith.extf %2 : vector<2x7x7x256xbf16> to vector<2x7x7x256xf32>
    %c0_7 = arith.constant 0 : index
    %c0_8 = arith.constant 0 : index
    %4 = vector.load %arg2[%c0_7, %c0_8] : memref<1x256xf32, #tpu.memory_space<vmem>>, vector<1x256xf32>
    %5 = vector.shape_cast %4 : vector<1x256xf32> to vector<1x1x1x256xf32>
    %6 = vector.broadcast %5 : vector<1x1x1x256xf32> to vector<2x7x7x256xf32>
    %7 = arith.mulf %3, %6 : vector<2x7x7x256xf32>
    %c0_9 = arith.constant 0 : index
    %c0_10 = arith.constant 0 : index
    %8 = vector.load %arg3[%c0_9, %c0_10] : memref<1x256xf32, #tpu.memory_space<vmem>>, vector<1x256xf32>
    %9 = vector.shape_cast %8 : vector<1x256xf32> to vector<1x1x1x256xf32>
    %10 = vector.broadcast %9 : vector<1x1x1x256xf32> to vector<2x7x7x256xf32>
    %11 = arith.addf %7, %10 : vector<2x7x7x256xf32>
    %c0_11 = arith.constant 0 : index
    %c1 = arith.constant 1 : index
    %c1_12 = arith.constant 1 : index
    %c0_13 = arith.constant 0 : index
    %12 = vector.load %arg8[%c0_11, %c1, %c1_12, %c0_13] : memref<2x9x10x256xf32, #tpu.memory_space<vmem>>, vector<2x7x7x256xf32>
    tpu.vector_store %arg8[%c0_11, %c1, %c1_12, %c0_13], %11 {strides = array<i32>} : memref<2x9x10x256xf32, #tpu.memory_space<vmem>>, vector<2x7x7x256xf32>,
    %cst_14 = arith.constant 0.000000e+00 : f32
    %13 = vector.broadcast %cst_14 : f32 to vector<112x128xf32>
    %c0_15 = arith.constant 0 : index
    %c0_16 = arith.constant 0 : index
    %14 = vector.load %arg9[%c0_15, %c0_16] : memref<112x128xf32, #tpu.memory_space<vmem>>, vector<112x128xf32>
    tpu.vector_store %arg9[%c0_15, %c0_16], %13 {strides = array<i32>} : memref<112x128xf32, #tpu.memory_space<vmem>>, vector<112x128xf32>,
    %c0_17 = arith.constant 0 : index
    %c0_18 = arith.constant 0 : index
    %c0_19 = arith.constant 0 : index
    %c0_20 = arith.constant 0 : index
    %15 = vector.load %arg8[%c0_17, %c0_18, %c0_19, %c0_20] : memref<2x9x10x256xf32, #tpu.memory_space<vmem>>, vector<2x7x8x256xf32>
    %16 = vector.shape_cast %15 : vector<2x7x8x256xf32> to vector<112x256xf32>
    %17 = arith.truncf %16 : vector<112x256xf32> to vector<112x256xbf16>
    %c0_21 = arith.constant 0 : index
    %c0_22 = arith.constant 0 : index
    %18 = vector.load %arg9[%c0_21, %c0_22] : memref<112x128xf32, #tpu.memory_space<vmem>>, vector<112x128xf32>
    %c0_23 = arith.constant 0 : index
    %c0_24 = arith.constant 0 : index
    %19 = vector.load %arg4[%c0_23, %c0_24] : memref<2304x128xbf16, #tpu.memory_space<vmem>>, vector<256x128xbf16>
    %cst_25 = arith.constant dense<0.000000e+00> : vector<112x128xf32>
    %20 = tpu.matmul %17, %19, %cst_25 {dimension_numbers = #tpu.dot_dimension_numbers<[1], [0], [0], [1], [0, 0, 1, 1], [], []>} : vector<112x256xbf16>, vector<256x128xbf16>, vector<112x128xf32> -> vector<112x128xf32>
    %21 = arith.addf %18, %20 : vector<112x128xf32>
    %c0_26 = arith.constant 0 : index
    %c0_27 = arith.constant 0 : index
    %22 = vector.load %arg9[%c0_26, %c0_27] : memref<112x128xf32, #tpu.memory_space<vmem>>, vector<112x128xf32>
    tpu.vector_store %arg9[%c0_26, %c0_27], %21 {strides = array<i32>} : memref<112x128xf32, #tpu.memory_space<vmem>>, vector<112x128xf32>,
    %c0_28 = arith.constant 0 : index
    %c0_29 = arith.constant 0 : index
    %c1_30 = arith.constant 1 : index
    %c0_31 = arith.constant 0 : index
    %23 = vector.load %arg8[%c0_28, %c0_29, %c1_30, %c0_31] : memref<2x9x10x256xf32, #tpu.memory_space<vmem>>, vector<2x7x8x256xf32>
    %24 = vector.shape_cast %23 : vector<2x7x8x256xf32> to vector<112x256xf32>
    %25 = arith.truncf %24 : vector<112x256xf32> to vector<112x256xbf16>
    %c0_32 = arith.constant 0 : index
    %c0_33 = arith.constant 0 : index
    %26 = vector.load %arg9[%c0_32, %c0_33] : memref<112x128xf32, #tpu.memory_space<vmem>>, vector<112x128xf32>
    %c256 = arith.constant 256 : index
    %c0_34 = arith.constant 0 : index
    %27 = vector.load %arg4[%c256, %c0_34] : memref<2304x128xbf16, #tpu.memory_space<vmem>>, vector<256x128xbf16>
    %cst_35 = arith.constant dense<0.000000e+00> : vector<112x128xf32>
    %28 = tpu.matmul %25, %27, %cst_35 {dimension_numbers = #tpu.dot_dimension_numbers<[1], [0], [0], [1], [0, 0, 1, 1], [], []>} : vector<112x256xbf16>, vector<256x128xbf16>, vector<112x128xf32> -> vector<112x128xf32>
    %29 = arith.addf %26, %28 : vector<112x128xf32>
    %c0_36 = arith.constant 0 : index
    %c0_37 = arith.constant 0 : index
    %30 = vector.load %arg9[%c0_36, %c0_37] : memref<112x128xf32, #tpu.memory_space<vmem>>, vector<112x128xf32>
    tpu.vector_store %arg9[%c0_36, %c0_37], %29 {strides = array<i32>} : memref<112x128xf32, #tpu.memory_space<vmem>>, vector<112x128xf32>,
    %c0_38 = arith.constant 0 : index
    %c0_39 = arith.constant 0 : index
    %c2 = arith.constant 2 : index
    %c0_40 = arith.constant 0 : index
    %31 = vector.load %arg8[%c0_38, %c0_39, %c2, %c0_40] : memref<2x9x10x256xf32, #tpu.memory_space<vmem>>, vector<2x7x8x256xf32>
    %32 = vector.shape_cast %31 : vector<2x7x8x256xf32> to vector<112x256xf32>
    %33 = arith.truncf %32 : vector<112x256xf32> to vector<112x256xbf16>
    %c0_41 = arith.constant 0 : index
    %c0_42 = arith.constant 0 : index
    %34 = vector.load %arg9[%c0_41, %c0_42] : memref<112x128xf32, #tpu.memory_space<vmem>>, vector<112x128xf32>
    %c512 = arith.constant 512 : index
    %c0_43 = arith.constant 0 : index
    %35 = vector.load %arg4[%c512, %c0_43] : memref<2304x128xbf16, #tpu.memory_space<vmem>>, vector<256x128xbf16>
    %cst_44 = arith.constant dense<0.000000e+00> : vector<112x128xf32>
    %36 = tpu.matmul %33, %35, %cst_44 {dimension_numbers = #tpu.dot_dimension_numbers<[1], [0], [0], [1], [0, 0, 1, 1], [], []>} : vector<112x256xbf16>, vector<256x128xbf16>, vector<112x128xf32> -> vector<112x128xf32>
    %37 = arith.addf %34, %36 : vector<112x128xf32>
    %c0_45 = arith.constant 0 : index
    %c0_46 = arith.constant 0 : index
    %38 = vector.load %arg9[%c0_45, %c0_46] : memref<112x128xf32, #tpu.memory_space<vmem>>, vector<112x128xf32>
    tpu.vector_store %arg9[%c0_45, %c0_46], %37 {strides = array<i32>} : memref<112x128xf32, #tpu.memory_space<vmem>>, vector<112x128xf32>,
    %c0_47 = arith.constant 0 : index
    %c1_48 = arith.constant 1 : index
    %c0_49 = arith.constant 0 : index
    %c0_50 = arith.constant 0 : index
    %39 = vector.load %arg8[%c0_47, %c1_48, %c0_49, %c0_50] : memref<2x9x10x256xf32, #tpu.memory_space<vmem>>, vector<2x7x8x256xf32>
    %40 = vector.shape_cast %39 : vector<2x7x8x256xf32> to vector<112x256xf32>
    %41 = arith.truncf %40 : vector<112x256xf32> to vector<112x256xbf16>
    %c0_51 = arith.constant 0 : index
    %c0_52 = arith.constant 0 : index
    %42 = vector.load %arg9[%c0_51, %c0_52] : memref<112x128xf32, #tpu.memory_space<vmem>>, vector<112x128xf32>
    %c768 = arith.constant 768 : index
    %c0_53 = arith.constant 0 : index
    %43 = vector.load %arg4[%c768, %c0_53] : memref<2304x128xbf16, #tpu.memory_space<vmem>>, vector<256x128xbf16>
    %cst_54 = arith.constant dense<0.000000e+00> : vector<112x128xf32>
    %44 = tpu.matmul %41, %43, %cst_54 {dimension_numbers = #tpu.dot_dimension_numbers<[1], [0], [0], [1], [0, 0, 1, 1], [], []>} : vector<112x256xbf16>, vector<256x128xbf16>, vector<112x128xf32> -> vector<112x128xf32>
    %45 = arith.addf %42, %44 : vector<112x128xf32>
    %c0_55 = arith.constant 0 : index
    %c0_56 = arith.constant 0 : index
    %46 = vector.load %arg9[%c0_55, %c0_56] : memref<112x128xf32, #tpu.memory_space<vmem>>, vector<112x128xf32>
    tpu.vector_store %arg9[%c0_55, %c0_56], %45 {strides = array<i32>} : memref<112x128xf32, #tpu.memory_space<vmem>>, vector<112x128xf32>,
    %c0_57 = arith.constant 0 : index
    %c1_58 = arith.constant 1 : index
    %c1_59 = arith.constant 1 : index
    %c0_60 = arith.constant 0 : index
    %47 = vector.load %arg8[%c0_57, %c1_58, %c1_59, %c0_60] : memref<2x9x10x256xf32, #tpu.memory_space<vmem>>, vector<2x7x8x256xf32>
    %48 = vector.shape_cast %47 : vector<2x7x8x256xf32> to vector<112x256xf32>
    %49 = arith.truncf %48 : vector<112x256xf32> to vector<112x256xbf16>
    %c0_61 = arith.constant 0 : index
    %c0_62 = arith.constant 0 : index
    %50 = vector.load %arg9[%c0_61, %c0_62] : memref<112x128xf32, #tpu.memory_space<vmem>>, vector<112x128xf32>
    %c1024 = arith.constant 1024 : index
    %c0_63 = arith.constant 0 : index
    %51 = vector.load %arg4[%c1024, %c0_63] : memref<2304x128xbf16, #tpu.memory_space<vmem>>, vector<256x128xbf16>
    %cst_64 = arith.constant dense<0.000000e+00> : vector<112x128xf32>
    %52 = tpu.matmul %49, %51, %cst_64 {dimension_numbers = #tpu.dot_dimension_numbers<[1], [0], [0], [1], [0, 0, 1, 1], [], []>} : vector<112x256xbf16>, vector<256x128xbf16>, vector<112x128xf32> -> vector<112x128xf32>
    %53 = arith.addf %50, %52 : vector<112x128xf32>
    %c0_65 = arith.constant 0 : index
    %c0_66 = arith.constant 0 : index
    %54 = vector.load %arg9[%c0_65, %c0_66] : memref<112x128xf32, #tpu.memory_space<vmem>>, vector<112x128xf32>
    tpu.vector_store %arg9[%c0_65, %c0_66], %53 {strides = array<i32>} : memref<112x128xf32, #tpu.memory_space<vmem>>, vector<112x128xf32>,
    %c0_67 = arith.constant 0 : index
    %c1_68 = arith.constant 1 : index
    %c2_69 = arith.constant 2 : index
    %c0_70 = arith.constant 0 : index
    %55 = vector.load %arg8[%c0_67, %c1_68, %c2_69, %c0_70] : memref<2x9x10x256xf32, #tpu.memory_space<vmem>>, vector<2x7x8x256xf32>
    %56 = vector.shape_cast %55 : vector<2x7x8x256xf32> to vector<112x256xf32>
    %57 = arith.truncf %56 : vector<112x256xf32> to vector<112x256xbf16>
    %c0_71 = arith.constant 0 : index
    %c0_72 = arith.constant 0 : index
    %58 = vector.load %arg9[%c0_71, %c0_72] : memref<112x128xf32, #tpu.memory_space<vmem>>, vector<112x128xf32>
    %c1280 = arith.constant 1280 : index
    %c0_73 = arith.constant 0 : index
    %59 = vector.load %arg4[%c1280, %c0_73] : memref<2304x128xbf16, #tpu.memory_space<vmem>>, vector<256x128xbf16>
    %cst_74 = arith.constant dense<0.000000e+00> : vector<112x128xf32>
    %60 = tpu.matmul %57, %59, %cst_74 {dimension_numbers = #tpu.dot_dimension_numbers<[1], [0], [0], [1], [0, 0, 1, 1], [], []>} : vector<112x256xbf16>, vector<256x128xbf16>, vector<112x128xf32> -> vector<112x128xf32>
    %61 = arith.addf %58, %60 : vector<112x128xf32>
    %c0_75 = arith.constant 0 : index
    %c0_76 = arith.constant 0 : index
    %62 = vector.load %arg9[%c0_75, %c0_76] : memref<112x128xf32, #tpu.memory_space<vmem>>, vector<112x128xf32>
    tpu.vector_store %arg9[%c0_75, %c0_76], %61 {strides = array<i32>} : memref<112x128xf32, #tpu.memory_space<vmem>>, vector<112x128xf32>,
    %c0_77 = arith.constant 0 : index
    %c2_78 = arith.constant 2 : index
    %c0_79 = arith.constant 0 : index
    %c0_80 = arith.constant 0 : index
    %63 = vector.load %arg8[%c0_77, %c2_78, %c0_79, %c0_80] : memref<2x9x10x256xf32, #tpu.memory_space<vmem>>, vector<2x7x8x256xf32>
    %64 = vector.shape_cast %63 : vector<2x7x8x256xf32> to vector<112x256xf32>
    %65 = arith.truncf %64 : vector<112x256xf32> to vector<112x256xbf16>
    %c0_81 = arith.constant 0 : index
    %c0_82 = arith.constant 0 : index
    %66 = vector.load %arg9[%c0_81, %c0_82] : memref<112x128xf32, #tpu.memory_space<vmem>>, vector<112x128xf32>
    %c1536 = arith.constant 1536 : index
    %c0_83 = arith.constant 0 : index
    %67 = vector.load %arg4[%c1536, %c0_83] : memref<2304x128xbf16, #tpu.memory_space<vmem>>, vector<256x128xbf16>
    %cst_84 = arith.constant dense<0.000000e+00> : vector<112x128xf32>
    %68 = tpu.matmul %65, %67, %cst_84 {dimension_numbers = #tpu.dot_dimension_numbers<[1], [0], [0], [1], [0, 0, 1, 1], [], []>} : vector<112x256xbf16>, vector<256x128xbf16>, vector<112x128xf32> -> vector<112x128xf32>
    %69 = arith.addf %66, %68 : vector<112x128xf32>
    %c0_85 = arith.constant 0 : index
    %c0_86 = arith.constant 0 : index
    %70 = vector.load %arg9[%c0_85, %c0_86] : memref<112x128xf32, #tpu.memory_space<vmem>>, vector<112x128xf32>
    tpu.vector_store %arg9[%c0_85, %c0_86], %69 {strides = array<i32>} : memref<112x128xf32, #tpu.memory_space<vmem>>, vector<112x128xf32>,
    %c0_87 = arith.constant 0 : index
    %c2_88 = arith.constant 2 : index
    %c1_89 = arith.constant 1 : index
    %c0_90 = arith.constant 0 : index
    %71 = vector.load %arg8[%c0_87, %c2_88, %c1_89, %c0_90] : memref<2x9x10x256xf32, #tpu.memory_space<vmem>>, vector<2x7x8x256xf32>
    %72 = vector.shape_cast %71 : vector<2x7x8x256xf32> to vector<112x256xf32>
    %73 = arith.truncf %72 : vector<112x256xf32> to vector<112x256xbf16>
    %c0_91 = arith.constant 0 : index
    %c0_92 = arith.constant 0 : index
    %74 = vector.load %arg9[%c0_91, %c0_92] : memref<112x128xf32, #tpu.memory_space<vmem>>, vector<112x128xf32>
    %c1792 = arith.constant 1792 : index
    %c0_93 = arith.constant 0 : index
    %75 = vector.load %arg4[%c1792, %c0_93] : memref<2304x128xbf16, #tpu.memory_space<vmem>>, vector<256x128xbf16>
    %cst_94 = arith.constant dense<0.000000e+00> : vector<112x128xf32>
    %76 = tpu.matmul %73, %75, %cst_94 {dimension_numbers = #tpu.dot_dimension_numbers<[1], [0], [0], [1], [0, 0, 1, 1], [], []>} : vector<112x256xbf16>, vector<256x128xbf16>, vector<112x128xf32> -> vector<112x128xf32>
    %77 = arith.addf %74, %76 : vector<112x128xf32>
    %c0_95 = arith.constant 0 : index
    %c0_96 = arith.constant 0 : index
    %78 = vector.load %arg9[%c0_95, %c0_96] : memref<112x128xf32, #tpu.memory_space<vmem>>, vector<112x128xf32>
    tpu.vector_store %arg9[%c0_95, %c0_96], %77 {strides = array<i32>} : memref<112x128xf32, #tpu.memory_space<vmem>>, vector<112x128xf32>,
    %c0_97 = arith.constant 0 : index
    %c2_98 = arith.constant 2 : index
    %c2_99 = arith.constant 2 : index
    %c0_100 = arith.constant 0 : index
    %79 = vector.load %arg8[%c0_97, %c2_98, %c2_99, %c0_100] : memref<2x9x10x256xf32, #tpu.memory_space<vmem>>, vector<2x7x8x256xf32>
    %80 = vector.shape_cast %79 : vector<2x7x8x256xf32> to vector<112x256xf32>
    %81 = arith.truncf %80 : vector<112x256xf32> to vector<112x256xbf16>
    %c0_101 = arith.constant 0 : index
    %c0_102 = arith.constant 0 : index
    %82 = vector.load %arg9[%c0_101, %c0_102] : memref<112x128xf32, #tpu.memory_space<vmem>>, vector<112x128xf32>
    %c2048 = arith.constant 2048 : index
    %c0_103 = arith.constant 0 : index
    %83 = vector.load %arg4[%c2048, %c0_103] : memref<2304x128xbf16, #tpu.memory_space<vmem>>, vector<256x128xbf16>
    %cst_104 = arith.constant dense<0.000000e+00> : vector<112x128xf32>
    %84 = tpu.matmul %81, %83, %cst_104 {dimension_numbers = #tpu.dot_dimension_numbers<[1], [0], [0], [1], [0, 0, 1, 1], [], []>} : vector<112x256xbf16>, vector<256x128xbf16>, vector<112x128xf32> -> vector<112x128xf32>
    %85 = arith.addf %82, %84 : vector<112x128xf32>
    %c0_105 = arith.constant 0 : index
    %c0_106 = arith.constant 0 : index
    %86 = vector.load %arg9[%c0_105, %c0_106] : memref<112x128xf32, #tpu.memory_space<vmem>>, vector<112x128xf32>
    tpu.vector_store %arg9[%c0_105, %c0_106], %85 {strides = array<i32>} : memref<112x128xf32, #tpu.memory_space<vmem>>, vector<112x128xf32>,
    %c0_107 = arith.constant 0 : index
    %c0_108 = arith.constant 0 : index
    %87 = vector.load %arg9[%c0_107, %c0_108] : memref<112x128xf32, #tpu.memory_space<vmem>>, vector<112x128xf32>
    %c0_109 = arith.constant 0 : index
    %c0_110 = arith.constant 0 : index
    %88 = vector.load %arg5[%c0_109, %c0_110] : memref<1x128xf32, #tpu.memory_space<vmem>>, vector<1x128xf32>
    %89 = vector.broadcast %88 : vector<1x128xf32> to vector<112x128xf32>
    %90 = arith.addf %87, %89 : vector<112x128xf32>
    %cst_111 = arith.constant 0.000000e+00 : f32
    %91 = vector.broadcast %cst_111 : f32 to vector<112x128xf32>
    %92 = arith.cmpf oge, %90, %91 : vector<112x128xf32>
    %cst_112 = arith.constant 2.000000e-01 : f32
    %93 = vector.broadcast %cst_112 : f32 to vector<112x128xf32>
    %94 = arith.mulf %93, %90 : vector<112x128xf32>
    %95 = arith.select %92, %90, %94 : vector<112x128xi1>, vector<112x128xf32>
    %96 = arith.truncf %95 : vector<112x128xf32> to vector<112x128xbf16>
    %c0_113 = arith.constant 0 : index
    %c0_114 = arith.constant 0 : index
    %97 = vector.load %arg6[%c0_113, %c0_114] : memref<112x128xbf16, #tpu.memory_space<vmem>>, vector<112x128xbf16>
    tpu.vector_store %arg6[%c0_113, %c0_114], %96 {strides = array<i32>} : memref<112x128xbf16, #tpu.memory_space<vmem>>, vector<112x128xbf16>,
    %98 = tpu.iota {dimensions = array<i32: 0>} : vector<112x1xi32>
    %c8_i32 = arith.constant 8 : i32
    %c0_i32 = arith.constant 0 : i32
    %99 = arith.cmpi eq, %c8_i32, %c0_i32 : i32
    %c1_i32 = arith.constant 1 : i32
    %100 = arith.select %99, %c1_i32, %c8_i32 : i32
    %101 = vector.broadcast %100 : i32 to vector<112x1xi32>
    %102 = arith.remsi %98, %101 : vector<112x1xi32>
    %c0_i32_115 = arith.constant 0 : i32
    %103 = vector.broadcast %c0_i32_115 : i32 to vector<112x1xi32>
    %104 = arith.cmpi ne, %102, %103 : vector<112x1xi32>
    %c0_i32_116 = arith.constant 0 : i32
    %105 = vector.broadcast %c0_i32_116 : i32 to vector<112x1xi32>
    %106 = arith.cmpi slt, %102, %105 : vector<112x1xi32>
    %c0_i32_117 = arith.constant 0 : i32
    %107 = arith.cmpi slt, %100, %c0_i32_117 : i32
    %108 = vector.broadcast %107 : i1 to vector<112x1xi1>
    %109 = vector.broadcast %108 : vector<112x1xi1> to vector<112x1xi1>
    %110 = arith.xori %106, %109 : vector<112x1xi1>
    %111 = arith.andi %110, %104 : vector<112x1xi1>
    %112 = vector.broadcast %100 : i32 to vector<112x1xi32>
    %113 = arith.addi %102, %112 : vector<112x1xi32>
    %114 = arith.select %111, %113, %102 : vector<112x1xi1>, vector<112x1xi32>
    %c7_i32 = arith.constant 7 : i32
    %115 = vector.broadcast %c7_i32 : i32 to vector<112x1xi32>
    %116 = arith.cmpi slt, %114, %115 : vector<112x1xi32>
    %cst_118 = arith.constant 0.000000e+00 : f32
    %117 = vector.shape_cast %116 : vector<112x1xi1> to vector<112x1xi1>
    %118 = vector.broadcast %117 : vector<112x1xi1> to vector<112x128xi1>
    %119 = vector.broadcast %cst_118 : f32 to vector<112x128xf32>
    %120 = arith.select %118, %95, %119 : vector<112x128xi1>, vector<112x128xf32>
    %cst_119 = arith.constant dense<0.000000e+00> : vector<128xf32>
    %121 = vector.multi_reduction <add>, %120, %cst_119 [0] : vector<112x128xf32> to vector<128xf32>
    %122 = vector.shape_cast %121 : vector<128xf32> to vector<1x128xf32>
    %123 = vector.shape_cast %122 : vector<1x128xf32> to vector<1x1x128xf32>
    %c0_120 = arith.constant 0 : index
    %c0_121 = arith.constant 0 : index
    %c0_122 = arith.constant 0 : index
    %124 = vector.load %arg7[%c0_120, %c0_121, %c0_122] : memref<1x2x128xf32, #tpu.memory_space<vmem>>, vector<1x1x128xf32>
    tpu.vector_store %arg7[%c0_120, %c0_121, %c0_122], %123 {strides = array<i32>} : memref<1x2x128xf32, #tpu.memory_space<vmem>>, vector<1x1x128xf32>,
    %125 = arith.mulf %120, %120 : vector<112x128xf32>
    %cst_123 = arith.constant dense<0.000000e+00> : vector<128xf32>
    %126 = vector.multi_reduction <add>, %125, %cst_123 [0] : vector<112x128xf32> to vector<128xf32>
    %127 = vector.shape_cast %126 : vector<128xf32> to vector<1x128xf32>
    %128 = vector.shape_cast %127 : vector<1x128xf32> to vector<1x1x128xf32>
    %c0_124 = arith.constant 0 : index
    %c1_125 = arith.constant 1 : index
    %c0_126 = arith.constant 0 : index
    %129 = vector.load %arg7[%c0_124, %c1_125, %c0_126] : memref<1x2x128xf32, #tpu.memory_space<vmem>>, vector<1x1x128xf32>
    tpu.vector_store %arg7[%c0_124, %c1_125, %c0_126], %128 {strides = array<i32>} : memref<1x2x128xf32, #tpu.memory_space<vmem>>, vector<1x1x128xf32>,
    return
  }
  func.func @transform_0(%arg0: i32) -> (i32, i32, i32, i32) {
    %c0_i32 = arith.constant 0 : i32
    %c0_i32_0 = arith.constant 0 : i32
    %c0_i32_1 = arith.constant 0 : i32
    %c0_i32_2 = arith.constant 0 : i32
    return %arg0, %c0_i32, %c0_i32_0, %c0_i32_1 : i32, i32, i32, i32
  }
  func.func @transform_1(%arg0: i32) -> (i32, i32) {
    %c0_i32 = arith.constant 0 : i32
    %c0_i32_0 = arith.constant 0 : i32
    %c0_i32_1 = arith.constant 0 : i32
    return %c0_i32, %c0_i32_0 : i32, i32
  }
  func.func @transform_2(%arg0: i32) -> (i32, i32) {
    %c0_i32 = arith.constant 0 : i32
    %c0_i32_0 = arith.constant 0 : i32
    %c0_i32_1 = arith.constant 0 : i32
    return %c0_i32, %c0_i32_0 : i32, i32
  }
  func.func @transform_3(%arg0: i32) -> (i32, i32) {
    %c0_i32 = arith.constant 0 : i32
    %c0_i32_0 = arith.constant 0 : i32
    %c0_i32_1 = arith.constant 0 : i32
    return %c0_i32, %c0_i32_0 : i32, i32
  }
  func.func @transform_4(%arg0: i32) -> (i32, i32) {
    %c0_i32 = arith.constant 0 : i32
    %c0_i32_0 = arith.constant 0 : i32
    %c0_i32_1 = arith.constant 0 : i32
    return %c0_i32, %c0_i32_0 : i32, i32
  }
  func.func @transform_5(%arg0: i32) -> (i32, i32) {
    %c0_i32 = arith.constant 0 : i32
    %c0_i32_0 = arith.constant 0 : i32
    return %arg0, %c0_i32 : i32, i32
  }
  func.func @transform_6(%arg0: i32) -> (i32, i32, i32) {
    %c0_i32 = arith.constant 0 : i32
    %c0_i32_0 = arith.constant 0 : i32
    %c0_i32_1 = arith.constant 0 : i32
    return %arg0, %c0_i32, %c0_i32_0 : i32, i32, i32
  }
}

</mosaic_0001>

<bundles_post_ra>
// kernel: tile.13
= control target key start
LH: loop header
LB: loop body
LE: loop exit
PB: predicated region body
PF: predicated region fallthrough
CT: control target
= control target key end

     0   :  { %s22_s0 = inlined_call_operand.vmem [shape: f32[64], index: 0, kind: input, shape index: {}]   ;;  %s23_s1 = inlined_call_operand.vmem [shape: f32[4,64], index: 1, kind: output, shape index: {}]  }
   0x1   :  { %v4_v0 = vld [vmem:[%s22_s0] ss:$0 sm:$0xff] }
   0x2   :  { %5 = vst [vmem:[%s23_s1] sm:$0xf] %v4_v0 }

// kernel: tile.14
= control target key start
LH: loop header
LB: loop body
LE: loop exit
PB: predicated region body
PF: predicated region fallthrough
CT: control target
= control target key end

     0   :  { %s6_s8 = smov 3  ;;  %vm8_vm0 = vcmask 523264   ;;  %s31_s9 = smov 64   ;;  %vm15_vm1 = vcmask 1048064   ;;  %s51_s0 = inlined_call_operand.vmem [shape: f32[4,64], index: 0, kind: input, shape index: {}]   ;;  %s52_s1 = inlined_call_operand.vmem [shape: f32[1,256], index: 1, kind: output, shape index: {}]  }
   0x1   :  { %v4_v0 = vld [vmem:[%s51_s0] sm:$0xf]  ;;  %s11_s0 = smov 3 }
   0x2   :  { %5 = vst [vmem:[#allocation1] sm:$0xf] %v4_v0 }
   0x9   :  { %v12_v1 = vld [vmem:[#allocation1 + $0x1] ss:$2 sm:%s11_s0]   ;;  %v7_v2 = vld [vmem:[#allocation1] ss:$2 sm:%s6_s8]  }
   0xa   :  { %13 = vrot.lane.b32.xlu0 %v12_v1, %s31_s9  ;;  %9 = vst.msk [vmem:[#allocation0] ss:$8 sm:$0x3] %vm8_vm0, %v7_v2  }
  0x7c   :  { %v14_v3 = vpop.permute.xlu0 %13  }
  0x7d   :  { %16 = vst.msk [vmem:[#allocation0] ss:$8 sm:$0x3] %vm15_vm1, %v14_v3  }
  0x84   :  { %v19_v4 = vld [vmem:[#allocation0] sm:$0x1]  ;;  %v24_v5 = vld [vmem:[#allocation0 + $0x8] sm:$0x1] }
  0x85   :  { %22 = vst [vmem:[%s52_s1] sm:$0x1] %v19_v4 }
  0x86   :  { %29 = vst [vmem:[%s52_s1 + $0x1] sm:$0x1] %v24_v5 }

// kernel: discriminator_forward.5
= control target key start
LH: loop header
LB: loop body
LE: loop exit
PB: predicated region body
PF: predicated region fallthrough
CT: control target
= control target key end

     0   :  { %vm91_vm0 = vcmask 1041409   ;;  %vm94_vm1 = vcmask 1041408   ;;  %vm103_vm2 = vcmask 1024   ;;  %s212_s0 = inlined_call_operand.vmem [shape: bf16[2,7,8,128], index: 0, kind: input, shape index: {}]   ;;  %s213_s1 = inlined_call_operand.vmem [shape: f32[7,8,128], index: 1, kind: input, shape index: {}]   ;;  %s214_s2 = inlined_call_operand.<no memory space> [shape: f32[1,1], index: 2, kind: input, shape index: {}]   ;;  %s215_s3 = inlined_call_operand.vmem [shape: f32[2,1], index: 3, kind: output, shape index: {}]  }
   0x1   :  { %v110_v0 = vld [vmem:[%s212_s0] sm:$0xff]   ;;  %v137_v1 = vld [vmem:[%s212_s0 + $0x8] sm:$0xff]   ;;  %v139_v4 = vld [vmem:[%s212_s0 + $0x18] sm:$0xff]   ;;  %v8_v34 = vstv %s214_s2 }
   0x2   :  { %v111_v2 = vunpack.c.l.bf16 %v110_v0  ;;  %v112_v3 = vunpack.c.h.bf16 %v110_v0  ;;  %v140_v5 = vld [vmem:[%s212_s0 + $0x20] sm:$0xff]   ;;  %v141_v6 = vld [vmem:[%s212_s0 + $0x28] sm:$0xff]   ;;  %v115_v7 = vunpack.c.l.bf16 %v137_v1  ;;  %v138_v8 = vld [vmem:[%s212_s0 + $0x10] sm:$0xff]   ;;  %v124_v9 = vunpack.c.h.bf16 %v139_v4  ;;  %9 = vst [vmem:[#allocation2] sm:$0x1] %v8_v34 }
   0x3   :  { %v44_v10 = vld [vmem:[%s213_s1] sm:$0xff]  ;;  %v45_v11 = vld [vmem:[%s213_s1 + $0x8] sm:$0xff]  ;;  %v116_v12 = vunpack.c.h.bf16 %v137_v1  ;;  %v127_v13 = vunpack.c.l.bf16 %v140_v5  ;;  %v128_v14 = vunpack.c.h.bf16 %v140_v5  ;;  %v46_v15 = vld [vmem:[%s213_s1 + $0x10] sm:$0xff]  ;;  %v131_v16 = vunpack.c.l.bf16 %v141_v6 }
   0x4   :  { %v142_v17 = vld [vmem:[%s212_s0 + $0x30] sm:$0xff]   ;;  %v47_v18 = vld [vmem:[%s213_s1 + $0x18] sm:$0xff]  ;;  %v51_v19 = vmul.f32 %v111_v2, %v44_v10  ;;  %v52_v20 = vmul.f32 %v112_v3, %v45_v11  ;;  %v119_v21 = vunpack.c.l.bf16 %v138_v8  ;;  %v132_v22 = vunpack.c.h.bf16 %v141_v6  ;;  %v48_v29 = vld [vmem:[%s213_s1 + $0x20] sm:$0xff] }
   0x5   :  { %v53_v23 = vmul.f32 %v115_v7, %v46_v15  ;;  %v58_v24 = vmul.f32 %v124_v9, %v44_v10  ;;  %v59_v25 = vmul.f32 %v127_v13, %v45_v11  ;;  %v60_v26 = vmul.f32 %v128_v14, %v46_v15  ;;  %v49_v37 = vld [vmem:[%s213_s1 + $0x28] sm:$0xff]  ;;  %v50_v42 = vld [vmem:[%s213_s1 + $0x30] sm:$0xff] }
   0x6   :  { %v120_v27 = vunpack.c.h.bf16 %v138_v8  ;;  %v135_v28 = vunpack.c.l.bf16 %v142_v17  ;;  %v54_v30 = vmul.f32 %v116_v12, %v47_v18  ;;  %v61_v31 = vmul.f32 %v131_v16, %v47_v18 }
   0x7   :  { %v65_v32 = vadd.f32 %v52_v20, %v51_v19  ;;  %v71_v33 = vadd.f32 %v59_v25, %v58_v24  ;;  %v123_v35 = vunpack.c.l.bf16 %v139_v4  ;;  %v136_v36 = vunpack.c.h.bf16 %v142_v17 }
   0x8   :  { %v55_v38 = vmul.f32 %v119_v21, %v48_v29  ;;  %v62_v39 = vmul.f32 %v132_v22, %v48_v29  ;;  %v56_v43 = vmul.f32 %v120_v27, %v49_v37  ;;  %v63_v44 = vmul.f32 %v135_v28, %v49_v37 }
   0x9   :  { %v66_v40 = vadd.f32 %v65_v32, %v53_v23  ;;  %v72_v41 = vadd.f32 %v71_v33, %v60_v26  ;;  %v57_v47 = vmul.f32 %v123_v35, %v50_v42  ;;  %v64_v48 = vmul.f32 %v136_v36, %v50_v42  ;;  %v143_v5 = vld [vmem:[#allocation2] ss:$0 sm:$0xff] }
   0xb   :  { %v67_v45 = vadd.f32 %v66_v40, %v54_v30  ;;  %v73_v46 = vadd.f32 %v72_v41, %v61_v31 }
   0xd   :  { %v68_v49 = vadd.f32 %v67_v45, %v55_v38  ;;  %v74_v50 = vadd.f32 %v73_v46, %v62_v39 }
   0xf   :  { %v69_v51 = vadd.f32 %v68_v49, %v56_v43  ;;  %v75_v52 = vadd.f32 %v74_v50, %v63_v44 }
  0x11   :  { %v70_v53 = vadd.f32 %v69_v51, %v57_v47  ;;  %v76_v54 = vadd.f32 %v75_v52, %v64_v48 }
  0x13   :  { %v77_v55 = vrot.slane %v70_v53, 4  ;;  %v83_v56 = vrot.slane %v76_v54, 4 }
  0x15   :  { %v78_v57 = vadd.f32 %v77_v55, %v70_v53  ;;  %v84_v58 = vadd.f32 %v83_v56, %v76_v54 }
  0x17   :  { %v79_v59 = vrot.slane %v78_v57, 2  ;;  %v85_v60 = vrot.slane %v84_v58, 2 }
  0x19   :  { %v80_v61 = vadd.f32 %v79_v59, %v78_v57  ;;  %v86_v62 = vadd.f32 %v85_v60, %v84_v58 }
  0x1b   :  { %v81_v63 = vrot.slane %v80_v61, 1  ;;  %v87_v0 = vrot.slane %v86_v62, 1 }
  0x1d   :  { %v82_v1 = vadd.f32 %v81_v63, %v80_v61  ;;  %v88_v2 = vadd.f32 %v87_v0, %v86_v62 }
  0x1f   :  { %v92_v3 = vsel %vm91_vm0, %v88_v2, %v82_v1 }
  0x20   :  { %v95_v4 = vsel %vm94_vm1, %v92_v3, 0.0 }
  0x21   :  { %96 = vadd.xlane.f32.xlu0 %v95_v4 }
  0x94   :  { %v97_v6 = vpop.xlane.xlu0 %96 }
  0x95   :  { %v102_v7 = vadd.f32 %v143_v5, %v97_v6 }
  0x97   :  { %104 = vst.msk [vmem:[%s215_s3] sm:$0x3] %vm103_vm2, %v102_v7 }

// kernel: discriminator_forward.3
= control target key start
LH: loop header
LB: loop body
LE: loop exit
PB: predicated region body
PF: predicated region fallthrough
CT: control target
= control target key end

     0   :  { %vm209_vm0 = vcmask 261120   ;;  %vm614_vm3 = vcmask 519168   ;;  %s1921_s1 = inlined_call_operand.vmem [shape: bf16[32,64], index: 1, kind: input, shape index: {}]   ;;  %s1922_s2 = inlined_call_operand.vmem [shape: f32[1,64], index: 2, kind: input, shape index: {}]   ;;  %s1923_s0 = inlined_call_operand.vmem [shape: bf16[392,32], index: 0, kind: input, shape index: {}]   ;;  %s1924_s3 = inlined_call_operand.vmem [shape: bf16[392,64], index: 3, kind: output, shape index: {0}]   ;;  %s1925_s4 = inlined_call_operand.vmem [shape: f32[1,2,64], index: 4, kind: output, shape index: {1}]  }
   0x1   :  { %v1085_v0 = vld [vmem:[%s1921_s1 + $0x8] sm:$0xff]  ;;  %v1084_v1 = vld [vmem:[%s1921_s1] sm:$0xff]  ;;  %v1066_v3 = vld [vmem:[%s1923_s0 + $0x30] sm:$0xff] }
   0x2   :  { %291 = vmatpush.bf16.msra.mxu0 %v1085_v0  ;;  %1086 = vmatpush.bf16.msra.mxu1 %v1085_v0  ;;  %v1060_v2 = vld [vmem:[%s1923_s0] sm:$0xff]  ;;  %v1073_v4 = vld [vmem:[%s1923_s0 + $0x68] sm:$0xff]  ;;  %v1067_v6 = vld [vmem:[%s1923_s0 + $0x38] sm:$0xff] }
   0x3   :  { %1087 = vmatpush.bf16.msra.mxu2 %v1085_v0  ;;  %1088 = vmatpush.bf16.msra.mxu3 %v1085_v0  ;;  %v1061_v5 = vld [vmem:[%s1923_s0 + $0x8] sm:$0xff]  ;;  %v1074_v7 = vld [vmem:[%s1923_s0 + $0x70] sm:$0xff]  ;;  %v1068_v9 = vld [vmem:[%s1923_s0 + $0x40] sm:$0xff] }
   0x4   :  { %v1062_v8 = vld [vmem:[%s1923_s0 + $0x10] sm:$0xff]  ;;  %v1075_v10 = vld [vmem:[%s1923_s0 + $0x78] sm:$0xff]  ;;  %v1069_v12 = vld [vmem:[%s1923_s0 + $0x48] sm:$0xff] }
   0x5   :  { %v1063_v11 = vld [vmem:[%s1923_s0 + $0x18] sm:$0xff]  ;;  %v1076_v13 = vld [vmem:[%s1923_s0 + $0x80] sm:$0xff]  ;;  %v1070_v16 = vld [vmem:[%s1923_s0 + $0x50] sm:$0xff] }
   0x6   :  { %292 = vmatpush.bf16.msra.mxu0 %v1084_v1  ;;  %1089 = vmatpush.bf16.msra.mxu1 %v1084_v1  ;;  %v1080_v14 = vld [vmem:[%s1923_s0 + $0xa0] sm:$0xff]  ;;  %v1077_v17 = vld [vmem:[%s1923_s0 + $0x88] sm:$0xff]  ;;  %v1071_v20 = vld [vmem:[%s1923_s0 + $0x58] sm:$0xff] }
   0x7   :  { %1090 = vmatpush.bf16.msra.mxu2 %v1084_v1  ;;  %1091 = vmatpush.bf16.msra.mxu3 %v1084_v1  ;;  %v1064_v15 = vld [vmem:[%s1923_s0 + $0x20] sm:$0xff]  ;;  %v1081_v18 = vld [vmem:[%s1923_s0 + $0xa8] sm:$0xff]  ;;  %v1078_v21 = vld [vmem:[%s1923_s0 + $0x90] sm:$0xff] }
   0x8   :  { %v1065_v19 = vld [vmem:[%s1923_s0 + $0x28] sm:$0xff]  ;;  %v1082_v22 = vld [vmem:[%s1923_s0 + $0xb0] sm:$0xff]  ;;  %v1072_v23 = vld [vmem:[%s1923_s0 + $0x60] sm:$0xff] }
   0x9   :  { %1035 = vmatmul.msk.bf16.vlgmr.msra.gmra.mxu0 %vm209_vm0, %v1060_v2  ;;  %1041 = vmatmul.msk.bf16.vlgmr.msra.gmra.mxu1 %vm209_vm0, %v1066_v3  ;;  %v1079_v24 = vld [vmem:[%s1923_s0 + $0x98] sm:$0xff]  ;;  %v65_v26 = vld [vmem:[%s1923_s0 + $0xc0] sm:$0xf] }
   0xa   :  { %1048 = vmatmul.msk.bf16.vlgmr.msra.gmra.mxu2 %vm209_vm0, %v1073_v4  ;;  %1055 = vmatmul.msk.bf16.vlgmr.msra.gmra.mxu3 %vm209_vm0, %v1080_v14  ;;  %v1083_v25 = vld [vmem:[%s1923_s0 + $0xb8] sm:$0xff]  ;;  %v171_v27 = vunpack.c.l.b16 %v65_v26  ;;  %v1227_v29 = vld [vmem:[%s1922_s2] ss:$0 sm:$0xff] }
   0xc   :  { %v196_v28 = vpack.c.b16 %v171_v27, %v171_v27 }
  0x19   :  { %1036 = vmatmul.msk.bf16.gmra.mxu0 %vm209_vm0, %v1061_v5  ;;  %1042 = vmatmul.msk.bf16.gmra.mxu1 %vm209_vm0, %v1067_v6 }
  0x1a   :  { %1049 = vmatmul.msk.bf16.gmra.mxu2 %vm209_vm0, %v1074_v7  ;;  %1056 = vmatmul.msk.bf16.gmra.mxu3 %vm209_vm0, %v1081_v18 }
  0x29   :  { %1037 = vmatmul.msk.bf16.gmra.mxu0 %vm209_vm0, %v1062_v8  ;;  %1043 = vmatmul.msk.bf16.gmra.mxu1 %vm209_vm0, %v1068_v9 }
  0x2a   :  { %1050 = vmatmul.msk.bf16.gmra.mxu2 %vm209_vm0, %v1075_v10  ;;  %1057 = vmatmul.msk.bf16.gmra.mxu3 %vm209_vm0, %v1082_v22 }
  0x39   :  { %1038 = vmatmul.msk.bf16.gmra.mxu0 %vm209_vm0, %v1063_v11  ;;  %1044 = vmatmul.msk.bf16.gmra.mxu1 %vm209_vm0, %v1069_v12 }
  0x3a   :  { %1051 = vmatmul.msk.bf16.gmra.mxu2 %vm209_vm0, %v1076_v13  ;;  %1058 = vmatmul.msk.bf16.gmra.mxu3 %vm209_vm0, %v1083_v25 }
  0x49   :  { %1039 = vmatmul.msk.bf16.gmra.mxu0 %vm209_vm0, %v1064_v15  ;;  %1045 = vmatmul.msk.bf16.gmra.mxu1 %vm209_vm0, %v1070_v16 }
  0x4a   :  { %1052 = vmatmul.msk.bf16.gmra.mxu2 %vm209_vm0, %v1077_v17  ;;  %1059 = vmatmul.msk.bf16.gmra.mxu3 %vm209_vm0, %v196_v28 }
  0x59   :  { %1040 = vmatmul.msk.bf16.gmra.mxu0 %vm209_vm0, %v1065_v19  ;;  %1046 = vmatmul.msk.bf16.gmra.mxu1 %vm209_vm0, %v1071_v20 }
  0x5a   :  { %1053 = vmatmul.msk.bf16.gmra.mxu2 %vm209_vm0, %v1078_v21 }
  0x69   :  { %1047 = vmatmul.msk.bf16.gmra.mxu1 %vm209_vm0, %v1072_v23 }
  0x6a   :  { %1054 = vmatmul.msk.bf16.gmra.mxu2 %vm209_vm0, %v1079_v24 }
  0x86   :  { %v294_v30 = vpop.f32.mrf.mxu0  ;;  %v324_v31 = vpop.f32.mrf.mxu1 }
  0x87   :  { %v295_v32 = vadd.f32 %v1227_v29, %v294_v30  ;;  %v325_v33 = vadd.f32 %v1227_v29, %v324_v31 }
  0x89   :  { %vm418_vm1 = vcmp.ge.f32.partialorder %v295_v32, 0.0  ;;  %v467_v34 = vmul.f32 0.2, %v295_v32  ;;  %vm430_vm2 = vcmp.ge.f32.partialorder %v325_v33, 0.0  ;;  %v479_v35 = vmul.f32 0.2, %v325_v33 }
  0x8b   :  { %v1231_v36 = vsel %vm418_vm1, %v295_v32, %v467_v34  ;;  %v1233_v37 = vsel %vm430_vm2, %v325_v33, %v479_v35 }
  0x8c   :  { %v565_v38 = vpack.c.bf16 %v1231_v36, %v1231_v36  ;;  %v577_v39 = vpack.c.bf16 %v1233_v37, %v1233_v37 }
  0x8d   :  { %v359_v40 = vpop.f32.mrf.mxu2 }
  0x8e   :  { %615 = vst.msk [vmem:[%s1924_s3] sm:$0xf] %vm614_vm3, %v565_v38  ;;  %v296_v41 = vpop.f32.mrf.mxu0  ;;  %v326_v42 = vpop.f32.mrf.mxu1  ;;  %v360_v43 = vadd.f32 %v1227_v29, %v359_v40 }
  0x8f   :  { %627 = vst.msk [vmem:[%s1924_s3 + $0x30] sm:$0xf] %vm614_vm3, %v577_v39  ;;  %v297_v44 = vadd.f32 %v1227_v29, %v296_v41  ;;  %v327_v45 = vadd.f32 %v1227_v29, %v326_v42 }
  0x90   :  { %vm444_vm4 = vcmp.ge.f32.partialorder %v360_v43, 0.0  ;;  %v493_v46 = vmul.f32 0.2, %v360_v43 }
  0x91   :  { %vm419_vm5 = vcmp.ge.f32.partialorder %v297_v44, 0.0  ;;  %v468_v47 = vmul.f32 0.2, %v297_v44  ;;  %vm431_vm6 = vcmp.ge.f32.partialorder %v327_v45, 0.0  ;;  %v480_v48 = vmul.f32 0.2, %v327_v45 }
  0x92   :  { %v1250_v49 = vsel %vm444_vm4, %v360_v43, %v493_v46 }
  0x93   :  { %v1252_v50 = vsel %vm419_vm5, %v297_v44, %v468_v47  ;;  %v1254_v51 = vsel %vm431_vm6, %v327_v45, %v480_v48  ;;  %v591_v52 = vpack.c.bf16 %v1250_v49, %v1250_v49 }
  0x94   :  { %v566_v53 = vpack.c.bf16 %v1252_v50, %v1252_v50  ;;  %v578_v54 = vpack.c.bf16 %v1254_v51, %v1254_v51 }
  0x95   :  { %641 = vst.msk [vmem:[%s1924_s3 + $0x68] sm:$0xf] %vm614_vm3, %v591_v52  ;;  %v361_v55 = vpop.f32.mrf.mxu2 }
  0x96   :  { %616 = vst.msk [vmem:[%s1924_s3 + $0x4] sm:$0xf] %vm614_vm3, %v566_v53  ;;  %v299_v56 = vpop.f32.mrf.mxu0  ;;  %v329_v57 = vpop.f32.mrf.mxu1  ;;  %v362_v58 = vadd.f32 %v1227_v29, %v361_v55 }
  0x97   :  { %628 = vst.msk [vmem:[%s1924_s3 + $0x34] sm:$0xf] %vm614_vm3, %v578_v54  ;;  %v300_v59 = vadd.f32 %v1227_v29, %v299_v56  ;;  %v330_v60 = vadd.f32 %v1227_v29, %v329_v57 }
  0x98   :  { %vm445_vm7 = vcmp.ge.f32.partialorder %v362_v58, 0.0  ;;  %v494_v61 = vmul.f32 0.2, %v362_v58 }
  0x99   :  { %vm420_vm8 = vcmp.ge.f32.partialorder %v300_v59, 0.0  ;;  %v469_v62 = vmul.f32 0.2, %v300_v59  ;;  %vm432_vm9 = vcmp.ge.f32.partialorder %v330_v60, 0.0  ;;  %v481_v63 = vmul.f32 0.2, %v330_v60 }
  0x9a   :  { %v1277_v0 = vsel %vm445_vm7, %v362_v58, %v494_v61  ;;  %vm664_vm7 = vcmask 523264  }
  0x9b   :  { %v1279_v1 = vsel %vm420_vm8, %v300_v59, %v469_v62  ;;  %v1281_v2 = vsel %vm432_vm9, %v330_v60, %v481_v63  ;;  %v592_v3 = vpack.c.bf16 %v1277_v0, %v1277_v0 }
  0x9c   :  { %v567_v4 = vpack.c.bf16 %v1279_v1, %v1279_v1  ;;  %v579_v5 = vpack.c.bf16 %v1281_v2, %v1281_v2 }
  0x9d   :  { %642 = vst.msk [vmem:[%s1924_s3 + $0x6c] sm:$0xf] %vm614_vm3, %v592_v3  ;;  %v364_v6 = vpop.f32.mrf.mxu2 }
  0x9e   :  { %617 = vst.msk [vmem:[%s1924_s3 + $0x8] sm:$0xf] %vm614_vm3, %v567_v4  ;;  %v301_v7 = vpop.f32.mrf.mxu0  ;;  %v331_v8 = vpop.f32.mrf.mxu1  ;;  %v365_v9 = vadd.f32 %v1227_v29, %v364_v6 }
  0x9f   :  { %629 = vst.msk [vmem:[%s1924_s3 + $0x38] sm:$0xf] %vm614_vm3, %v579_v5  ;;  %v302_v10 = vadd.f32 %v1227_v29, %v301_v7  ;;  %v332_v11 = vadd.f32 %v1227_v29, %v331_v8 }
  0xa0   :  { %vm446_vm10 = vcmp.ge.f32.partialorder %v365_v9, 0.0  ;;  %v495_v12 = vmul.f32 0.2, %v365_v9 }
  0xa1   :  { %vm421_vm11 = vcmp.ge.f32.partialorder %v302_v10, 0.0  ;;  %v470_v13 = vmul.f32 0.2, %v302_v10  ;;  %vm433_vm12 = vcmp.ge.f32.partialorder %v332_v11, 0.0  ;;  %v482_v14 = vmul.f32 0.2, %v332_v11 }
  0xa2   :  { %v1304_v15 = vsel %vm446_vm10, %v365_v9, %v495_v12  ;;  %v770_v12 = vmul.f32 %v1231_v36, %v1231_v36 }
  0xa3   :  { %v1306_v16 = vsel %vm421_vm11, %v302_v10, %v470_v13  ;;  %v1308_v17 = vsel %vm433_vm12, %v332_v11, %v482_v14  ;;  %v593_v18 = vpack.c.bf16 %v1304_v15, %v1304_v15  ;;  %v771_v13 = vmul.f32 %v1252_v50, %v1252_v50 }
  0xa4   :  { %v568_v19 = vpack.c.bf16 %v1306_v16, %v1306_v16  ;;  %v580_v20 = vpack.c.bf16 %v1308_v17, %v1308_v17 }
  0xa5   :  { %643 = vst.msk [vmem:[%s1924_s3 + $0x70] sm:$0xf] %vm614_vm3, %v593_v18  ;;  %v366_v21 = vpop.f32.mrf.mxu2 }
  0xa6   :  { %618 = vst.msk [vmem:[%s1924_s3 + $0xc] sm:$0xf] %vm614_vm3, %v568_v19  ;;  %v304_v22 = vpop.f32.mrf.mxu0  ;;  %v334_v23 = vpop.f32.mrf.mxu1  ;;  %v367_v24 = vadd.f32 %v1227_v29, %v366_v21 }
  0xa7   :  { %630 = vst.msk [vmem:[%s1924_s3 + $0x3c] sm:$0xf] %vm614_vm3, %v580_v20  ;;  %v305_v25 = vadd.f32 %v1227_v29, %v304_v22  ;;  %v335_v26 = vadd.f32 %v1227_v29, %v334_v23  ;;  %v394_v22 = vpop.f32.mrf.mxu3  ;;  %v666_v23 = vsel %vm664_vm7, %v1252_v50, 0.0  ;;  %v668_v50 = vsel %vm664_vm7, %v1279_v1, 0.0 }
  0xa8   :  { %vm447_vm13 = vcmp.ge.f32.partialorder %v367_v24, 0.0  ;;  %v496_v27 = vmul.f32 0.2, %v367_v24 }
  0xa9   :  { %vm422_vm14 = vcmp.ge.f32.partialorder %v305_v25, 0.0  ;;  %v471_v28 = vmul.f32 0.2, %v305_v25  ;;  %vm434_vm15 = vcmp.ge.f32.partialorder %v335_v26, 0.0  ;;  %v483_v30 = vmul.f32 0.2, %v335_v26 }
  0xaa   :  { %v1331_v31 = vsel %vm447_vm13, %v367_v24, %v496_v27  ;;  %v772_v24 = vmul.f32 %v1279_v1, %v1279_v1 }
  0xab   :  { %v1333_v32 = vsel %vm422_vm14, %v305_v25, %v471_v28  ;;  %v1335_v33 = vsel %vm434_vm15, %v335_v26, %v483_v30  ;;  %v594_v34 = vpack.c.bf16 %v1331_v31, %v1331_v31  ;;  %v665_v28 = vsel %vm664_vm7, %v1231_v36, 0.0 }
  0xac   :  { %v569_v35 = vpack.c.bf16 %v1333_v32, %v1333_v32  ;;  %v581_v38 = vpack.c.bf16 %v1335_v33, %v1335_v33  ;;  %v819_v30 = vsel %vm664_vm7, %v770_v12, 0.0 }
  0xad   :  { %644 = vst.msk [vmem:[%s1924_s3 + $0x74] sm:$0xf] %vm614_vm3, %v594_v34  ;;  %v369_v39 = vpop.f32.mrf.mxu2  ;;  %v820_v34 = vsel %vm664_vm7, %v771_v13, 0.0 }
  0xae   :  { %619 = vst.msk [vmem:[%s1924_s3 + $0x10] sm:$0xf] %vm614_vm3, %v569_v35  ;;  %v306_v40 = vpop.f32.mrf.mxu0  ;;  %v336_v41 = vpop.f32.mrf.mxu1  ;;  %v370_v42 = vadd.f32 %v1227_v29, %v369_v39  ;;  %v821_v1 = vadd.f32 %v820_v34, %v819_v30 }
  0xaf   :  { %631 = vst.msk [vmem:[%s1924_s3 + $0x40] sm:$0xf] %vm614_vm3, %v581_v38  ;;  %v307_v43 = vadd.f32 %v1227_v29, %v306_v40  ;;  %v337_v44 = vadd.f32 %v1227_v29, %v336_v41  ;;  %v667_v41 = vadd.f32 %v666_v23, %v665_v28  ;;  %v783_v23 = vmul.f32 %v1254_v51, %v1254_v51 }
  0xb0   :  { %vm448_vm0 = vcmp.ge.f32.partialorder %v370_v42, 0.0  ;;  %v497_v45 = vmul.f32 0.2, %v370_v42 }
  0xb1   :  { %vm423_vm1 = vcmp.ge.f32.partialorder %v307_v43, 0.0  ;;  %v472_v46 = vmul.f32 0.2, %v307_v43  ;;  %vm435_vm2 = vcmp.ge.f32.partialorder %v337_v44, 0.0  ;;  %v484_v47 = vmul.f32 0.2, %v337_v44 }
  0xb2   :  { %v1358_v48 = vsel %vm448_vm0, %v370_v42, %v497_v45  ;;  %v822_v42 = vsel %vm664_vm7, %v772_v24, 0.0 }
  0xb3   :  { %v1360_v52 = vsel %vm423_vm1, %v307_v43, %v472_v46  ;;  %v1362_v53 = vsel %vm435_vm2, %v337_v44, %v484_v47  ;;  %v595_v54 = vpack.c.bf16 %v1358_v48, %v1358_v48  ;;  %v1441_v44 = vsel %vm664_vm7, %v1233_v37, 0.0 }
  0xb4   :  { %v570_v55 = vpack.c.bf16 %v1360_v52, %v1360_v52  ;;  %v582_v56 = vpack.c.bf16 %v1362_v53, %v1362_v53  ;;  %v782_v46 = vmul.f32 %v1233_v37, %v1233_v37  ;;  %v669_v47 = vadd.f32 %v668_v50, %v667_v41 }
  0xb5   :  { %645 = vst.msk [vmem:[%s1924_s3 + $0x78] sm:$0xf] %vm614_vm3, %v595_v54  ;;  %v371_v57 = vpop.f32.mrf.mxu2  ;;  %v773_v54 = vmul.f32 %v1306_v16, %v1306_v16  ;;  %v674_v50 = vsel %vm664_vm7, %v1360_v52, 0.0 }
  0xb6   :  { %620 = vst.msk [vmem:[%s1924_s3 + $0x14] sm:$0xf] %vm614_vm3, %v570_v55  ;;  %v309_v58 = vpop.f32.mrf.mxu0  ;;  %v339_v59 = vpop.f32.mrf.mxu1  ;;  %v372_v60 = vadd.f32 %v1227_v29, %v371_v57 }
  0xb7   :  { %632 = vst.msk [vmem:[%s1924_s3 + $0x44] sm:$0xf] %vm614_vm3, %v582_v56  ;;  %v310_v61 = vadd.f32 %v1227_v29, %v309_v58  ;;  %v340_v62 = vadd.f32 %v1227_v29, %v339_v59  ;;  %v823_v58 = vadd.f32 %v822_v42, %v821_v1  ;;  %v670_v59 = vsel %vm664_vm7, %v1306_v16, 0.0 }
  0xb8   :  { %vm449_vm4 = vcmp.ge.f32.partialorder %v372_v60, 0.0  ;;  %v498_v63 = vmul.f32 0.2, %v372_v60 }
  0xb9   :  { %vm424_vm5 = vcmp.ge.f32.partialorder %v310_v61, 0.0  ;;  %v473_v3 = vmul.f32 0.2, %v310_v61  ;;  %vm436_vm6 = vcmp.ge.f32.partialorder %v340_v62, 0.0  ;;  %v485_v4 = vmul.f32 0.2, %v340_v62 }
  0xba   :  { %v1385_v5 = vsel %vm449_vm4, %v372_v60, %v498_v63 }
  0xbb   :  { %v1387_v6 = vsel %vm424_vm5, %v310_v61, %v473_v3  ;;  %v1389_v7 = vsel %vm436_vm6, %v340_v62, %v485_v4  ;;  %v596_v8 = vpack.c.bf16 %v1385_v5, %v1385_v5  ;;  %v396_v61 = vpop.f32.mrf.mxu3  ;;  %v774_v62 = vmul.f32 %v1333_v32, %v1333_v32 }
  0xbc   :  { %v571_v9 = vpack.c.bf16 %v1387_v6, %v1387_v6  ;;  %v583_v10 = vpack.c.bf16 %v1389_v7, %v1389_v7  ;;  %v395_v3 = vadd.f32 %v1227_v29, %v394_v22  ;;  %v1489_v22 = vsel %vm664_vm7, %v1254_v51, 0.0 }
  0xbd   :  { %646 = vst.msk [vmem:[%s1924_s3 + $0x7c] sm:$0xf] %vm614_vm3, %v596_v8  ;;  %v374_v11 = vpop.f32.mrf.mxu2  ;;  %v824_v8 = vsel %vm664_vm7, %v773_v54, 0.0  ;;  %v826_v24 = vsel %vm664_vm7, %v774_v62, 0.0 }
  0xbe   :  { %621 = vst.msk [vmem:[%s1924_s3 + $0x18] sm:$0xf] %vm614_vm3, %v571_v9  ;;  %v311_v14 = vpop.f32.mrf.mxu0  ;;  %v341_v18 = vpop.f32.mrf.mxu1  ;;  %v375_v19 = vadd.f32 %v1227_v29, %v374_v11  ;;  %v672_v9 = vsel %vm664_vm7, %v1333_v32, 0.0  ;;  %v507_v11 = vmul.f32 0.2, %v395_v3  ;;  %vm458_vm14 = vcmp.ge.f32.partialorder %v395_v3, 0.0 }
  0xbf   :  { %633 = vst.msk [vmem:[%s1924_s3 + $0x48] sm:$0xf] %vm614_vm3, %v583_v10  ;;  %v312_v20 = vadd.f32 %v1227_v29, %v311_v14  ;;  %v342_v21 = vadd.f32 %v1227_v29, %v341_v18  ;;  %v671_v18 = vadd.f32 %v670_v59, %v669_v47 }
  0xc0   :  { %vm450_vm8 = vcmp.ge.f32.partialorder %v375_v19, 0.0  ;;  %v499_v25 = vmul.f32 0.2, %v375_v19  ;;  %v1503_v34 = vsel %vm458_vm14, %v395_v3, %v507_v11  ;;  %v1538_v3 = vsel %vm664_vm7, %v1281_v2, 0.0 }
  0xc1   :  { %vm425_vm9 = vcmp.ge.f32.partialorder %v312_v20, 0.0  ;;  %v474_v26 = vmul.f32 0.2, %v312_v20  ;;  %vm437_vm10 = vcmp.ge.f32.partialorder %v342_v21, 0.0  ;;  %v486_v27 = vmul.f32 0.2, %v342_v21 }
  0xc2   :  { %v1424_v35 = vsel %vm450_vm8, %v375_v19, %v499_v25  ;;  %v775_v19 = vmul.f32 %v1360_v52, %v1360_v52  ;;  %v397_v52 = vadd.f32 %v1227_v29, %v396_v61 }
  0xc3   :  { %v1428_v38 = vsel %vm425_vm9, %v312_v20, %v474_v26  ;;  %v1430_v39 = vsel %vm437_vm10, %v342_v21, %v486_v27  ;;  %v597_v40 = vpack.c.bf16 %v1424_v35, %v1424_v35  ;;  %v1485_v21 = vsel %vm664_vm7, %v782_v46, 0.0 }
  0xc4   :  { %v572_v36 = vpack.c.bf16 %v1428_v38, %v1428_v38  ;;  %v584_v43 = vpack.c.bf16 %v1430_v39, %v1430_v39  ;;  %v825_v26 = vadd.f32 %v824_v8, %v823_v58  ;;  %v673_v27 = vadd.f32 %v672_v9, %v671_v18 }
  0xc5   :  { %647 = vst.msk [vmem:[%s1924_s3 + $0x80] sm:$0xf] %vm614_vm3, %v597_v40  ;;  %v376_v45 = vpop.f32.mrf.mxu2  ;;  %v776_v40 = vmul.f32 %v1387_v6, %v1387_v6  ;;  %v828_v1 = vsel %vm664_vm7, %v775_v19, 0.0  ;;  %v777_v58 = vmul.f32 %v1428_v38, %v1428_v38  ;;  %v508_v62 = vmul.f32 0.2, %v397_v52 }
  0xc6   :  { %622 = vst.msk [vmem:[%s1924_s3 + $0x1c] sm:$0xf] %vm614_vm3, %v572_v36  ;;  %v314_v55 = vpop.f32.mrf.mxu0  ;;  %v344_v56 = vpop.f32.mrf.mxu1  ;;  %v377_v57 = vadd.f32 %v1227_v29, %v376_v45  ;;  %v605_v45 = vpack.c.bf16 %v1503_v34, %v1503_v34  ;;  %v675_v54 = vadd.f32 %v674_v50, %v673_v27  ;;  %vm459_vm2 = vcmp.ge.f32.partialorder %v397_v52, 0.0 }
  0xc7   :  { %634 = vst.msk [vmem:[%s1924_s3 + $0x4c] sm:$0xf] %vm614_vm3, %v584_v43  ;;  %v315_v37 = vadd.f32 %v1227_v29, %v314_v55  ;;  %v345_v60 = vadd.f32 %v1227_v29, %v344_v56  ;;  %v399_v36 = vpop.f32.mrf.mxu3  ;;  %v827_v43 = vadd.f32 %v826_v24, %v825_v26  ;;  %v676_v55 = vsel %vm664_vm7, %v1387_v6, 0.0 }
  0xc8   :  { %vm451_vm11 = vcmp.ge.f32.partialorder %v377_v57, 0.0  ;;  %v500_v63 = vmul.f32 0.2, %v377_v57  ;;  %655 = vst.msk [vmem:[%s1924_s3 + $0xa0] sm:$0xf] %vm614_vm3, %v605_v45  ;;  %v1544_v8 = vmul.f32 %v1281_v2, %v1281_v2  ;;  %v677_v9 = vadd.f32 %v676_v55, %v675_v54 }
  0xc9   :  { %vm426_vm12 = vcmp.ge.f32.partialorder %v315_v37, 0.0  ;;  %v475_v4 = vmul.f32 0.2, %v315_v37  ;;  %vm438_vm13 = vcmp.ge.f32.partialorder %v345_v60, 0.0  ;;  %v487_v16 = vmul.f32 0.2, %v345_v60 }
  0xca   :  { %v1470_v10 = vsel %vm451_vm11, %v377_v57, %v500_v63  ;;  %v830_v57 = vsel %vm664_vm7, %v776_v40, 0.0  ;;  %v1534_v63 = vsel %vm664_vm7, %v783_v23, 0.0  ;;  %v400_v27 = vadd.f32 %v1227_v29, %v399_v36 }
  0xcb   :  { %v1472_v12 = vsel %vm426_vm12, %v315_v37, %v475_v4  ;;  %v1474_v13 = vsel %vm438_vm13, %v345_v60, %v487_v16  ;;  %v598_v14 = vpack.c.bf16 %v1470_v10, %v1470_v10  ;;  %v829_v60 = vadd.f32 %v828_v1, %v827_v43 }
  0xcc   :  { %v573_v20 = vpack.c.bf16 %v1472_v12, %v1472_v12  ;;  %v585_v32 = vpack.c.bf16 %v1474_v13, %v1474_v13  ;;  %v680_v50 = vsel %vm664_vm7, %v1472_v12, 0.0  ;;  %v785_v36 = vmul.f32 %v1308_v17, %v1308_v17 }
  0xcd   :  { %648 = vst.msk [vmem:[%s1924_s3 + $0x84] sm:$0xf] %vm614_vm3, %v598_v14  ;;  %v379_v25 = vpop.f32.mrf.mxu2  ;;  %v831_v11 = vadd.f32 %v830_v57, %v829_v60  ;;  %vm460_vm8 = vcmp.ge.f32.partialorder %v400_v27, 0.0 }
  0xce   :  { %623 = vst.msk [vmem:[%s1924_s3 + $0x20] sm:$0xf] %vm614_vm3, %v573_v20  ;;  %v316_v28 = vpop.f32.mrf.mxu0  ;;  %v346_v30 = vpop.f32.mrf.mxu1  ;;  %v380_v51 = vadd.f32 %v1227_v29, %v379_v25  ;;  %v678_v20 = vsel %vm664_vm7, %v1428_v38, 0.0  ;;  %v778_v25 = vmul.f32 %v1472_v12, %v1472_v12  ;;  %v1570_v38 = vsel %vm459_vm2, %v397_v52, %v508_v62 }
  0xcf   :  { %635 = vst.msk [vmem:[%s1924_s3 + $0x50] sm:$0xf] %vm614_vm3, %v585_v32  ;;  %v317_v41 = vadd.f32 %v1227_v29, %v316_v28  ;;  %v347_v42 = vadd.f32 %v1227_v29, %v346_v30  ;;  %v832_v32 = vsel %vm664_vm7, %v777_v58, 0.0  ;;  %v1561_v24 = vpop.f32.mrf.mxu3 }
  0xd0   :  { %vm452_vm1 = vcmp.ge.f32.partialorder %v380_v51, 0.0  ;;  %v501_v56 = vmul.f32 0.2, %v380_v51  ;;  %v833_v45 = vadd.f32 %v832_v32, %v831_v11 }
  0xd1   :  { %vm427_vm15 = vcmp.ge.f32.partialorder %v317_v41, 0.0  ;;  %v476_v46 = vmul.f32 0.2, %v317_v41  ;;  %vm439_vm0 = vcmp.ge.f32.partialorder %v347_v42, 0.0  ;;  %v488_v47 = vmul.f32 0.2, %v347_v42 }
  0xd2   :  { %v1540_v4 = vsel %vm452_vm1, %v380_v51, %v501_v56  ;;  %v679_v51 = vadd.f32 %v678_v20, %v677_v9 }
  0xd3   :  { %v525_v59 = vsel %vm427_vm15, %v317_v41, %v476_v46  ;;  %v1529_v37 = vsel %vm439_vm0, %v347_v42, %v488_v47  ;;  %v599_v19 = vpack.c.bf16 %v1540_v4, %v1540_v4  ;;  %v606_v41 = vpack.c.bf16 %v1570_v38, %v1570_v38 }
  0xd4   :  { %v574_v61 = vpack.c.bf16 %v525_v59, %v525_v59  ;;  %v586_v6 = vpack.c.bf16 %v1529_v37, %v1529_v37  ;;  %v779_v40 = vmul.f32 %v525_v59, %v525_v59  ;;  %v681_v12 = vadd.f32 %v680_v50, %v679_v51 }
  0xd5   :  { %v381_v16 = vpop.f32.mrf.mxu2  ;;  %649 = vst.msk [vmem:[%s1924_s3 + $0x88] sm:$0xf] %vm614_vm3, %v599_v19  ;;  %v834_v47 = vsel %vm664_vm7, %v778_v25, 0.0  ;;  %v682_v54 = vsel %vm664_vm7, %v525_v59, 0.0 }
  0xd6   :  { %624 = vst.msk [vmem:[%s1924_s3 + $0x24] sm:$0xf] %vm614_vm3, %v574_v61  ;;  %v319_v14 = vpop.f32.mrf.mxu0  ;;  %v349_v18 = vpop.f32.mrf.mxu1  ;;  %v382_v26 = vadd.f32 %v1227_v29, %v381_v16  ;;  %v836_v56 = vsel %vm664_vm7, %v779_v40, 0.0 }
  0xd7   :  { %636 = vst.msk [vmem:[%s1924_s3 + $0x54] sm:$0xf] %vm614_vm3, %v586_v6  ;;  %v320_v2 = vadd.f32 %v1227_v29, %v319_v14  ;;  %v350_v23 = vadd.f32 %v1227_v29, %v349_v18  ;;  %v509_v6 = vmul.f32 0.2, %v400_v27  ;;  %v404_v11 = vpop.f32.mrf.mxu3  ;;  %v835_v14 = vadd.f32 %v834_v47, %v833_v45 }
  0xd8   :  { %vm453_vm6 = vcmp.ge.f32.partialorder %v382_v26, 0.0  ;;  %v502_v1 = vmul.f32 0.2, %v382_v26  ;;  %656 = vst.msk [vmem:[%s1924_s3 + $0xa4] sm:$0xf] %vm614_vm3, %v606_v41  ;;  %v683_v18 = vadd.f32 %v682_v54, %v681_v12  ;;  %v694_v45 = vsel %vm664_vm7, %v1308_v17, 0.0 }
  0xd9   :  { %vm428_vm4 = vcmp.ge.f32.partialorder %v320_v2, 0.0  ;;  %v477_v28 = vmul.f32 0.2, %v320_v2  ;;  %vm440_vm5 = vcmp.ge.f32.partialorder %v350_v23, 0.0  ;;  %v489_v30 = vmul.f32 0.2, %v350_v23 }
  0xda   :  { %v1596_v61 = vsel %vm453_vm6, %v382_v26, %v502_v1  ;;  %v1609_v20 = vsel %vm460_vm8, %v400_v27, %v509_v6  ;;  %v846_v1 = vsel %vm664_vm7, %v1544_v8, 0.0  ;;  %v848_v17 = vsel %vm664_vm7, %v785_v36, 0.0 }
  0xdb   :  { %v526_v42 = vsel %vm428_vm4, %v320_v2, %v477_v28  ;;  %v1578_v43 = vsel %vm440_vm5, %v350_v23, %v489_v30  ;;  %v600_v19 = vpack.c.bf16 %v1596_v61, %v1596_v61  ;;  %v837_v23 = vadd.f32 %v836_v56, %v835_v14 }
  0xdc   :  { %v575_v52 = vpack.c.bf16 %v526_v42, %v526_v42  ;;  %v587_v46 = vpack.c.bf16 %v1578_v43, %v1578_v43  ;;  %v780_v57 = vmul.f32 %v526_v42, %v526_v42  ;;  %v684_v62 = vsel %vm664_vm7, %v526_v42, 0.0 }
  0xdd   :  { %v384_v55 = vpop.f32.mrf.mxu2  ;;  %v685_v25 = vadd.f32 %v684_v62, %v683_v18  ;;  %650 = vst.msk [vmem:[%s1924_s3 + $0x8c] sm:$0xf] %vm614_vm3, %v600_v19  ;;  %v607_v28 = vpack.c.bf16 %v1609_v20, %v1609_v20  ;;  %v402_v56 = vadd.f32 %v1227_v29, %v1561_v24  ;;  %v696_v62 = vsel %vm664_vm7, %v1335_v33, 0.0 }
  0xde   :  { %625 = vst.msk [vmem:[%s1924_s3 + $0x28] sm:$0xf] %vm614_vm3, %v575_v52  ;;  %v321_v58 = vpop.f32.mrf.mxu0  ;;  %v351_v60 = vpop.f32.mrf.mxu1  ;;  %v385_v9 = vadd.f32 %v1227_v29, %v384_v55  ;;  %v838_v26 = vsel %vm664_vm7, %v780_v57, 0.0  ;;  %v786_v24 = vmul.f32 %v1335_v33, %v1335_v33  ;;  %v405_v33 = vadd.f32 %v1227_v29, %v404_v11 }
  0xdf   :  { %637 = vst.msk [vmem:[%s1924_s3 + $0x58] sm:$0xf] %vm614_vm3, %v587_v46  ;;  %v322_v59 = vadd.f32 %v1227_v29, %v321_v58  ;;  %v352_v16 = vadd.f32 %v1227_v29, %v351_v60  ;;  %v839_v52 = vadd.f32 %v838_v26, %v837_v23  ;;  %v406_v6 = vpop.f32.mrf.mxu3  ;;  %vm461_vm12 = vcmp.ge.f32.partialorder %v402_v56, 0.0 }
  0xe0   :  { %vm454_vm11 = vcmp.ge.f32.partialorder %v385_v9, 0.0  ;;  %v503_v27 = vmul.f32 0.2, %v385_v9  ;;  %657 = vst.msk [vmem:[%s1924_s3 + $0xa8] sm:$0xf] %vm614_vm3, %v607_v28  ;;  %v698_v11 = vsel %vm664_vm7, %v1362_v53, 0.0 }
  0xe1   :  { %vm429_vm9 = vcmp.ge.f32.partialorder %v322_v59, 0.0  ;;  %v478_v32 = vmul.f32 0.2, %v322_v59  ;;  %vm441_vm10 = vcmp.ge.f32.partialorder %v352_v16, 0.0  ;;  %v490_v2 = vmul.f32 0.2, %v352_v16 }
  0xe2   :  { %v1636_v55 = vsel %vm454_vm11, %v385_v9, %v503_v27  ;;  %v787_v9 = vmul.f32 %v1362_v53, %v1362_v53  ;;  %v510_v14 = vmul.f32 0.2, %v402_v56  ;;  %v700_v27 = vsel %vm664_vm7, %v1389_v7, 0.0 }
  0xe3   :  { %v527_v30 = vsel %vm429_vm9, %v322_v59, %v478_v32  ;;  %v1618_v51 = vsel %vm441_vm10, %v352_v16, %v490_v2  ;;  %v601_v36 = vpack.c.bf16 %v1636_v55, %v1636_v55  ;;  %v850_v32 = vsel %vm664_vm7, %v786_v24, 0.0 }
  0xe4   :  { %v576_v50 = vpack.c.bf16 %v527_v30, %v527_v30  ;;  %v686_v40 = vsel %vm664_vm7, %v527_v30, 0.0  ;;  %v781_v41 = vmul.f32 %v527_v30, %v527_v30  ;;  %v588_v42 = vpack.c.bf16 %v1618_v51, %v1618_v51 }
  0xe5   :  { %v687_v46 = vadd.f32 %v686_v40, %v685_v25  ;;  %v386_v12 = vpop.f32.mrf.mxu2  ;;  %651 = vst.msk [vmem:[%s1924_s3 + $0x90] sm:$0xf] %vm614_vm3, %v601_v36  ;;  %v788_v2 = vmul.f32 %v1389_v7, %v1389_v7  ;;  %v1673_v25 = vsel %vm461_vm12, %v402_v56, %v510_v14  ;;  %v852_v30 = vsel %vm664_vm7, %v787_v9, 0.0 }
  0xe6   :  { %626 = vst.msk [vmem:[%s1924_s3 + $0x2c] sm:$0xf] %vm614_vm3, %v576_v50  ;;  %v840_v47 = vsel %vm664_vm7, %v781_v41, 0.0  ;;  %v354_v54 = vpop.f32.mrf.mxu1  ;;  %v387_v8 = vadd.f32 %v1227_v29, %v386_v12  ;;  %vm462_vm15 = vcmp.ge.f32.partialorder %v405_v33, 0.0  ;;  %v511_v12 = vmul.f32 0.2, %v405_v33 }
  0xe7   :  { %v689_v57 = vadd.f32 %v1441_v44, %v687_v46  ;;  %v841_v58 = vadd.f32 %v840_v47, %v839_v52  ;;  %638 = vst.msk [vmem:[%s1924_s3 + $0x5c] sm:$0xf] %vm614_vm3, %v588_v42  ;;  %v355_v60 = vadd.f32 %v1227_v29, %v354_v54  ;;  %v789_v52 = vmul.f32 %v1430_v39, %v1430_v39 }
  0xe8   :  { %vm455_vm14 = vcmp.ge.f32.partialorder %v387_v8, 0.0  ;;  %v790_v46 = vmul.f32 %v1474_v13, %v1474_v13  ;;  %v791_v9 = vmul.f32 %v1529_v37, %v1529_v37 }
  0xe9   :  { %v691_v44 = vadd.f32 %v1489_v22, %v689_v57  ;;  %v843_v59 = vadd.f32 %v1485_v21, %v841_v58  ;;  %vm442_vm13 = vcmp.ge.f32.partialorder %v355_v60, 0.0  ;;  %v491_v16 = vmul.f32 0.2, %v355_v60 }
  0xea   :  { %v504_v21 = vmul.f32 0.2, %v387_v8  ;;  %v407_v58 = vadd.f32 %v1227_v29, %v406_v6 }
  0xeb   :  { %v693_v18 = vadd.f32 %v1538_v3, %v691_v44  ;;  %v845_v22 = vadd.f32 %v1534_v63, %v843_v59  ;;  %v1665_v19 = vsel %vm442_vm13, %v355_v60, %v491_v16  ;;  %v608_v63 = vpack.c.bf16 %v1673_v25, %v1673_v25 }
  0xec   :  { %v589_v23 = vpack.c.bf16 %v1665_v19, %v1665_v19  ;;  %v1687_v40 = vsel %vm455_vm14, %v387_v8, %v504_v21  ;;  %v702_v8 = vsel %vm664_vm7, %v1430_v39, 0.0  ;;  %v856_v44 = vsel %vm664_vm7, %v789_v52, 0.0 }
  0xed   :  { %v695_v3 = vadd.f32 %v694_v45, %v693_v18  ;;  %v847_v26 = vadd.f32 %v846_v1, %v845_v22  ;;  %v389_v28 = vpop.f32.mrf.mxu2  ;;  %658 = vst.msk [vmem:[%s1924_s3 + $0xac] sm:$0xf] %vm614_vm3, %v608_v63  ;;  %v602_v7 = vpack.c.bf16 %v1687_v40, %v1687_v40  ;;  %v409_v1 = vpop.f32.mrf.mxu3  ;;  %v854_v45 = vsel %vm664_vm7, %v788_v2, 0.0 }
  0xee   :  { %639 = vst.msk [vmem:[%s1924_s3 + $0x60] sm:$0xf] %vm614_vm3, %v589_v23  ;;  %v356_v50 = vpop.f32.mrf.mxu1  ;;  %v390_v57 = vadd.f32 %v1227_v29, %v389_v28  ;;  %v704_v59 = vsel %vm664_vm7, %v1474_v13, 0.0  ;;  %v858_v39 = vsel %vm664_vm7, %v790_v46, 0.0  ;;  %v706_v18 = vsel %vm664_vm7, %v1529_v37, 0.0 }
  0xef   :  { %v697_v53 = vadd.f32 %v696_v62, %v695_v3  ;;  %v849_v41 = vadd.f32 %v848_v17, %v847_v26  ;;  %v357_v42 = vadd.f32 %v1227_v29, %v356_v50  ;;  %652 = vst.msk [vmem:[%s1924_s3 + $0x94] sm:$0xf] %vm614_vm3, %v602_v7  ;;  %v1708_v17 = vsel %vm462_vm15, %v405_v33, %v511_v12 }
  0xf0   :  { %v609_v36 = vpack.c.bf16 %v1708_v17, %v1708_v17  ;;  %vm456_vm1 = vcmp.ge.f32.partialorder %v390_v57, 0.0  ;;  %v792_v13 = vmul.f32 %v1578_v43, %v1578_v43  ;;  %v505_v22 = vmul.f32 0.2, %v390_v57 }
  0xf1   :  { %v851_v47 = vadd.f32 %v850_v32, %v849_v41  ;;  %v699_v54 = vadd.f32 %v698_v11, %v697_v53  ;;  %vm443_vm0 = vcmp.ge.f32.partialorder %v357_v42, 0.0  ;;  %v492_v56 = vmul.f32 0.2, %v357_v42 }
  0xf2   :  { %659 = vst.msk [vmem:[%s1924_s3 + $0xb0] sm:$0xf] %vm614_vm3, %v609_v36  ;;  %vm463_vm2 = vcmp.ge.f32.partialorder %v407_v58, 0.0  ;;  %v512_v23 = vmul.f32 0.2, %v407_v58  ;;  %v1733_v11 = vsel %vm456_vm1, %v390_v57, %v505_v22  ;;  %v410_v37 = vadd.f32 %v1227_v29, %v409_v1 }
  0xf3   :  { %v701_v60 = vadd.f32 %v700_v27, %v699_v54  ;;  %v853_v62 = vadd.f32 %v852_v30, %v851_v47  ;;  %v541_v24 = vsel %vm443_vm0, %v357_v42, %v492_v56  ;;  %v860_v63 = vsel %vm664_vm7, %v791_v9, 0.0 }
  0xf4   :  { %v590_v16 = vpack.c.bf16 %v541_v24, %v541_v24  ;;  %v603_v27 = vpack.c.bf16 %v1733_v11, %v1733_v11  ;;  %v708_v50 = vsel %vm664_vm7, %v1578_v43, 0.0  ;;  %v793_v53 = vmul.f32 %v1618_v51, %v1618_v51 }
  0xf5   :  { %v703_v14 = vadd.f32 %v702_v8, %v701_v60  ;;  %v855_v33 = vadd.f32 %v854_v45, %v853_v62  ;;  %v391_v6 = vpop.f32.mrf.mxu2  ;;  %v411_v26 = vpop.f32.mrf.mxu3  ;;  %v1743_v41 = vsel %vm463_vm2, %v407_v58, %v512_v23  ;;  %v862_v7 = vsel %vm664_vm7, %v792_v13, 0.0 }
  0xf6   :  { %640 = vst.msk [vmem:[%s1924_s3 + $0x64] sm:$0xf] %vm614_vm3, %v590_v16  ;;  %v392_v21 = vadd.f32 %v1227_v29, %v391_v6  ;;  %v610_v52 = vpack.c.bf16 %v1743_v41, %v1743_v41  ;;  %v710_v43 = vsel %vm664_vm7, %v1618_v51, 0.0  ;;  %v794_v46 = vmul.f32 %v1665_v19, %v1665_v19 }
  0xf7   :  { %v705_v32 = vadd.f32 %v704_v59, %v703_v14  ;;  %v857_v2 = vadd.f32 %v856_v44, %v855_v33  ;;  %653 = vst.msk [vmem:[%s1924_s3 + $0x98] sm:$0xf] %vm614_vm3, %v603_v27  ;;  %vm464_vm5 = vcmp.ge.f32.partialorder %v410_v37, 0.0  ;;  %v513_v56 = vmul.f32 0.2, %v410_v37 }
  0xf8   :  { %vm457_vm4 = vcmp.ge.f32.partialorder %v392_v21, 0.0  ;;  %v506_v3 = vmul.f32 0.2, %v392_v21  ;;  %660 = vst.msk [vmem:[%s1924_s3 + $0xb4] sm:$0xf] %vm614_vm3, %v610_v52  ;;  %v864_v8 = vsel %vm664_vm7, %v793_v53, 0.0  ;;  %v795_v57 = vmul.f32 %v541_v24, %v541_v24 }
  0xf9   :  { %v707_v28 = vadd.f32 %v706_v18, %v705_v32  ;;  %v859_v30 = vadd.f32 %v858_v39, %v857_v2  ;;  %v712_v51 = vsel %vm664_vm7, %v1665_v19, 0.0  ;;  %v412_v58 = vadd.f32 %v1227_v29, %v411_v26 }
  0xfa   :  { %v1745_v42 = vsel %vm457_vm4, %v392_v21, %v506_v3  ;;  %v796_v60 = vmul.f32 %v1250_v49, %v1250_v49  ;;  %v1774_v44 = vsel %vm464_vm5, %v410_v37, %v513_v56  ;;  %v866_v59 = vsel %vm664_vm7, %v794_v46, 0.0 }
  0xfb   :  { %v709_v1 = vadd.f32 %v708_v50, %v707_v28  ;;  %v861_v45 = vadd.f32 %v860_v63, %v859_v30  ;;  %v604_v12 = vpack.c.bf16 %v1745_v42, %v1745_v42  ;;  %v714_v39 = vsel %vm664_vm7, %v541_v24, 0.0 }
  0xfc   :  { %v611_v19 = vpack.c.bf16 %v1774_v44, %v1774_v44  ;;  %vm465_vm6 = vcmp.ge.f32.partialorder %v412_v58, 0.0  ;;  %v514_v33 = vmul.f32 0.2, %v412_v58  ;;  %v716_v6 = vsel %vm664_vm7, %v1250_v49, 0.0 }
  0xfd   :  { %v711_v47 = vadd.f32 %v710_v43, %v709_v1  ;;  %v863_v54 = vadd.f32 %v862_v7, %v861_v45  ;;  %654 = vst.msk [vmem:[%s1924_s3 + $0x9c] sm:$0xf] %vm614_vm3, %v604_v12  ;;  %v414_v16 = vpop.f32.mrf.mxu3  ;;  %v797_v18 = vmul.f32 %v1277_v0, %v1277_v0  ;;  %v868_v13 = vsel %vm664_vm7, %v795_v57, 0.0 }
  0xfe   :  { %661 = vst.msk [vmem:[%s1924_s3 + $0xb8] sm:$0xf] %vm614_vm3, %v611_v19  ;;  %v1789_v21 = vsel %vm465_vm6, %v412_v58, %v514_v33  ;;  %v870_v32 = vsel %vm664_vm7, %v796_v60, 0.0  ;;  %v718_v2 = vsel %vm664_vm7, %v1277_v0, 0.0  ;;  %v798_v49 = vmul.f32 %v1304_v15, %v1304_v15 }
  0xff   :  { %v865_v62 = vadd.f32 %v864_v8, %v863_v54  ;;  %v713_v36 = vadd.f32 %v712_v51, %v711_v47  ;;  %v612_v23 = vpack.c.bf16 %v1789_v21, %v1789_v21  ;;  %v872_v26 = vsel %vm664_vm7, %v797_v18, 0.0 }
 0x100   :  { %v720_v63 = vsel %vm664_vm7, %v1304_v15, 0.0  ;;  %v799_v28 = vmul.f32 %v1331_v31, %v1331_v31  ;;  %v415_v27 = vadd.f32 %v1227_v29, %v414_v16  ;;  %v874_v50 = vsel %vm664_vm7, %v798_v49, 0.0 }
 0x101   :  { %v867_v9 = vadd.f32 %v866_v59, %v865_v62  ;;  %v715_v14 = vadd.f32 %v714_v39, %v713_v36  ;;  %662 = vst.msk [vmem:[%s1924_s3 + $0xbc] sm:$0xf] %vm614_vm3, %v612_v23  ;;  %v722_v53 = vsel %vm664_vm7, %v1331_v31, 0.0  ;;  %v800_v15 = vmul.f32 %v1358_v48, %v1358_v48 }
 0x102   :  { %v515_v52 = vmul.f32 0.2, %v415_v27  ;;  %v876_v43 = vsel %vm664_vm7, %v799_v28, 0.0  ;;  %v724_v46 = vsel %vm664_vm7, %v1358_v48, 0.0  ;;  %v801_v29 = vmul.f32 %v1385_v5, %v1385_v5 }
 0x103   :  { %v717_v24 = vadd.f32 %v716_v6, %v715_v14  ;;  %v869_v22 = vadd.f32 %v868_v13, %v867_v9  ;;  %vm466_vm8 = vcmp.ge.f32.partialorder %v415_v27, 0.0  ;;  %v878_v31 = vsel %vm664_vm7, %v800_v15, 0.0 }
 0x104   :  { %v1818_v54 = vsel %vm466_vm8, %v415_v27, %v515_v52  ;;  %v726_v56 = vsel %vm664_vm7, %v1385_v5, 0.0  ;;  %v802_v8 = vmul.f32 %v1424_v35, %v1424_v35  ;;  %v880_v58 = vsel %vm664_vm7, %v801_v29, 0.0 }
 0x105   :  { %v719_v3 = vadd.f32 %v718_v2, %v717_v24  ;;  %v871_v37 = vadd.f32 %v870_v32, %v869_v22  ;;  %v416_v7 = vpop.f32.mrf.mxu3  ;;  %v613_v51 = vpack.c.bf16 %v1818_v54, %v1818_v54  ;;  %v728_v60 = vsel %vm664_vm7, %v1424_v35, 0.0 }
 0x106   :  { %v803_v62 = vmul.f32 %v1470_v10, %v1470_v10  ;;  %v882_v59 = vsel %vm664_vm7, %v802_v8, 0.0  ;;  %v730_v39 = vsel %vm664_vm7, %v1470_v10, 0.0  ;;  %v804_v19 = vmul.f32 %v1540_v4, %v1540_v4 }
 0x107   :  { %v721_v0 = vadd.f32 %v720_v63, %v719_v3  ;;  %v873_v30 = vadd.f32 %v872_v26, %v871_v37  ;;  %663 = vst.msk [vmem:[%s1924_s3 + $0xc0] sm:$0xf] %vm614_vm3, %v613_v51  ;;  %v732_v14 = vsel %vm664_vm7, %v1540_v4, 0.0  ;;  %v805_v33 = vmul.f32 %v1596_v61, %v1596_v61 }
 0x108   :  { %v884_v9 = vsel %vm664_vm7, %v803_v62, 0.0  ;;  %v886_v13 = vsel %vm664_vm7, %v804_v19, 0.0  ;;  %v734_v10 = vsel %vm664_vm7, %v1596_v61, 0.0  ;;  %v806_v24 = vmul.f32 %v1636_v55, %v1636_v55 }
 0x109   :  { %v723_v1 = vadd.f32 %v722_v53, %v721_v0  ;;  %v875_v45 = vadd.f32 %v874_v50, %v873_v30  ;;  %v888_v2 = vsel %vm664_vm7, %v805_v33, 0.0  ;;  %v736_v4 = vsel %vm664_vm7, %v1636_v55, 0.0 }
 0x10a   :  { %v807_v49 = vmul.f32 %v1687_v40, %v1687_v40  ;;  %v890_v37 = vsel %vm664_vm7, %v806_v24, 0.0  ;;  %v738_v61 = vsel %vm664_vm7, %v1687_v40, 0.0  ;;  %v808_v26 = vmul.f32 %v1733_v11, %v1733_v11 }
 0x10b   :  { %v725_v12 = vadd.f32 %v724_v46, %v723_v1  ;;  %v877_v47 = vadd.f32 %v876_v43, %v875_v45  ;;  %v740_v55 = vsel %vm664_vm7, %v1733_v11, 0.0  ;;  %v809_v30 = vmul.f32 %v1745_v42, %v1745_v42 }
 0x10c   :  { %v892_v0 = vsel %vm664_vm7, %v807_v49, 0.0  ;;  %v810_v53 = vmul.f32 %v1503_v34, %v1503_v34  ;;  %v894_v40 = vsel %vm664_vm7, %v808_v26, 0.0  ;;  %v742_v15 = vsel %vm664_vm7, %v1745_v42, 0.0 }
 0x10d   :  { %v879_v48 = vadd.f32 %v878_v31, %v877_v47  ;;  %v727_v57 = vadd.f32 %v726_v56, %v725_v12  ;;  %v744_v45 = vsel %vm664_vm7, %v1503_v34, 0.0  ;;  %v811_v11 = vmul.f32 %v1570_v38, %v1570_v38 }
 0x10e   :  { %v896_v52 = vsel %vm664_vm7, %v809_v30, 0.0  ;;  %v898_v29 = vsel %vm664_vm7, %v810_v53, 0.0  ;;  %v746_v12 = vsel %vm664_vm7, %v1570_v38, 0.0  ;;  %v812_v42 = vmul.f32 %v1609_v20, %v1609_v20 }
 0x10f   :  { %v729_v5 = vadd.f32 %v728_v60, %v727_v57  ;;  %v881_v36 = vadd.f32 %v880_v58, %v879_v48  ;;  %v900_v56 = vsel %vm664_vm7, %v811_v11, 0.0  ;;  %v748_v34 = vsel %vm664_vm7, %v1609_v20, 0.0 }
 0x110   :  { %v813_v8 = vmul.f32 %v1673_v25, %v1673_v25  ;;  %v902_v57 = vsel %vm664_vm7, %v812_v42, 0.0  ;;  %v750_v38 = vsel %vm664_vm7, %v1673_v25, 0.0  ;;  %v814_v58 = vmul.f32 %v1708_v17, %v1708_v17 }
 0x111   :  { %v731_v16 = vadd.f32 %v730_v39, %v729_v5  ;;  %v883_v35 = vadd.f32 %v882_v59, %v881_v36  ;;  %v752_v20 = vsel %vm664_vm7, %v1708_v17, 0.0  ;;  %v815_v36 = vmul.f32 %v1743_v41, %v1743_v41 }
 0x112   :  { %v904_v5 = vsel %vm664_vm7, %v813_v8, 0.0  ;;  %v906_v19 = vsel %vm664_vm7, %v814_v58, 0.0  ;;  %v754_v25 = vsel %vm664_vm7, %v1743_v41, 0.0  ;;  %v756_v17 = vsel %vm664_vm7, %v1774_v44, 0.0 }
 0x113   :  { %v733_v6 = vadd.f32 %v732_v14, %v731_v16  ;;  %v885_v18 = vadd.f32 %v884_v9, %v883_v35  ;;  %v816_v16 = vmul.f32 %v1774_v44, %v1774_v44  ;;  %v908_v14 = vsel %vm664_vm7, %v815_v36, 0.0 }
 0x114   :  { %v817_v33 = vmul.f32 %v1789_v21, %v1789_v21  ;;  %v758_v41 = vsel %vm664_vm7, %v1789_v21, 0.0  ;;  %v760_v44 = vsel %vm664_vm7, %v1818_v54, 0.0  ;;  %vm768_vm3 = vcmask 516096  }
 0x115   :  { %v735_v22 = vadd.f32 %v734_v10, %v733_v6  ;;  %v887_v32 = vadd.f32 %v886_v13, %v885_v18  ;;  %v910_v13 = vsel %vm664_vm7, %v816_v16, 0.0  ;;  %v818_v10 = vmul.f32 %v1818_v54, %v1818_v54 }
 0x117   :  { %v737_v23 = vadd.f32 %v736_v4, %v735_v22  ;;  %v889_v3 = vadd.f32 %v888_v2, %v887_v32  ;;  %v912_v32 = vsel %vm664_vm7, %v817_v33, 0.0  ;;  %v914_v49 = vsel %vm664_vm7, %v818_v10, 0.0 }
 0x119   :  { %v891_v63 = vadd.f32 %v890_v37, %v889_v3  ;;  %v739_v28 = vadd.f32 %v738_v61, %v737_v23 }
 0x11b   :  { %v893_v27 = vadd.f32 %v892_v0, %v891_v63  ;;  %v741_v50 = vadd.f32 %v740_v55, %v739_v28 }
 0x11d   :  { %v895_v7 = vadd.f32 %v894_v40, %v893_v27  ;;  %v743_v1 = vadd.f32 %v742_v15, %v741_v50 }
 0x11f   :  { %v745_v43 = vadd.f32 %v744_v45, %v743_v1  ;;  %v897_v46 = vadd.f32 %v896_v52, %v895_v7 }
 0x121   :  { %v747_v47 = vadd.f32 %v746_v12, %v745_v43  ;;  %v899_v31 = vadd.f32 %v898_v29, %v897_v46 }
 0x123   :  { %v749_v51 = vadd.f32 %v748_v34, %v747_v47  ;;  %v901_v48 = vadd.f32 %v900_v56, %v899_v31 }
 0x125   :  { %v903_v60 = vadd.f32 %v902_v57, %v901_v48  ;;  %v751_v62 = vadd.f32 %v750_v38, %v749_v51 }
 0x127   :  { %v753_v59 = vadd.f32 %v752_v20, %v751_v62  ;;  %v905_v39 = vadd.f32 %v904_v5, %v903_v60 }
 0x129   :  { %v755_v35 = vadd.f32 %v754_v25, %v753_v59  ;;  %v907_v9 = vadd.f32 %v906_v19, %v905_v39 }
 0x12b   :  { %v757_v6 = vadd.f32 %v756_v17, %v755_v35  ;;  %v909_v18 = vadd.f32 %v908_v14, %v907_v9 }
 0x12d   :  { %v911_v24 = vadd.f32 %v910_v13, %v909_v18  ;;  %v759_v22 = vadd.f32 %v758_v41, %v757_v6 }
 0x12f   :  { %v913_v2 = vadd.f32 %v912_v32, %v911_v24  ;;  %v761_v4 = vadd.f32 %v760_v44, %v759_v22 }
 0x131   :  { %v762_v23 = vrot.slane %v761_v4, 4  ;;  %v915_v3 = vadd.f32 %v914_v49, %v913_v2 }
 0x133   :  { %v763_v37 = vadd.f32 %v762_v23, %v761_v4  ;;  %v916_v61 = vrot.slane %v915_v3, 4 }
 0x135   :  { %v764_v26 = vrot.slane %v763_v37, 2  ;;  %v917_v21 = vadd.f32 %v916_v61, %v915_v3 }
 0x137   :  { %v765_v63 = vadd.f32 %v764_v26, %v763_v37  ;;  %v918_v28 = vrot.slane %v917_v21, 2 }
 0x139   :  { %v766_v0 = vrot.slane %v765_v63, 1  ;;  %v919_v55 = vadd.f32 %v918_v28, %v917_v21 }
 0x13b   :  { %v767_v30 = vadd.f32 %v766_v0, %v765_v63  ;;  %v920_v27 = vrot.slane %v919_v55, 1 }
 0x13d   :  { %769 = vst.msk [vmem:[%s1925_s4] sm:$0x1] %vm768_vm3, %v767_v30  ;;  %v921_v54 = vadd.f32 %v920_v27, %v919_v55 }
 0x13f   :  { %922 = vst.msk [vmem:[%s1925_s4 + $0x1] sm:$0x1] %vm768_vm3, %v921_v54 }

// kernel: discriminator_forward.4
= control target key start
LH: loop header
LB: loop body
LE: loop exit
PB: predicated region body
PF: predicated region fallthrough
CT: control target
= control target key end

     0   :  { %v5393_v2 = vmov 0.0   ;;  %vm743_vm0 = vcmask 1046528   ;;  %vm1240_vm1 = vcmask 1045504   ;;  %s6490_s3 = inlined_call_operand.vmem [shape: bf16[2304,128], index: 3, kind: input, shape index: {}]   ;;  %s6491_s0 = inlined_call_operand.vmem [shape: bf16[2,7,7,256], index: 0, kind: input, shape index: {}]   ;;  %s6492_s1 = inlined_call_operand.vmem [shape: f32[1,256], index: 1, kind: input, shape index: {}]   ;;  %s6493_s2 = inlined_call_operand.vmem [shape: f32[1,256], index: 2, kind: input, shape index: {}]   ;;  %s6494_s4 = inlined_call_operand.vmem [shape: f32[1,128], index: 4, kind: input, shape index: {}]   ;;  %s6495_s5 = inlined_call_operand.vmem [shape: bf16[112,128], index: 5, kind: output, shape index: {0}]   ;;  %s6496_s6 = inlined_call_operand.vmem [shape: f32[1,2,128], index: 6, kind: output, shape index: {1}]  }
   0x1   :  { %v5196_v0 = vld [vmem:[%s6490_s3 + $0x38] sm:$0xff]  ;;  %22 = vst [vmem:[#allocation2 + $0xc8] sm:$0xff] %v5393_v2  ;;  %v5195_v3 = vld [vmem:[%s6490_s3 + $0x30] sm:$0xff]  ;;  %v5449_v5 = vld [vmem:[%s6491_s0] sm:$0xff] }
   0x2   :  { %v5204_v1 = vld [vmem:[%s6490_s3 + $0x78] sm:$0xff]  ;;  %26 = vst [vmem:[#allocation2 + $0xe8] sm:$0xff] %v5393_v2  ;;  %515 = vmatpush.bf16.msra.mxu0 %v5196_v0  ;;  %5374 = vmatpush.bf16.msra.mxu2 %v5196_v0  ;;  %v5203_v4 = vld [vmem:[%s6490_s3 + $0x70] sm:$0xff]  ;;  %v5454_v6 = vld [vmem:[%s6492_s1] sm:$0x3]  ;;  %v108_v8 = vunpack.c.l.bf16 %v5449_v5  ;;  %v109_v38 = vunpack.c.h.bf16 %v5449_v5 }
   0x3   :  { %23 = vst [vmem:[#allocation2 + $0x8] sm:$0xff] %v5393_v2  ;;  %559 = vmatpush.bf16.msra.mxu1 %v5204_v1  ;;  %5382 = vmatpush.bf16.msra.mxu3 %v5204_v1  ;;  %v5194_v7 = vld [vmem:[%s6490_s3 + $0x28] sm:$0xff]  ;;  %v5462_v9 = vperm.slane %v5454_v6, 0  ;;  %v5467_v10 = vld [vmem:[%s6493_s2] sm:$0x3]  ;;  %v5192_v18 = vld [vmem:[%s6490_s3 + $0x18] sm:$0xff] }
   0x4   :  { %24 = vst [vmem:[#allocation2 + $0x40] sm:$0x3] %v5393_v2  ;;  %v5202_v11 = vld [vmem:[%s6490_s3 + $0x68] sm:$0xff]  ;;  %v5474_v12 = vperm.slane %v5467_v10, 0  ;;  %v5193_v14 = vld [vmem:[%s6490_s3 + $0x20] sm:$0xff]  ;;  %v5200_v19 = vld [vmem:[%s6490_s3 + $0x58] sm:$0xff] }
   0x5   :  { %25 = vst [vmem:[#allocation2 + $0x28] sm:$0x3] %v5393_v2  ;;  %v142_v13 = vmul.f32 %v5462_v9, %v108_v8  ;;  %v5201_v16 = vld [vmem:[%s6490_s3 + $0x60] sm:$0xff]  ;;  %v5191_v20 = vld [vmem:[%s6490_s3 + $0x10] sm:$0xff]  ;;  %v5190_v22 = vld [vmem:[%s6490_s3 + $0x8] sm:$0xff]  ;;  %v5586_v39 = vperm.slane %v5454_v6, 1 }
   0x6   :  { %27 = vst [vmem:[#allocation2 + $0xf0] sm:$0xff] %v5393_v2  ;;  %516 = vmatpush.bf16.msra.mxu0 %v5195_v3  ;;  %5375 = vmatpush.bf16.msra.mxu2 %v5195_v3  ;;  %v5199_v21 = vld [vmem:[%s6490_s3 + $0x50] sm:$0xff]  ;;  %v5198_v23 = vld [vmem:[%s6490_s3 + $0x48] sm:$0xff]  ;;  %v5189_v24 = vld [vmem:[%s6490_s3] sm:$0xff]  ;;  %v5611_v50 = vperm.slane %v5467_v10, 1 }
   0x7   :  { %28 = vst [vmem:[#allocation2 + $0x70] sm:$0x3] %v5393_v2  ;;  %560 = vmatpush.bf16.msra.mxu1 %v5203_v4  ;;  %5383 = vmatpush.bf16.msra.mxu3 %v5203_v4  ;;  %v176_v15 = vadd.f32 %v5474_v12, %v142_v13  ;;  %v5197_v26 = vld [vmem:[%s6490_s3 + $0x40] sm:$0xff]  ;;  %v101_v28 = vld [vmem:[%s6491_s0 + $0x38] sm:$0xff]  ;;  %v5227_v36 = vld [vmem:[%s6490_s3 + $0x130] sm:$0xff]  ;;  %v143_v49 = vmul.f32 %v5586_v39, %v109_v38 }
   0x8   :  { %29 = vst [vmem:[#allocation2 + $0x120] sm:$0x3] %v5393_v2  ;;  %v102_v29 = vld [vmem:[%s6491_s0 + $0x40] sm:$0xff]  ;;  %v5228_v30 = vld [vmem:[%s6490_s3 + $0x138] sm:$0xff]  ;;  %v122_v33 = vunpack.c.l.bf16 %v101_v28  ;;  %v5235_v37 = vld [vmem:[%s6490_s3 + $0x170] sm:$0xff]  ;;  %v123_v42 = vunpack.c.h.bf16 %v101_v28 }
   0x9   :  { %30 = vst [vmem:[#allocation2 + $0xd8] sm:$0xff] %v5393_v2  ;;  %v232_v17 = vrot.slane %v176_v15, 7  ;;  %v5236_v31 = vld [vmem:[%s6490_s3 + $0x178] sm:$0xff]  ;;  %v124_v35 = vunpack.c.l.bf16 %v102_v29  ;;  %v5211_v40 = vld [vmem:[%s6490_s3 + $0xb0] sm:$0xff]  ;;  %v95_v43 = vld [vmem:[%s6491_s0 + $0x8] sm:$0xff]  ;;  %v125_v45 = vunpack.c.h.bf16 %v102_v29  ;;  %v177_v61 = vadd.f32 %v5611_v50, %v143_v49 }
   0xa   :  { %31 = vst [vmem:[#allocation2 + $0x18] sm:$0xff] %v5393_v2  ;;  %517 = vmatpush.bf16.msra.mxu0 %v5194_v7  ;;  %5376 = vmatpush.bf16.msra.mxu2 %v5194_v7  ;;  %v5212_v32 = vld [vmem:[%s6490_s3 + $0xb8] sm:$0xff]  ;;  %v5219_v41 = vld [vmem:[%s6490_s3 + $0xf0] sm:$0xff]  ;;  %v156_v44 = vmul.f32 %v5462_v9, %v122_v33  ;;  %v103_v47 = vld [vmem:[%s6491_s0 + $0x48] sm:$0xff]  ;;  %v110_v51 = vunpack.c.l.bf16 %v95_v43  ;;  %v157_v53 = vmul.f32 %v5586_v39, %v123_v42  ;;  %v111_v60 = vunpack.c.h.bf16 %v95_v43 }
   0xb   :  { %32 = vst [vmem:[#allocation2 + $0xb0] sm:$0x3] %v5393_v2  ;;  %561 = vmatpush.bf16.msra.mxu1 %v5202_v11  ;;  %5384 = vmatpush.bf16.msra.mxu3 %v5202_v11  ;;  %v5220_v34 = vld [vmem:[%s6490_s3 + $0xf8] sm:$0xff]  ;;  %v96_v46 = vld [vmem:[%s6491_s0 + $0x10] sm:$0xff]  ;;  %v158_v48 = vmul.f32 %v5462_v9, %v124_v35  ;;  %v126_v55 = vunpack.c.l.bf16 %v103_v47  ;;  %v159_v57 = vmul.f32 %v5586_v39, %v125_v45  ;;  %v127_v6 = vunpack.c.h.bf16 %v103_v47  ;;  %v5640_v8 = vld [vmem:[%s6491_s0 + $0x20] sm:$0xff] }
   0xc   :  { %33 = vst [vmem:[#allocation2 + $0x158] sm:$0x3] %v5393_v2  ;;  %v104_v52 = vld [vmem:[%s6491_s0 + $0x50] sm:$0xff]  ;;  %v112_v54 = vunpack.c.l.bf16 %v96_v46  ;;  %v190_v56 = vadd.f32 %v5474_v12, %v156_v44  ;;  %v144_v62 = vmul.f32 %v5462_v9, %v110_v51  ;;  %v113_v63 = vunpack.c.h.bf16 %v96_v46  ;;  %v5635_v7 = vld [vmem:[%s6491_s0 + $0x18] sm:$0xff]  ;;  %v5217_v42 = vld [vmem:[%s6490_s3 + $0xe0] sm:$0xff] }
   0xd   :  { %34 = vst [vmem:[#allocation2 + $0x108] sm:$0xff] %v5393_v2  ;;  %v192_v58 = vadd.f32 %v5474_v12, %v158_v48  ;;  %v128_v59 = vunpack.c.l.bf16 %v104_v52  ;;  %v191_v0 = vadd.f32 %v5611_v50, %v157_v53  ;;  %v160_v3 = vmul.f32 %v5462_v9, %v126_v55  ;;  %v5648_v15 = vld [vmem:[%s6491_s0 + $0x58] sm:$0xff] }
   0xe   :  { %35 = vst [vmem:[#allocation2 + $0x110] sm:$0xff] %v5393_v2  ;;  %518 = vmatpush.bf16.msra.mxu0 %v5193_v14  ;;  %5377 = vmatpush.bf16.msra.mxu2 %v5193_v14  ;;  %v146_v1 = vmul.f32 %v5462_v9, %v112_v54  ;;  %v246_v4 = vrot.slane %v190_v56, 7  ;;  %v193_v5 = vadd.f32 %v5611_v50, %v159_v57  ;;  %v129_v14 = vunpack.c.h.bf16 %v104_v52 }
   0xf   :  { %289 = vst [vmem:[#allocation2 + $0xe8] sm:$0xfe] %v232_v17  ;;  %562 = vmatpush.bf16.msra.mxu1 %v5201_v16  ;;  %5385 = vmatpush.bf16.msra.mxu3 %v5201_v16  ;;  %v248_v10 = vrot.slane %v192_v58, 7  ;;  %v162_v11 = vmul.f32 %v5462_v9, %v128_v59  ;;  %v145_v13 = vmul.f32 %v5586_v39, %v111_v60  ;;  %v5653_v16 = vld [vmem:[%s6491_s0 + $0x60] sm:$0xff]  ;;  %v233_v17 = vrot.slane %v177_v61, 7 }
  0x10   :  { %36 = vst [vmem:[#allocation2 + $0x1f8] sm:$0x3] %v5393_v2  ;;  %v249_v28 = vrot.slane %v193_v5, 7  ;;  %v161_v29 = vmul.f32 %v5586_v39, %v127_v6  ;;  %v163_v35 = vmul.f32 %v5586_v39, %v129_v14  ;;  %v115_v44 = vunpack.c.h.bf16 %v5635_v7 }
  0x11   :  { %37 = vst [vmem:[#allocation2 + $0xb8] sm:$0x3] %v5393_v2  ;;  %v196_v33 = vadd.f32 %v5474_v12, %v162_v11  ;;  %v117_v48 = vunpack.c.h.bf16 %v5640_v8  ;;  %v131_v53 = vunpack.c.h.bf16 %v5648_v15  ;;  %v133_v56 = vunpack.c.h.bf16 %v5653_v16 }
  0x12   :  { %38 = vst [vmem:[#allocation2 + $0x180] sm:$0xff] %v5393_v2  ;;  %519 = vmatpush.bf16.msra.mxu0 %v5192_v18  ;;  %5378 = vmatpush.bf16.msra.mxu2 %v5192_v18  ;;  %v178_v18 = vadd.f32 %v5474_v12, %v144_v62  ;;  %v195_v49 = vadd.f32 %v5611_v50, %v161_v29  ;;  %v5208_v29 = vld [vmem:[%s6490_s3 + $0x98] sm:$0xff] }
  0x13   :  { %39 = vst [vmem:[#allocation2 + $0x190] sm:$0xff] %v5393_v2  ;;  %563 = vmatpush.bf16.msra.mxu1 %v5200_v19  ;;  %5386 = vmatpush.bf16.msra.mxu3 %v5200_v19  ;;  %v147_v19 = vmul.f32 %v5586_v39, %v113_v63  ;;  %v252_v54 = vrot.slane %v196_v33, 7  ;;  %v197_v55 = vadd.f32 %v5611_v50, %v163_v35  ;;  %v5224_v33 = vld [vmem:[%s6490_s3 + $0x118] sm:$0xff] }
  0x14   :  { %40 = vst [vmem:[#allocation2 + $0x140] sm:$0x3] %v5393_v2  ;;  %v234_v38 = vrot.slane %v178_v18, 7  ;;  %v149_v59 = vmul.f32 %v5586_v39, %v115_v44  ;;  %v151_v62 = vmul.f32 %v5586_v39, %v117_v48  ;;  %v5214_v48 = vld [vmem:[%s6490_s3 + $0xc8] sm:$0xff] }
  0x15   :  { %41 = vst [vmem:[#allocation2 + $0x1c0] sm:$0x3] %v5393_v2  ;;  %v253_v6 = vrot.slane %v197_v55, 7 }
  0x16   :  { %42 = vst [vmem:[#allocation2 + $0xd0] sm:$0xff] %v5393_v2  ;;  %520 = vmatpush.bf16.msra.mxu0 %v5191_v20  ;;  %5379 = vmatpush.bf16.msra.mxu2 %v5191_v20  ;;  %v333_v25 = vld [vmem:[#allocation2 + $0xe8] sm:$0xff]  ;;  %v114_v20 = vunpack.c.l.bf16 %v5635_v7  ;;  %v167_v7 = vmul.f32 %v5586_v39, %v133_v56 }
  0x17   :  { %43 = vst [vmem:[#allocation2 + $0x138] sm:$0xff] %v5393_v2  ;;  %564 = vmatpush.bf16.msra.mxu1 %v5199_v21  ;;  %5387 = vmatpush.bf16.msra.mxu3 %v5199_v21  ;;  %v359_v27 = vpack.c.bf16 %v333_v25, %v5393_v2  ;;  %v247_v21 = vrot.slane %v191_v0, 7  ;;  %v5234_v25 = vld [vmem:[%s6490_s3 + $0x168] sm:$0xff]  ;;  %v251_v0 = vrot.slane %v195_v49, 7 }
  0x18   :  { %44 = vst [vmem:[#allocation2 + $0x60] sm:$0x3] %v5393_v2  ;;  %v148_v43 = vmul.f32 %v5462_v9, %v114_v20 }
  0x19   :  { %45 = vst [vmem:[#allocation2 + $0x1b8] sm:$0x3] %v5393_v2 }
  0x1a   :  { %46 = vst [vmem:[#allocation2 + $0x88] sm:$0xff] %v5393_v2  ;;  %521 = vmatpush.bf16.msra.mxu0 %v5190_v22  ;;  %5380 = vmatpush.bf16.msra.mxu2 %v5190_v22  ;;  %v180_v22 = vadd.f32 %v5474_v12, %v146_v1  ;;  %v182_v58 = vadd.f32 %v5474_v12, %v148_v43 }
  0x1b   :  { %47 = vst [vmem:[#allocation2] sm:$0xff] %v5393_v2  ;;  %565 = vmatpush.bf16.msra.mxu1 %v5198_v23  ;;  %5388 = vmatpush.bf16.msra.mxu3 %v5198_v23  ;;  %v194_v23 = vadd.f32 %v5474_v12, %v160_v3 }
  0x1c   :  { %48 = vst [vmem:[#allocation2 + $0x188] sm:$0x3] %v5393_v2  ;;  %v236_v45 = vrot.slane %v180_v22, 7  ;;  %v238_v11 = vrot.slane %v182_v58, 7  ;;  %v99_v22 = vld [vmem:[%s6491_s0 + $0x28] sm:$0xff]  ;;  %v5213_v58 = vld [vmem:[%s6490_s3 + $0xc0] sm:$0xff] }
  0x1d   :  { %49 = vst [vmem:[#allocation2 + $0x38] sm:$0x3] %v5393_v2  ;;  %v250_v46 = vrot.slane %v194_v23, 7 }
  0x1e   :  { %50 = vst [vmem:[#allocation2 + $0x1a8] sm:$0xff] %v5393_v2  ;;  %522 = vmatpush.bf16.msra.mxu0 %v5189_v24  ;;  %5381 = vmatpush.bf16.msra.mxu2 %v5189_v24  ;;  %v5226_v24 = vld [vmem:[%s6490_s3 + $0x128] sm:$0xff] }
  0x1f   :  { %51 = vst [vmem:[#allocation2 + $0x220] sm:$0xff] %v5393_v2  ;;  %566 = vmatpush.bf16.msra.mxu1 %v5197_v26  ;;  %5389 = vmatpush.bf16.msra.mxu3 %v5197_v26  ;;  %v5210_v26 = vld [vmem:[%s6490_s3 + $0xa8] sm:$0xff] }
  0x20   :  { %52 = vst [vmem:[#allocation2 + $0x1e8] sm:$0x3] %v5393_v2 }
  0x21   :  { %53 = vst [vmem:[#allocation2 + $0x1c8] sm:$0x3] %v5393_v2  ;;  %523 = vmatmul.bf16.vlgmr.msra.gmra.mxu0 %v359_v27  ;;  %v116_v27 = vunpack.c.l.bf16 %v5640_v8 }
  0x22   :  { %54 = vst [vmem:[#allocation2 + $0x80] sm:$0xff] %v5393_v2  ;;  %1509 = vmatpush.bf16.msrb.mxu0 %v5228_v30  ;;  %1012 = vmatpush.bf16.msrb.mxu2 %v5212_v32  ;;  %v5218_v30 = vld [vmem:[%s6490_s3 + $0xe8] sm:$0xff]  ;;  %v132_v32 = vunpack.c.l.bf16 %v5653_v16 }
  0x23   :  { %55 = vst [vmem:[#allocation2 + $0xf8] sm:$0xff] %v5393_v2  ;;  %1553 = vmatpush.bf16.msrb.mxu1 %v5236_v31  ;;  %1056 = vmatpush.bf16.msrb.mxu3 %v5220_v34  ;;  %v130_v31 = vunpack.c.l.bf16 %v5648_v15  ;;  %v179_v34 = vadd.f32 %v5611_v50, %v145_v13  ;;  %v150_v47 = vmul.f32 %v5462_v9, %v116_v27 }
  0x24   :  { %56 = vst [vmem:[#allocation2 + $0x78] sm:$0x3] %v5393_v2  ;;  %v166_v52 = vmul.f32 %v5462_v9, %v132_v32  ;;  %v183_v13 = vadd.f32 %v5611_v50, %v149_v59 }
  0x25   :  { %57 = vst [vmem:[#allocation2 + $0x170] sm:$0x3] %v5393_v2  ;;  %v164_v51 = vmul.f32 %v5462_v9, %v130_v31  ;;  %v235_v57 = vrot.slane %v179_v34, 7  ;;  %v184_v61 = vadd.f32 %v5474_v12, %v150_v47  ;;  %v5232_v34 = vld [vmem:[%s6490_s3 + $0x158] sm:$0xff]  ;;  %v5206_v47 = vld [vmem:[%s6490_s3 + $0x88] sm:$0xff] }
  0x26   :  { %58 = vst [vmem:[#allocation2 + $0x198] sm:$0xff] %v5393_v2  ;;  %1510 = vmatpush.bf16.msrb.mxu0 %v5227_v36  ;;  %1013 = vmatpush.bf16.msrb.mxu2 %v5211_v40  ;;  %v5225_v36 = vld [vmem:[%s6490_s3 + $0x120] sm:$0xff]  ;;  %v181_v40 = vadd.f32 %v5611_v50, %v147_v19  ;;  %v200_v3 = vadd.f32 %v5474_v12, %v166_v52 }
  0x27   :  { %59 = vst [vmem:[#allocation2 + $0xe0] sm:$0xff] %v5393_v2  ;;  %1554 = vmatpush.bf16.msrb.mxu1 %v5235_v37  ;;  %1057 = vmatpush.bf16.msrb.mxu3 %v5219_v41  ;;  %v5233_v37 = vld [vmem:[%s6490_s3 + $0x160] sm:$0xff]  ;;  %v198_v1 = vadd.f32 %v5474_v12, %v164_v51  ;;  %v240_v16 = vrot.slane %v184_v61, 7 }
  0x28   :  { %60 = vst [vmem:[#allocation2 + $0x1e0] sm:$0x3] %v5393_v2  ;;  %v5209_v41 = vld [vmem:[%s6490_s3 + $0xa0] sm:$0xff]  ;;  %v237_v60 = vrot.slane %v181_v40, 7  ;;  %v256_v20 = vrot.slane %v200_v3, 7  ;;  %v5215_v40 = vld [vmem:[%s6490_s3 + $0xd0] sm:$0xff] }
  0x29   :  { %61 = vst [vmem:[#allocation2 + $0x1f0] sm:$0x3] %v5393_v2  ;;  %v254_v19 = vrot.slane %v198_v1, 7  ;;  %v5222_v1 = vld [vmem:[%s6490_s3 + $0x108] sm:$0xff] }
  0x2a   :  { %62 = vst [vmem:[#allocation2 + $0x48] sm:$0xff] %v5393_v2  ;;  %1511 = vmatpush.bf16.msrb.mxu0 %v5226_v24  ;;  %1014 = vmatpush.bf16.msrb.mxu2 %v5210_v26  ;;  %v119_v26 = vunpack.c.h.bf16 %v99_v22  ;;  %v5230_v3 = vld [vmem:[%s6490_s3 + $0x148] sm:$0xff] }
  0x2b   :  { %63 = vst [vmem:[#allocation2 + $0x98] sm:$0xff] %v5393_v2  ;;  %1555 = vmatpush.bf16.msrb.mxu1 %v5234_v25  ;;  %1058 = vmatpush.bf16.msrb.mxu3 %v5218_v30  ;;  %v118_v25 = vunpack.c.l.bf16 %v99_v22  ;;  %v5216_v30 = vld [vmem:[%s6490_s3 + $0xd8] sm:$0xff] }
  0x2c   :  { %64 = vst [vmem:[#allocation2 + $0x238] sm:$0x3] %v5393_v2 }
  0x2d   :  { %65 = vst [vmem:[#allocation2 + $0x160] sm:$0x3] %v5393_v2  ;;  %v152_v35 = vmul.f32 %v5462_v9, %v118_v25 }
  0x2e   :  { %66 = vst [vmem:[#allocation2 + $0x50] sm:$0xff] %v5393_v2  ;;  %1512 = vmatpush.bf16.msrb.mxu0 %v5225_v36  ;;  %1015 = vmatpush.bf16.msrb.mxu2 %v5209_v41  ;;  %v153_v36 = vmul.f32 %v5586_v39, %v119_v26  ;;  %v5260_v26 = vld [vmem:[%s6490_s3 + $0x238] sm:$0xff] }
  0x2f   :  { %67 = vst [vmem:[#allocation2 + $0x100] sm:$0xff] %v5393_v2  ;;  %1556 = vmatpush.bf16.msrb.mxu1 %v5233_v37  ;;  %1059 = vmatpush.bf16.msrb.mxu3 %v5217_v42  ;;  %v5231_v42 = vld [vmem:[%s6490_s3 + $0x150] sm:$0xff]  ;;  %v186_v43 = vadd.f32 %v5474_v12, %v152_v35  ;;  %v638_v35 = vld [vmem:[#allocation2 + $0x120] sm:$0x1] }
  0x30   :  { %68 = vst [vmem:[#allocation2 + $0x30] sm:$0x3] %v5393_v2  ;;  %v187_v44 = vadd.f32 %v5611_v50, %v153_v36  ;;  %v5267_v36 = vld [vmem:[%s6490_s3 + $0x270] sm:$0xff] }
  0x31   :  { %69 = vst [vmem:[#allocation2 + $0x1b0] sm:$0x3] %v5393_v2 }
  0x32   :  { %70 = vst [vmem:[#allocation2 + $0x90] sm:$0xff] %v5393_v2  ;;  %1016 = vmatpush.bf16.msrb.mxu2 %v5208_v29  ;;  %1513 = vmatpush.bf16.msrb.mxu0 %v5224_v33  ;;  %v243_v49 = vrot.slane %v187_v44, 7 }
  0x33   :  { %71 = vst [vmem:[#allocation2 + $0x130] sm:$0xff] %v5393_v2  ;;  %1060 = vmatpush.bf16.msrb.mxu3 %v5216_v30  ;;  %1557 = vmatpush.bf16.msrb.mxu1 %v5232_v34  ;;  %v632_v30 = vld [vmem:[#allocation2 + $0x8] sm:$0xfe] }
  0x34   :  { %72 = vst [vmem:[#allocation2 + $0x68] sm:$0x3] %v5393_v2 }
  0x35   :  { %73 = vst [vmem:[#allocation2 + $0x230] sm:$0x3] %v5393_v2 }
  0x36   :  { %74 = vst [vmem:[#allocation2 + $0x1d8] sm:$0xff] %v5393_v2 }
  0x37   :  { %75 = vst [vmem:[#allocation2 + $0x228] sm:$0xff] %v5393_v2  ;;  %1061 = vmatpush.bf16.msrb.mxu3 %v5215_v40  ;;  %1558 = vmatpush.bf16.msrb.mxu1 %v5231_v42  ;;  %v1130_v40 = vld [vmem:[#allocation2 + $0x40] sm:$0x3]  ;;  %v1134_v42 = vld [vmem:[#allocation2 + $0x70] sm:$0x3] }
  0x38   :  { %76 = vst [vmem:[#allocation2 + $0x218] sm:$0x3] %v5393_v2 }
  0x39   :  { %77 = vst [vmem:[#allocation2 + $0x200] sm:$0x3] %v5393_v2 }
  0x3a   :  { %78 = vst [vmem:[#allocation2 + $0x10] sm:$0xff] %v5393_v2 }
  0x3b   :  { %79 = vst [vmem:[#allocation2 + $0x128] sm:$0xff] %v5393_v2  ;;  %1062 = vmatpush.bf16.msrb.mxu3 %v5214_v48  ;;  %1559 = vmatpush.bf16.msrb.mxu1 %v5230_v3 }
  0x3c   :  { %80 = vst [vmem:[#allocation2 + $0x178] sm:$0x3] %v5393_v2 }
  0x3d   :  { %81 = vst [vmem:[#allocation2 + $0x208] sm:$0x3] %v5393_v2 }
  0x3e   :  { %82 = vst [vmem:[#allocation2 + $0x210] sm:$0xff] %v5393_v2 }
  0x3f   :  { %83 = vst [vmem:[#allocation2 + $0x1d0] sm:$0xff] %v5393_v2  ;;  %1063 = vmatpush.bf16.msrb.mxu3 %v5213_v58 }
  0x40   :  { %84 = vst [vmem:[#allocation2 + $0x168] sm:$0x3] %v5393_v2 }
  0x41   :  { %85 = vst [vmem:[#allocation2 + $0xc0] sm:$0x3] %v5393_v2 }
  0x42   :  { %86 = vst [vmem:[#allocation2 + $0x1a0] sm:$0xff] %v5393_v2 }
  0x43   :  { %87 = vst [vmem:[#allocation2 + $0x58] sm:$0xff] %v5393_v2 }
  0x44   :  { %88 = vst [vmem:[#allocation2 + $0x118] sm:$0x3] %v5393_v2 }
  0x45   :  { %89 = vst [vmem:[#allocation2 + $0x20] sm:$0x3] %v5393_v2 }
  0x46   :  { %90 = vst [vmem:[#allocation2 + $0x148] sm:$0xff] %v5393_v2 }
  0x47   :  { %91 = vst [vmem:[#allocation2 + $0xa8] sm:$0xff] %v5393_v2 }
  0x48   :  { %92 = vst [vmem:[#allocation2 + $0x150] sm:$0x3] %v5393_v2 }
  0x49   :  { %93 = vst [vmem:[#allocation2 + $0xa0] sm:$0x3] %v5393_v2 }
  0x4a   :  { %303 = vst [vmem:[#allocation2 + $0x48] sm:$0xfe] %v246_v4  ;;  %v165_v4 = vmul.f32 %v5586_v39, %v131_v53 }
  0x4b   :  { %305 = vst [vmem:[#allocation2 + $0x50] sm:$0xfe] %v248_v10 }
  0x4c   :  { %290 = vst [vmem:[#allocation2 + $0xf0] sm:$0xfe] %v233_v17  ;;  %v185_v17 = vadd.f32 %v5611_v50, %v151_v62 }
  0x4d   :  { %304 = vst [vmem:[#allocation2 + $0x98] sm:$0xfe] %v247_v21  ;;  %v199_v21 = vadd.f32 %v5611_v50, %v165_v4  ;;  %v5244_v4 = vld [vmem:[%s6490_s3 + $0x1b8] sm:$0xff] }
  0x4e   :  { %306 = vst [vmem:[#allocation2 + $0x100] sm:$0xfe] %v249_v28  ;;  %v239_v28 = vrot.slane %v183_v13, 7  ;;  %v241_v32 = vrot.slane %v185_v17, 7 }
  0x4f   :  { %291 = vst [vmem:[#allocation2 + $0xd8] sm:$0xfe] %v234_v38  ;;  %v255_v37 = vrot.slane %v199_v21, 7  ;;  %v5207_v38 = vld [vmem:[%s6490_s3 + $0x90] sm:$0xff]  ;;  %v633_v21 = vld [vmem:[#allocation2 + $0x40] sm:$0x1] }
  0x50   :  { %293 = vst [vmem:[#allocation2 + $0x108] sm:$0xfe] %v236_v45  ;;  %v5223_v45 = vld [vmem:[%s6490_s3 + $0x110] sm:$0xff]  ;;  %1017 = vmatpush.bf16.msrb.mxu2 %v5207_v38  ;;  %v745_v25 = vrot.slane %v633_v21, 1  ;;  %v646_v21 = vld [vmem:[#allocation2 + $0xb8] sm:$0x1] }
  0x51   :  { %v347_v63 = vld [vmem:[#allocation2 + $0x48] sm:$0xff]  ;;  %307 = vst [vmem:[#allocation2 + $0x90] sm:$0xfe] %v250_v46  ;;  %v242_v46 = vrot.slane %v186_v43, 7  ;;  %1514 = vmatpush.bf16.msrb.mxu0 %v5223_v45  ;;  %v5259_v38 = vld [vmem:[%s6490_s3 + $0x230] sm:$0xff]  ;;  %v747_v43 = vrot.slane %v632_v30, 1 }
  0x52   :  { %v349_v5 = vld [vmem:[#allocation2 + $0x50] sm:$0xff]  ;;  %309 = vst [vmem:[#allocation2 + $0x1d8] sm:$0xfe] %v252_v54 }
  0x53   :  { %v367_v8 = vpack.c.bf16 %v349_v5, %v347_v63  ;;  %v334_v10 = vld [vmem:[#allocation2 + $0xf0] sm:$0xff]  ;;  %292 = vst [vmem:[#allocation2 + $0x18] sm:$0xfe] %v235_v57  ;;  %v5252_v5 = vld [vmem:[%s6490_s3 + $0x1f8] sm:$0xff] }
  0x54   :  { %v360_v14 = vpack.c.bf16 %v334_v10, %v5393_v2  ;;  %v348_v15 = vld [vmem:[#allocation2 + $0x98] sm:$0xff]  ;;  %294 = vst [vmem:[#allocation2 + $0x110] sm:$0xfe] %v237_v60  ;;  %v201_v2 = vadd.f32 %v5611_v50, %v167_v7  ;;  %1018 = vmatpush.bf16.msrb.mxu2 %v5206_v47  ;;  %v5205_v60 = vld [vmem:[%s6490_s3 + $0x80] sm:$0xff]  ;;  %v636_v34 = vld [vmem:[#allocation2 + $0xf0] sm:$0xfe] }
  0x55   :  { %543 = vmatmul.bf16.vlgmr.msra.gmra.mxu2 %v367_v8  ;;  %v350_v18 = vld [vmem:[#allocation2 + $0x100] sm:$0xff]  ;;  %308 = vst [vmem:[#allocation2 + $0x130] sm:$0xfe] %v251_v0  ;;  %1515 = vmatpush.bf16.msrb.mxu0 %v5222_v1  ;;  %v753_v45 = vrot.slane %v636_v34, 1  ;;  %v645_v1 = vld [vmem:[#allocation2 + $0x1f8] sm:$0x1] }
  0x56   :  { %567 = vmatmul.bf16.vlgmr.msra.gmra.mxu1 %v360_v14  ;;  %v368_v23 = vpack.c.bf16 %v350_v18, %v348_v15  ;;  %v335_v24 = vld [vmem:[#allocation2 + $0xd8] sm:$0xff]  ;;  %310 = vst [vmem:[#allocation2 + $0x228] sm:$0xfe] %v253_v6  ;;  %v257_v41 = vrot.slane %v201_v2, 7  ;;  %v5229_v6 = vld [vmem:[%s6490_s3 + $0x140] sm:$0xff] }
  0x57   :  { %v337_v27 = vld [vmem:[#allocation2 + $0x108] sm:$0xff]  ;;  %295 = vst [vmem:[#allocation2 + $0x180] sm:$0xfe] %v238_v11  ;;  %v5221_v7 = vld [vmem:[%s6490_s3 + $0x100] sm:$0xff]  ;;  %1560 = vmatpush.bf16.msrb.mxu1 %v5229_v6  ;;  %v1133_v6 = vld [vmem:[#allocation2 + $0xf0] sm:$0xfc] }
  0x58   :  { %587 = vmatmul.bf16.vlgmr.msra.gmra.mxu3 %v368_v23  ;;  %v361_v31 = vpack.c.bf16 %v337_v27, %v335_v24  ;;  %297 = vst [vmem:[#allocation2 + $0xd0] sm:$0xfe] %v240_v16  ;;  %v351_v51 = vld [vmem:[#allocation2 + $0x90] sm:$0xff]  ;;  %1019 = vmatpush.bf16.msrb.mxu2 %v5205_v60  ;;  %v635_v23 = vld [vmem:[#allocation2 + $0xe8] sm:$0xfe]  ;;  %v5268_v27 = vld [vmem:[%s6490_s3 + $0x278] sm:$0xff] }
  0x59   :  { %311 = vst [vmem:[#allocation2 + $0x10] sm:$0xfe] %v254_v19  ;;  %v353_v52 = vld [vmem:[#allocation2 + $0x1d8] sm:$0xff]  ;;  %1853 = vmatpush.bf16.msra.mxu3 %v5252_v5  ;;  %1516 = vmatpush.bf16.msrb.mxu0 %v5221_v7  ;;  %v637_v24 = vld [vmem:[#allocation2 + $0x70] sm:$0x1]  ;;  %v750_v29 = vrot.slane %v635_v23, 1 }
  0x5a   :  { %528 = vmatmul.bf16.gmra.mxu0 %v361_v31  ;;  %313 = vst [vmem:[#allocation2 + $0x210] sm:$0xfe] %v256_v20  ;;  %v336_v53 = vld [vmem:[#allocation2 + $0x18] sm:$0xff]  ;;  %v369_v55 = vpack.c.bf16 %v353_v52, %v351_v51  ;;  %v631_v20 = vld [vmem:[#allocation2 + $0xc8] sm:$0xfe]  ;;  %v751_v33 = vrot.slane %v637_v24, 1 }
  0x5b   :  { %296 = vst [vmem:[#allocation2 + $0x190] sm:$0xfe] %v239_v28  ;;  %v338_v54 = vld [vmem:[#allocation2 + $0x110] sm:$0xff]  ;;  %v744_v2 = vrot.slane %v631_v20, 1  ;;  %v634_v31 = vld [vmem:[#allocation2 + $0x28] sm:$0x1]  ;;  %2349 = vmatpush.bf16.msra.mxu1 %v5268_v27 }
  0x5c   :  { %298 = vst [vmem:[#allocation2 + $0x138] sm:$0xfe] %v241_v32  ;;  %v352_v56 = vld [vmem:[#allocation2 + $0x130] sm:$0xff]  ;;  %v362_v59 = vpack.c.bf16 %v338_v54, %v336_v53  ;;  %1809 = vmatpush.bf16.msra.mxu2 %v5244_v4  ;;  %v748_v44 = vrot.slane %v634_v31, 1  ;;  %v752_v48 = vsel %vm743_vm0, %v750_v29, %v751_v33  ;;  %v1242_v52 = vrot.slane %v1130_v40, 2  ;;  %v5266_v20 = vld [vmem:[%s6490_s3 + $0x268] sm:$0xff] }
  0x5d   :  { %312 = vst [vmem:[#allocation2 + $0x128] sm:$0xfe] %v255_v37  ;;  %v354_v57 = vld [vmem:[#allocation2 + $0x228] sm:$0xff]  ;;  %v5243_v28 = vld [vmem:[%s6490_s3 + $0x1b0] sm:$0xff]  ;;  %2305 = vmatpush.bf16.msra.mxu0 %v5260_v26  ;;  %v746_v47 = vsel %vm743_vm0, %v744_v2, %v745_v25  ;;  %v1248_v54 = vrot.slane %v1134_v42, 2  ;;  %v1250_v24 = vrot.slane %v1133_v6, 2 }
  0x5e   :  { %314 = vst [vmem:[#allocation2 + $0x1d0] sm:$0xfe] %v257_v41  ;;  %v339_v61 = vld [vmem:[#allocation2 + $0x180] sm:$0xff]  ;;  %v370_v63 = vpack.c.bf16 %v354_v57, %v352_v56  ;;  %v5251_v32 = vld [vmem:[%s6490_s3 + $0x1f0] sm:$0xff]  ;;  %v1128_v37 = vld [vmem:[#allocation2 + $0xc8] sm:$0xfc]  ;;  %v749_v56 = vsel %vm743_vm0, %v747_v43, %v748_v44 }
  0x5f   :  { %299 = vst [vmem:[#allocation2 + $0x88] sm:$0xfe] %v242_v46  ;;  %v341_v62 = vld [vmem:[#allocation2 + $0xd0] sm:$0xff]  ;;  %v1132_v41 = vld [vmem:[#allocation2 + $0xe8] sm:$0xfc]  ;;  %1854 = vmatpush.bf16.msra.mxu3 %v5251_v32  ;;  %v754_v46 = vrot.slane %v638_v35, 1  ;;  %2350 = vmatpush.bf16.msra.mxu1 %v5267_v36 }
  0x60   :  { %300 = vst [vmem:[#allocation2] sm:$0xfe] %v243_v49  ;;  %v363_v0 = vpack.c.bf16 %v341_v62, %v339_v61  ;;  %v355_v8 = vld [vmem:[#allocation2 + $0x10] sm:$0xff]  ;;  %1810 = vmatpush.bf16.msra.mxu2 %v5243_v28  ;;  %v1241_v51 = vrot.slane %v1128_v37, 2  ;;  %v1247_v53 = vrot.slane %v1132_v41, 2  ;;  %v766_v32 = vrot.slane %v646_v21, 1 }
  0x61   :  { %v357_v10 = vld [vmem:[#allocation2 + $0x210] sm:$0xff]  ;;  %2306 = vmatpush.bf16.msra.mxu0 %v5259_v38  ;;  %v755_v57 = vsel %vm743_vm0, %v753_v45, %v754_v46  ;;  %v639_v62 = vld [vmem:[#allocation2 + $0xd8] sm:$0xfe]  ;;  %v1129_v4 = vld [vmem:[#allocation2 + $0x8] sm:$0xfc] }
  0x62   :  { %v340_v11 = vld [vmem:[#allocation2 + $0x190] sm:$0xff]  ;;  %v371_v14 = vpack.c.bf16 %v357_v10, %v355_v8  ;;  %v1249_v60 = vsel %vm1240_vm1, %v1247_v53, %v1248_v54  ;;  %v857_v61 = vpack.c.bf16 %v755_v57, %v749_v56  ;;  %v1131_v5 = vld [vmem:[#allocation2 + $0x28] sm:$0x3]  ;;  %v1135_v7 = vld [vmem:[#allocation2 + $0x120] sm:$0x3]  ;;  %v756_v8 = vrot.slane %v639_v62, 1 }
  0x63   :  { %v342_v13 = vld [vmem:[#allocation2 + $0x138] sm:$0xff]  ;;  %v1245_v23 = vrot.slane %v1131_v5, 2  ;;  %v1251_v2 = vrot.slane %v1135_v7, 2  ;;  %v1138_v26 = vld [vmem:[#allocation2 + $0xb0] sm:$0x3]  ;;  %2351 = vmatpush.bf16.msra.mxu1 %v5266_v20  ;;  %v5265_v6 = vld [vmem:[%s6490_s3 + $0x260] sm:$0xff] }
  0x64   :  { %v356_v15 = vld [vmem:[#allocation2 + $0x128] sm:$0xff]  ;;  %v364_v17 = vpack.c.bf16 %v342_v13, %v340_v11  ;;  %v640_v13 = vld [vmem:[#allocation2 + $0x18] sm:$0xfe]  ;;  %v1254_v38 = vrot.slane %v1138_v26, 2  ;;  %v653_v53 = vld [vmem:[#allocation2 + $0x60] sm:$0x1] }
  0x65   :  { %548 = vmatmul.bf16.gmra.mxu2 %v369_v55  ;;  %v358_v16 = vld [vmem:[#allocation2 + $0x1d0] sm:$0xff]  ;;  %v856_v55 = vpack.c.bf16 %v752_v48, %v746_v47  ;;  %v1136_v25 = vld [vmem:[#allocation2 + $0xd8] sm:$0xfc]  ;;  %v1140_v27 = vld [vmem:[#allocation2 + $0x108] sm:$0xfc]  ;;  %v759_v29 = vrot.slane %v640_v13, 1  ;;  %v1252_v36 = vsel %vm1240_vm1, %v1250_v24, %v1251_v2 }
  0x66   :  { %572 = vmatmul.bf16.gmra.mxu1 %v362_v59  ;;  %v343_v18 = vld [vmem:[#allocation2 + $0x88] sm:$0xff]  ;;  %v372_v19 = vpack.c.bf16 %v358_v16, %v356_v15  ;;  %v1243_v59 = vsel %vm1240_vm1, %v1241_v51, %v1242_v52  ;;  %v1142_v28 = vld [vmem:[#allocation2 + $0x1f8] sm:$0x3]  ;;  %v1253_v37 = vrot.slane %v1136_v25, 2  ;;  %v1259_v40 = vrot.slane %v1140_v27, 2 }
  0x67   :  { %v365_v22 = vpack.c.bf16 0.0, %v343_v18  ;;  %v344_v49 = vld [vmem:[#allocation2] sm:$0xff]  ;;  %v1353_v3 = vpack.c.bf16 %v1249_v60, %v1243_v59  ;;  %v5250_v15 = vld [vmem:[%s6490_s3 + $0x1e8] sm:$0xff]  ;;  %v642_v18 = vld [vmem:[#allocation2 + $0x158] sm:$0x1]  ;;  %v1260_v41 = vrot.slane %v1142_v28, 2  ;;  %2352 = vmatpush.bf16.msra.mxu1 %v5265_v6 }
  0x68   :  { %592 = vmatmul.bf16.gmra.mxu3 %v370_v63  ;;  %v366_v58 = vpack.c.bf16 0.0, %v344_v49  ;;  %v641_v63 = vld [vmem:[#allocation2 + $0xb0] sm:$0x1]  ;;  %v5258_v16 = vld [vmem:[%s6490_s3 + $0x228] sm:$0xff]  ;;  %v760_v30 = vrot.slane %v642_v18, 1  ;;  %v1255_v46 = vsel %vm1240_vm1, %v1253_v37, %v1254_v38 }
  0x69   :  { %v757_v10 = vrot.slane %v641_v63, 1  ;;  %1855 = vmatpush.bf16.msra.mxu3 %v5250_v15  ;;  %2307 = vmatpush.bf16.msra.mxu0 %v5258_v16  ;;  %v1261_v47 = vsel %vm1240_vm1, %v1259_v40, %v1260_v41  ;;  %v647_v49 = vld [vmem:[#allocation2 + $0x180] sm:$0xfe]  ;;  %v649_v51 = vld [vmem:[#allocation2 + $0x140] sm:$0x1] }
  0x6a   :  { %533 = vmatmul.bf16.gmra.mxu0 %v363_v0  ;;  %v643_v0 = vld [vmem:[#allocation2 + $0x108] sm:$0xfe]  ;;  %v761_v43 = vsel %vm743_vm0, %v759_v29, %v760_v30  ;;  %v651_v52 = vld [vmem:[#allocation2 + $0xd0] sm:$0xfe]  ;;  %v1355_v54 = vpack.c.bf16 %v1261_v47, %v1255_v46  ;;  %v1139_v56 = vld [vmem:[#allocation2 + $0x158] sm:$0x3] }
  0x6b   :  { %v762_v11 = vrot.slane %v643_v0, 1  ;;  %v758_v33 = vsel %vm743_vm0, %v756_v8, %v757_v10  ;;  %v1141_v57 = vld [vmem:[#allocation2 + $0x110] sm:$0xfc]  ;;  %v768_v59 = vrot.slane %v647_v49, 1  ;;  %v769_v60 = vrot.slane %v649_v51, 1  ;;  %v5241_v63 = vld [vmem:[%s6490_s3 + $0x1a0] sm:$0xff] }
  0x6c   :  { %v648_v62 = vld [vmem:[#allocation2 + $0x190] sm:$0xfe]  ;;  %v5249_v0 = vld [vmem:[%s6490_s3 + $0x1e0] sm:$0xff]  ;;  %v652_v5 = vld [vmem:[#allocation2 + $0x138] sm:$0xfe]  ;;  %v1257_v10 = vrot.slane %v1139_v56, 2 }
  0x6d   :  { %v654_v7 = vld [vmem:[#allocation2 + $0x1b8] sm:$0x1]  ;;  %1856 = vmatpush.bf16.msra.mxu3 %v5249_v0  ;;  %v1146_v15 = vld [vmem:[#allocation2 + $0x140] sm:$0x3]  ;;  %v1148_v16 = vld [vmem:[#allocation2 + $0xd0] sm:$0xfc] }
  0x6e   :  { %v771_v18 = vrot.slane %v648_v62, 1  ;;  %v777_v20 = vrot.slane %v652_v5, 1  ;;  %v778_v21 = vrot.slane %v654_v7, 1  ;;  %v1266_v26 = vrot.slane %v1146_v15, 2  ;;  %v657_v37 = vld [vmem:[#allocation2 + $0x188] sm:$0x1] }
  0x6f   :  { %v1271_v27 = vrot.slane %v1148_v16, 2  ;;  %v659_v38 = vld [vmem:[#allocation2 + $0x198] sm:$0xfe]  ;;  %v661_v40 = vld [vmem:[#allocation2 + $0x1e0] sm:$0x1]  ;;  %v781_v47 = vrot.slane %v657_v37, 1 }
  0x70   :  { %v656_v49 = vld [vmem:[#allocation2] sm:$0xfe]  ;;  %v5240_v51 = vld [vmem:[%s6490_s3 + $0x198] sm:$0xff]  ;;  %v1154_v0 = vld [vmem:[#allocation2 + $0x188] sm:$0x3] }
  0x71   :  { %v660_v56 = vld [vmem:[#allocation2 + $0xe0] sm:$0xfe]  ;;  %v1278_v15 = vrot.slane %v1154_v0, 2 }
  0x72   :  { %v789_v6 = vrot.slane %v660_v56, 1 }
  0x75   :  { %553 = vmatmul.bf16.gmra.mxu2 %v371_v14  ;;  %v5242_v14 = vld [vmem:[%s6490_s3 + $0x1a8] sm:$0xff] }
  0x76   :  { %577 = vmatmul.bf16.gmra.mxu1 %v364_v17  ;;  %v763_v17 = vrot.slane %v645_v1, 1  ;;  %1811 = vmatpush.bf16.msra.mxu2 %v5242_v14  ;;  %v5257_v1 = vld [vmem:[%s6490_s3 + $0x220] sm:$0xff] }
  0x77   :  { %v1144_v14 = vld [vmem:[#allocation2 + $0x180] sm:$0xfc]  ;;  %2308 = vmatpush.bf16.msra.mxu0 %v5257_v1  ;;  %v1156_v1 = vld [vmem:[#allocation2 + $0x198] sm:$0xfc] }
  0x78   :  { %597 = vmatmul.bf16.gmra.mxu3 %v372_v19  ;;  %v644_v19 = vld [vmem:[#allocation2 + $0x110] sm:$0xfe]  ;;  %v764_v34 = vsel %vm743_vm0, %v762_v11, %v763_v17  ;;  %v1262_v11 = vrot.slane %v1141_v57, 2  ;;  %v1150_v17 = vld [vmem:[#allocation2 + $0x60] sm:$0x3]  ;;  %v1265_v25 = vrot.slane %v1144_v14, 2 }
  0x79   :  { %v765_v31 = vrot.slane %v644_v19, 1  ;;  %v858_v42 = vpack.c.bf16 %v764_v34, %v758_v33  ;;  %v1272_v28 = vrot.slane %v1150_v17, 2  ;;  %v5264_v57 = vld [vmem:[%s6490_s3 + $0x258] sm:$0xff]  ;;  %v1283_v16 = vrot.slane %v1156_v1, 2 }
  0x7a   :  { %538 = vmatmul.bf16.gmra.mxu0 %v365_v22  ;;  %v1244_v22 = vrot.slane %v1129_v4, 2  ;;  %v650_v4 = vld [vmem:[#allocation2 + $0x1c0] sm:$0x1]  ;;  %1812 = vmatpush.bf16.msra.mxu2 %v5241_v63  ;;  %v1267_v33 = vsel %vm1240_vm1, %v1265_v25, %v1266_v26  ;;  %v1152_v63 = vld [vmem:[#allocation2 + $0x88] sm:$0xfc]  ;;  %v5239_v25 = vld [vmem:[%s6490_s3 + $0x190] sm:$0xff] }
  0x7b   :  { %v767_v44 = vsel %vm743_vm0, %v765_v31, %v766_v32  ;;  %v772_v19 = vrot.slane %v650_v4, 1  ;;  %v779_v31 = vsel %vm743_vm0, %v777_v20, %v778_v21  ;;  %v1273_v34 = vsel %vm1240_vm1, %v1271_v27, %v1272_v28  ;;  %2353 = vmatpush.bf16.msra.mxu1 %v5264_v57  ;;  %v5247_v26 = vld [vmem:[%s6490_s3 + $0x1d0] sm:$0xff]  ;;  %v665_v27 = vld [vmem:[#allocation2 + $0x238] sm:$0x1] }
  0x7c   :  { %v1246_v35 = vsel %vm1240_vm1, %v1244_v22, %v1245_v23  ;;  %v859_v48 = vpack.c.bf16 %v767_v44, %v761_v43  ;;  %v770_v22 = vsel %vm743_vm0, %v768_v59, %v769_v60  ;;  %v1357_v41 = vpack.c.bf16 %v1273_v34, %v1267_v33  ;;  %v1147_v43 = vld [vmem:[#allocation2 + $0x1c0] sm:$0x3]  ;;  %v1149_v44 = vld [vmem:[#allocation2 + $0x138] sm:$0xfc]  ;;  %v667_v28 = vld [vmem:[#allocation2 + $0x50] sm:$0xfe] }
  0x7d   :  { %v1354_v45 = vpack.c.bf16 %v1252_v36, %v1246_v35  ;;  %v773_v30 = vsel %vm743_vm0, %v771_v18, %v772_v19  ;;  %v655_v36 = vld [vmem:[#allocation2 + $0x88] sm:$0xfe]  ;;  %v1269_v60 = vrot.slane %v1147_v43, 2  ;;  %v783_v4 = vrot.slane %v656_v49, 1  ;;  %v1157_v33 = vld [vmem:[#allocation2 + $0xe0] sm:$0xfc] }
  0x7e   :  { %v861_v35 = vpack.c.bf16 %v779_v31, %v773_v30  ;;  %v780_v46 = vrot.slane %v655_v36, 1  ;;  %1813 = vmatpush.bf16.msra.mxu2 %v5240_v51  ;;  %v1277_v14 = vrot.slane %v1152_v63, 2  ;;  %v1153_v31 = vld [vmem:[#allocation2] sm:$0xfc]  ;;  %v1159_v34 = vld [vmem:[#allocation2 + $0x1f0] sm:$0x3] }
  0x7f   :  { %v793_v36 = vrot.slane %v665_v27, 1  ;;  %v798_v37 = vrot.slane %v667_v28, 1  ;;  %v670_v43 = vld [vmem:[#allocation2 + $0x1b0] sm:$0x1]  ;;  %v1162_v49 = vld [vmem:[#allocation2 + $0x238] sm:$0x3] }
  0x80   :  { %v1164_v51 = vld [vmem:[#allocation2 + $0x50] sm:$0xfc]  ;;  %v1290_v0 = vrot.slane %v1162_v49, 2 }
  0x81   :  { %v1295_v1 = vrot.slane %v1164_v51, 2  ;;  %v672_v28 = vld [vmem:[#allocation2 + $0x130] sm:$0xfe]  ;;  %v5245_v51 = vld [vmem:[%s6490_s3 + $0x1c0] sm:$0xff] }
  0x82   :  { %1814 = vmatpush.bf16.msra.mxu2 %v5239_v25 }
  0x85   :  { %1020 = vmatmul.bf16.vlgmr.msrb.gmra.mxu2 %v856_v55  ;;  %v1137_v55 = vld [vmem:[#allocation2 + $0x18] sm:$0xfc] }
  0x86   :  { %582 = vmatmul.bf16.gmra.mxu1 %v366_v58  ;;  %v1143_v58 = vld [vmem:[#allocation2 + $0xb8] sm:$0x3]  ;;  %v1256_v8 = vrot.slane %v1137_v55, 2 }
  0x87   :  { %v1263_v13 = vrot.slane %v1143_v58, 2  ;;  %v658_v55 = vld [vmem:[#allocation2 + $0x38] sm:$0x1]  ;;  %v662_v58 = vld [vmem:[#allocation2 + $0x1f0] sm:$0x1] }
  0x88   :  { %1064 = vmatmul.bf16.vlgmr.msrb.gmra.mxu3 %v857_v61  ;;  %v774_v61 = vrot.slane %v651_v52, 1  ;;  %v1258_v24 = vsel %vm1240_vm1, %v1256_v8, %v1257_v10  ;;  %v5248_v52 = vld [vmem:[%s6490_s3 + $0x1d8] sm:$0xff]  ;;  %v784_v5 = vrot.slane %v658_v55, 1  ;;  %v790_v7 = vrot.slane %v662_v58, 1  ;;  %v5263_v55 = vld [vmem:[%s6490_s3 + $0x250] sm:$0xff] }
  0x89   :  { %v1264_v2 = vsel %vm1240_vm1, %v1262_v11, %v1263_v13  ;;  %1857 = vmatpush.bf16.msra.mxu3 %v5248_v52  ;;  %v782_v8 = vsel %vm743_vm0, %v780_v46, %v781_v47  ;;  %v1286_v46 = vrot.slane %v1157_v33, 2  ;;  %v1287_v47 = vrot.slane %v1159_v34, 2  ;;  %2354 = vmatpush.bf16.msra.mxu1 %v5263_v55 }
  0x8a   :  { %1517 = vmatmul.bf16.vlgmr.msrb.gmra.mxu0 %v1353_v3  ;;  %v775_v3 = vrot.slane %v653_v53, 1  ;;  %v1356_v32 = vpack.c.bf16 %v1264_v2, %v1258_v24  ;;  %v5256_v53 = vld [vmem:[%s6490_s3 + $0x218] sm:$0xff]  ;;  %v785_v19 = vsel %vm743_vm0, %v783_v4, %v784_v5  ;;  %v791_v20 = vsel %vm743_vm0, %v789_v6, %v790_v7  ;;  %v663_v2 = vld [vmem:[#allocation2 + $0x48] sm:$0xfe] }
  0x8b   :  { %2309 = vmatpush.bf16.msra.mxu0 %v5256_v53  ;;  %v863_v24 = vpack.c.bf16 %v791_v20, %v785_v19  ;;  %v1166_v53 = vld [vmem:[#allocation2 + $0x30] sm:$0x3]  ;;  %v677_v19 = vld [vmem:[#allocation2 + $0x218] sm:$0x1] }
  0x8c   :  { %v776_v23 = vsel %vm743_vm0, %v774_v61, %v775_v3  ;;  %v1274_v61 = vrot.slane %v1149_v44, 2  ;;  %v1158_v3 = vld [vmem:[#allocation2 + $0x1e0] sm:$0x3]  ;;  %v1280_v44 = vrot.slane %v1153_v31, 2  ;;  %v811_v27 = vrot.slane %v677_v19, 1 }
  0x8d   :  { %v860_v29 = vpack.c.bf16 %v776_v23, %v770_v22  ;;  %v1284_v17 = vrot.slane %v1158_v3, 2  ;;  %v1279_v22 = vsel %vm1240_vm1, %v1277_v14, %v1278_v15  ;;  %1858 = vmatpush.bf16.msra.mxu3 %v5247_v26  ;;  %v1296_v3 = vrot.slane %v1166_v53, 2  ;;  %v671_v14 = vld [vmem:[#allocation2 + $0x90] sm:$0xfe]  ;;  %v5238_v15 = vld [vmem:[%s6490_s3 + $0x188] sm:$0xff] }
  0x8e   :  { %1815 = vmatpush.bf16.msra.mxu2 %v5238_v15  ;;  %v678_v31 = vld [vmem:[#allocation2 + $0x200] sm:$0x1]  ;;  %v1171_v15 = vld [vmem:[#allocation2 + $0x230] sm:$0x3] }
  0x8f   :  { %v1285_v23 = vsel %vm1240_vm1, %v1283_v16, %v1284_v17  ;;  %v5246_v16 = vld [vmem:[%s6490_s3 + $0x1c8] sm:$0xff] }
  0x90   :  { %v1359_v30 = vpack.c.bf16 %v1285_v23, %v1279_v22  ;;  %v673_v17 = vld [vmem:[#allocation2 + $0x68] sm:$0x1]  ;;  %v1163_v22 = vld [vmem:[#allocation2 + $0x160] sm:$0x3]  ;;  %v1165_v23 = vld [vmem:[#allocation2 + $0x100] sm:$0xfc] }
  0x91   :  { %1859 = vmatpush.bf16.msra.mxu3 %v5246_v16  ;;  %v805_v25 = vrot.slane %v673_v17, 1  ;;  %v1293_v33 = vrot.slane %v1163_v22, 2  ;;  %v1298_v34 = vrot.slane %v1165_v23, 2  ;;  %v1173_v16 = vld [vmem:[#allocation2 + $0x228] sm:$0xfc]  ;;  %v5253_v22 = vld [vmem:[%s6490_s3 + $0x200] sm:$0xff] }
  0x92   :  { %v1175_v17 = vld [vmem:[#allocation2 + $0x200] sm:$0x3] }
  0x93   :  { %v5261_v23 = vld [vmem:[%s6490_s3 + $0x240] sm:$0xff] }
  0x95   :  { %1025 = vmatmul.bf16.gmra.mxu2 %v858_v42  ;;  %v1145_v42 = vld [vmem:[#allocation2 + $0x190] sm:$0xfc]  ;;  %1860 = vmatpush.bf16.msra.mxu3 %v5245_v51 }
  0x96   :  { %1561 = vmatmul.bf16.vlgmr.msrb.gmra.mxu1 %v1354_v45  ;;  %v1151_v45 = vld [vmem:[#allocation2 + $0x1b8] sm:$0x3]  ;;  %v1268_v59 = vrot.slane %v1145_v42, 2  ;;  %v668_v42 = vld [vmem:[#allocation2 + $0x100] sm:$0xfe] }
  0x97   :  { %v1275_v62 = vrot.slane %v1151_v45, 2  ;;  %v801_v58 = vrot.slane %v668_v42, 1  ;;  %v5254_v42 = vld [vmem:[%s6490_s3 + $0x208] sm:$0xff] }
  0x98   :  { %1069 = vmatmul.bf16.gmra.mxu3 %v859_v48  ;;  %v786_v48 = vrot.slane %v659_v38, 1  ;;  %v1270_v11 = vsel %vm1240_vm1, %v1268_v59, %v1269_v60  ;;  %v802_v59 = vrot.slane %v670_v43, 1  ;;  %v5262_v43 = vld [vmem:[%s6490_s3 + $0x248] sm:$0xff] }
  0x99   :  { %v1276_v13 = vsel %vm1240_vm1, %v1274_v61, %v1275_v62  ;;  %v1288_v62 = vsel %vm1240_vm1, %v1286_v46, %v1287_v47  ;;  %2355 = vmatpush.bf16.msra.mxu1 %v5262_v43 }
  0x9a   :  { %1522 = vmatmul.bf16.gmra.mxu0 %v1355_v54  ;;  %v787_v54 = vrot.slane %v661_v40, 1  ;;  %v1358_v21 = vpack.c.bf16 %v1276_v13, %v1270_v11  ;;  %v664_v40 = vld [vmem:[#allocation2 + $0x98] sm:$0xfe]  ;;  %v803_v6 = vsel %vm743_vm0, %v801_v58, %v802_v59  ;;  %v1297_v11 = vsel %vm1240_vm1, %v1295_v1, %v1296_v3 }
  0x9b   :  { %v795_v56 = vrot.slane %v664_v40, 1  ;;  %v1174_v40 = vld [vmem:[#allocation2 + $0x218] sm:$0x3] }
  0x9c   :  { %v788_v10 = vsel %vm743_vm0, %v786_v48, %v787_v54  ;;  %v1160_v48 = vld [vmem:[#allocation2 + $0x48] sm:$0xfc]  ;;  %v5255_v54 = vld [vmem:[%s6490_s3 + $0x210] sm:$0xff]  ;;  %v1308_v58 = vrot.slane %v1174_v40, 2  ;;  %v1182_v40 = vld [vmem:[#allocation2 + $0x168] sm:$0x3] }
  0x9d   :  { %v862_v18 = vpack.c.bf16 %v788_v10, %v782_v8  ;;  %2310 = vmatpush.bf16.msra.mxu0 %v5255_v54  ;;  %v1289_v63 = vrot.slane %v1160_v48, 2  ;;  %v814_v48 = vrot.slane %v678_v31, 1  ;;  %2356 = vmatpush.bf16.msra.mxu1 %v5261_v23  ;;  %v1925_v23 = vld [vmem:[#allocation2 + $0xe8] sm:$0xfe] }
  0x9e   :  { %v5881_v8 = vpop.f32.mrf.mxu0 }
  0x9f   :  { %v1291_v10 = vsel %vm1240_vm1, %v1289_v63, %v1290_v0 }
  0xa0   :  { %v1361_v20 = vpack.c.bf16 %v1297_v11, %v1291_v10  ;;  %v685_v10 = vld [vmem:[#allocation2 + $0x168] sm:$0x1] }
  0xa1   :  { %2311 = vmatpush.bf16.msra.mxu0 %v5254_v42  ;;  %v5284_v42 = vld [vmem:[%s6490_s3 + $0x2f8] sm:$0xff] }
  0xa2   :  { %2845 = vmatpush.bf16.msrb.mxu3 %v5284_v42 }
  0xa5   :  { %1030 = vmatmul.bf16.gmra.mxu2 %v860_v29  ;;  %v669_v29 = vld [vmem:[#allocation2 + $0x30] sm:$0x1]  ;;  %2312 = vmatpush.bf16.msra.mxu0 %v5253_v22 }
  0xa6   :  { %1566 = vmatmul.bf16.gmra.mxu1 %v1356_v32  ;;  %v1155_v32 = vld [vmem:[#allocation2 + $0x38] sm:$0x3]  ;;  %v799_v38 = vrot.slane %v669_v29, 1  ;;  %v674_v29 = vld [vmem:[#allocation2 + $0x230] sm:$0x1]  ;;  %v526_v49 = vpop.f32.mrf.mxu0 }
  0xa7   :  { %v1281_v45 = vrot.slane %v1155_v32, 2  ;;  %v808_v46 = vrot.slane %v674_v29, 1  ;;  %v1310_v29 = vrot.slane %v1173_v16, 2 }
  0xa8   :  { %1074 = vmatmul.bf16.gmra.mxu3 %v861_v35  ;;  %v792_v35 = vrot.slane %v663_v2, 1  ;;  %v800_v60 = vsel %vm743_vm0, %v798_v37, %v799_v38  ;;  %v804_v2 = vrot.slane %v671_v14, 1  ;;  %v1170_v37 = vld [vmem:[#allocation2 + $0x68] sm:$0x3]  ;;  %v1172_v38 = vld [vmem:[#allocation2 + $0x1d8] sm:$0xfc] }
  0xa9   :  { %v1282_v61 = vsel %vm1240_vm1, %v1280_v44, %v1281_v45  ;;  %v5237_v44 = vld [vmem:[%s6490_s3 + $0x180] sm:$0xff]  ;;  %v807_v45 = vrot.slane %v672_v28, 1  ;;  %v1305_v28 = vrot.slane %v1171_v15, 2 }
  0xaa   :  { %1527 = vmatmul.bf16.gmra.mxu0 %v1357_v41  ;;  %v666_v41 = vld [vmem:[#allocation2 + $0x160] sm:$0x1]  ;;  %v794_v52 = vsel %vm743_vm0, %v792_v35, %v793_v36  ;;  %v1360_v7 = vpack.c.bf16 %v1288_v62, %v1282_v61  ;;  %v1168_v36 = vld [vmem:[#allocation2 + $0x90] sm:$0xfc]  ;;  %1816 = vmatpush.bf16.msra.mxu2 %v5237_v44 }
  0xab   :  { %v796_v57 = vrot.slane %v666_v41, 1  ;;  %v864_v4 = vpack.c.bf16 %v800_v60, %v794_v52  ;;  %v806_v41 = vsel %vm743_vm0, %v804_v2, %v805_v25  ;;  %v1301_v55 = vrot.slane %v1168_v36, 2  ;;  %v682_v2 = vld [vmem:[#allocation2 + $0x208] sm:$0x1]  ;;  %v684_v25 = vld [vmem:[#allocation2 + $0x1d0] sm:$0xfe] }
  0xac   :  { %v809_v60 = vsel %vm743_vm0, %v807_v45, %v808_v46  ;;  %v820_v44 = vrot.slane %v682_v2, 1  ;;  %v825_v45 = vrot.slane %v684_v25, 1  ;;  %v1183_v15 = vld [vmem:[#allocation2 + $0xc0] sm:$0x3]  ;;  %v1927_v25 = vld [vmem:[#allocation2 + $0x70] sm:$0x1] }
  0xad   :  { %v797_v5 = vsel %vm743_vm0, %v795_v56, %v796_v57  ;;  %v1302_v56 = vrot.slane %v1170_v37, 2  ;;  %v1307_v57 = vrot.slane %v1172_v38, 2 }
  0xae   :  { %v865_v13 = vpack.c.bf16 %v803_v6, %v797_v5  ;;  %v679_v5 = vld [vmem:[#allocation2 + $0x10] sm:$0xfe]  ;;  %v681_v6 = vld [vmem:[#allocation2 + $0x178] sm:$0x1] }
  0xaf   :  { %v1303_v0 = vsel %vm1240_vm1, %v1301_v55, %v1302_v56  ;;  %v1309_v1 = vsel %vm1240_vm1, %v1307_v57, %v1308_v58  ;;  %v816_v19 = vrot.slane %v679_v5, 1  ;;  %v1320_v55 = vrot.slane %v1182_v40, 2 }
  0xb0   :  { %v1363_v11 = vpack.c.bf16 %v1309_v1, %v1303_v0 }
  0xb5   :  { %1035 = vmatmul.bf16.gmra.mxu2 %v862_v18  ;;  %v675_v18 = vld [vmem:[#allocation2 + $0x1d8] sm:$0xfe] }
  0xb6   :  { %1571 = vmatmul.bf16.gmra.mxu1 %v1358_v21  ;;  %v1161_v21 = vld [vmem:[#allocation2 + $0x98] sm:$0xfc]  ;;  %v810_v26 = vrot.slane %v675_v18, 1 }
  0xb7   :  { %v1292_v32 = vrot.slane %v1161_v21, 2 }
  0xb8   :  { %1079 = vmatmul.bf16.gmra.mxu3 %v863_v24  ;;  %v1167_v24 = vld [vmem:[#allocation2 + $0x1b0] sm:$0x3]  ;;  %v812_v52 = vsel %vm743_vm0, %v810_v26, %v811_v27  ;;  %v686_v26 = vld [vmem:[#allocation2 + $0xc0] sm:$0x1] }
  0xb9   :  { %v1299_v35 = vrot.slane %v1167_v24, 2  ;;  %v1294_v53 = vsel %vm1240_vm1, %v1292_v32, %v1293_v33  ;;  %v866_v59 = vpack.c.bf16 %v812_v52, %v806_v41  ;;  %v680_v24 = vld [vmem:[#allocation2 + $0x128] sm:$0xfe]  ;;  %v1176_v33 = vld [vmem:[#allocation2 + $0x10] sm:$0xfc]  ;;  %v5276_v41 = vld [vmem:[%s6490_s3 + $0x2b8] sm:$0xff] }
  0xba   :  { %1532 = vmatmul.bf16.gmra.mxu0 %v1359_v30  ;;  %v676_v30 = vld [vmem:[#allocation2 + $0x228] sm:$0xfe]  ;;  %v819_v43 = vrot.slane %v680_v24, 1  ;;  %v826_v46 = vrot.slane %v686_v26, 1  ;;  %2801 = vmatpush.bf16.msrb.mxu2 %v5276_v41  ;;  %v1313_v52 = vrot.slane %v1176_v33, 2  ;;  %v5283_v33 = vld [vmem:[%s6490_s3 + $0x2f0] sm:$0xff] }
  0xbb   :  { %v813_v47 = vrot.slane %v676_v30, 1  ;;  %v1300_v54 = vsel %vm1240_vm1, %v1298_v34, %v1299_v35  ;;  %v1311_v30 = vrot.slane %v1175_v17, 2  ;;  %v1178_v34 = vld [vmem:[#allocation2 + $0x178] sm:$0x3]  ;;  %v1180_v35 = vld [vmem:[#allocation2 + $0x210] sm:$0xfc]  ;;  %2846 = vmatpush.bf16.msrb.mxu3 %v5283_v33 }
  0xbc   :  { %v1362_v62 = vpack.c.bf16 %v1300_v54, %v1294_v53  ;;  %v1314_v53 = vrot.slane %v1178_v34, 2  ;;  %v1319_v54 = vrot.slane %v1180_v35, 2  ;;  %v821_v58 = vsel %vm743_vm0, %v819_v43, %v820_v44  ;;  %v5292_v17 = vld [vmem:[%s6490_s3 + $0x338] sm:$0xff]  ;;  %v1626_v44 = vld [vmem:[#allocation2 + $0xf0] sm:$0xff] }
  0xbd   :  { %v815_v61 = vsel %vm743_vm0, %v813_v47, %v814_v48  ;;  %3102 = vmatpush.bf16.msrb.mxu0 %v5292_v17  ;;  %v1929_v26 = vld [vmem:[#allocation2 + $0xd8] sm:$0xfe]  ;;  %v2037_v35 = vrot.slane %v1925_v23, 1 }
  0xbe   :  { %v1321_v0 = vsel %vm1240_vm1, %v1319_v54, %v1320_v55  ;;  %v2043_v40 = vrot.slane %v1929_v26, 1  ;;  %v1926_v55 = vld [vmem:[#allocation2 + $0xf0] sm:$0xfe]  ;;  %v1629_v26 = vld [vmem:[#allocation2 + $0x108] sm:$0xff] }
  0xc5   :  { %1040 = vmatmul.bf16.gmra.mxu2 %v864_v4  ;;  %v867_v4 = vpack.c.bf16 %v815_v61, %v809_v60 }
  0xc6   :  { %1576 = vmatmul.bf16.gmra.mxu1 %v1360_v7  ;;  %v683_v7 = vld [vmem:[#allocation2 + $0x210] sm:$0xfe] }
  0xc7   :  { %v822_v21 = vrot.slane %v683_v7, 1  ;;  %v1177_v7 = vld [vmem:[#allocation2 + $0x128] sm:$0xfc] }
  0xc8   :  { %1084 = vmatmul.bf16.gmra.mxu3 %v865_v13  ;;  %v1169_v13 = vld [vmem:[#allocation2 + $0x130] sm:$0xfc] }
  0xc9   :  { %v1304_v27 = vrot.slane %v1169_v13, 2  ;;  %v1181_v13 = vld [vmem:[#allocation2 + $0x1d0] sm:$0xfc] }
  0xca   :  { %1537 = vmatmul.bf16.gmra.mxu0 %v1361_v20  ;;  %v817_v20 = vrot.slane %v681_v6, 1 }
  0xcb   :  { %v1306_v48 = vsel %vm1240_vm1, %v1304_v27, %v1305_v28  ;;  %v1931_v27 = vld [vmem:[#allocation2 + $0xb0] sm:$0x1]  ;;  %v1625_v28 = vld [vmem:[#allocation2 + $0xe8] sm:$0xff] }
  0xcc   :  { %v818_v38 = vsel %vm743_vm0, %v816_v19, %v817_v20  ;;  %v1322_v20 = vrot.slane %v1181_v13, 2  ;;  %v2044_v41 = vrot.slane %v1931_v27, 1  ;;  %v1631_v27 = vld [vmem:[#allocation2 + $0x180] sm:$0xff] }
  0xd3   :  { %v568_v63 = vpop.f32.mrf.mxu1 }
  0xd4   :  { %v5912_v3 = vadd.f32 %v568_v63, %v5881_v8  ;;  %v823_v8 = vrot.slane %v685_v10, 1  ;;  %v1315_v63 = vsel %vm1240_vm1, %v1313_v52, %v1314_v53 }
  0xd5   :  { %1045 = vmatmul.bf16.gmra.mxu2 %v866_v59  ;;  %v827_v59 = vsel %vm743_vm0, %v825_v45, %v826_v46  ;;  %v1365_v6 = vpack.c.bf16 %v1321_v0, %v1315_v63  ;;  %v1628_v45 = vld [vmem:[#allocation2 + $0x18] sm:$0xff]  ;;  %v100_v63 = vld [vmem:[%s6491_s0 + $0x30] sm:$0xff] }
  0xd6   :  { %1581 = vmatmul.bf16.gmra.mxu1 %v1362_v62  ;;  %v824_v47 = vsel %vm743_vm0, %v822_v21, %v823_v8  ;;  %v869_v5 = vpack.c.bf16 %v827_v59, %v821_v58  ;;  %v1323_v21 = vrot.slane %v1183_v15, 2  ;;  %v1654_v54 = vpack.c.bf16 %v1628_v45, %v1626_v44  ;;  %v5291_v58 = vld [vmem:[%s6490_s3 + $0x330] sm:$0xff] }
  0xd7   :  { %v529_v14 = vpop.f32.mrf.mxu0  ;;  %v868_v57 = vpack.c.bf16 %v824_v47, %v818_v38  ;;  %v2038_v38 = vrot.slane %v1927_v25, 1  ;;  %v5299_v59 = vld [vmem:[%s6490_s3 + $0x370] sm:$0xff]  ;;  %3103 = vmatpush.bf16.msrb.mxu0 %v5291_v58 }
  0xd8   :  { %1089 = vmatmul.bf16.gmra.mxu3 %v867_v4  ;;  %v544_v18 = vpop.f32.mrf.mxu2  ;;  %v1630_v44 = vld [vmem:[#allocation2 + $0x110] sm:$0xff] }
  0xd9   :  { %v1632_v45 = vld [vmem:[#allocation2 + $0x190] sm:$0xff] }
  0xda   :  { %1542 = vmatmul.bf16.gmra.mxu0 %v1363_v11  ;;  %v1179_v11 = vld [vmem:[#allocation2 + $0x208] sm:$0x3]  ;;  %v1934_v58 = vld [vmem:[#allocation2 + $0x110] sm:$0xfe] }
  0xdb   :  { %v588_v31 = vpop.f32.mrf.mxu3  ;;  %v570_v32 = vpop.f32.mrf.mxu1  ;;  %v1317_v19 = vrot.slane %v1179_v11, 2 }
  0xdc   :  { %v5920_v36 = vadd.f32 %v588_v31, %v544_v18  ;;  %v5922_v37 = vadd.f32 %v570_v32, %v526_v49  ;;  %v1312_v49 = vsel %vm1240_vm1, %v1310_v29, %v1311_v30  ;;  %v1316_v18 = vrot.slane %v1177_v7, 2  ;;  %v1627_v31 = vld [vmem:[#allocation2 + $0xd8] sm:$0xff]  ;;  %v5275_v32 = vld [vmem:[%s6490_s3 + $0x2b0] sm:$0xff] }
  0xdd   :  { %v1364_v60 = vpack.c.bf16 %v1312_v49, %v1306_v48  ;;  %v1324_v30 = vsel %vm1240_vm1, %v1322_v20, %v1323_v21  ;;  %2802 = vmatpush.bf16.msrb.mxu2 %v5275_v32  ;;  %v1653_v43 = vpack.c.bf16 %v1627_v31, %v1625_v28  ;;  %v2039_v49 = vsel %vm743_vm0, %v2037_v35, %v2038_v38  ;;  %v1935_v21 = vld [vmem:[#allocation2 + $0x1f8] sm:$0x1]  ;;  %v5282_v31 = vld [vmem:[%s6490_s3 + $0x2e8] sm:$0xff] }
  0xde   :  { %v1318_v29 = vsel %vm1240_vm1, %v1316_v18, %v1317_v19  ;;  %v2040_v7 = vrot.slane %v1926_v55, 1  ;;  %v1933_v18 = vld [vmem:[#allocation2 + $0x108] sm:$0xfe]  ;;  %v2050_v38 = vrot.slane %v1935_v21, 1  ;;  %2847 = vmatpush.bf16.msrb.mxu3 %v5282_v31  ;;  %v5297_v31 = vld [vmem:[%s6490_s3 + $0x360] sm:$0xff] }
  0xdf   :  { %v531_v51 = vpop.f32.mrf.mxu0  ;;  %v1366_v46 = vpack.c.bf16 %v1324_v30, %v1318_v29  ;;  %v5274_v30 = vld [vmem:[%s6490_s3 + $0x2a8] sm:$0xff]  ;;  %v2049_v35 = vrot.slane %v1933_v18, 1 }
  0xe0   :  { %v546_v56 = vpop.f32.mrf.mxu2 }
  0xe1   :  { %2803 = vmatpush.bf16.msrb.mxu2 %v5274_v30  ;;  %v5289_v30 = vld [vmem:[%s6490_s3 + $0x320] sm:$0xff] }
  0xe3   :  { %v590_v61 = vpop.f32.mrf.mxu3  ;;  %v573_v62 = vpop.f32.mrf.mxu1 }
  0xe4   :  { %v5938_v1 = vadd.f32 %v590_v61, %v546_v56  ;;  %v5940_v4 = vadd.f32 %v573_v62, %v529_v14  ;;  %v5300_v14 = vld [vmem:[%s6490_s3 + $0x378] sm:$0xff] }
  0xe5   :  { %1050 = vmatmul.bf16.gmra.mxu2 %v868_v57  ;;  %3146 = vmatpush.bf16.msrb.mxu1 %v5300_v14  ;;  %v1928_v57 = vld [vmem:[#allocation2 + $0x120] sm:$0x1]  ;;  %v1930_v61 = vld [vmem:[#allocation2 + $0x18] sm:$0xfe]  ;;  %v1932_v62 = vld [vmem:[#allocation2 + $0x158] sm:$0x1] }
  0xe6   :  { %1586 = vmatmul.bf16.gmra.mxu1 %v1364_v60  ;;  %v2046_v11 = vrot.slane %v1930_v61, 1  ;;  %v2047_v13 = vrot.slane %v1932_v62, 1  ;;  %v5298_v61 = vld [vmem:[%s6490_s3 + $0x368] sm:$0xff] }
  0xe7   :  { %v534_v10 = vpop.f32.mrf.mxu0 }
  0xe8   :  { %1094 = vmatmul.bf16.gmra.mxu3 %v869_v5  ;;  %v549_v16 = vpop.f32.mrf.mxu2  ;;  %v120_v5 = vunpack.c.l.bf16 %v100_v63  ;;  %v2048_v29 = vsel %vm743_vm0, %v2046_v11, %v2047_v13 }
  0xe9   :  { %3147 = vmatpush.bf16.msrb.mxu1 %v5299_v59  ;;  %v5290_v59 = vld [vmem:[%s6490_s3 + $0x328] sm:$0xff] }
  0xea   :  { %1547 = vmatmul.bf16.gmra.mxu0 %v1365_v6  ;;  %v121_v6 = vunpack.c.h.bf16 %v100_v63  ;;  %v154_v15 = vmul.f32 %v5462_v9, %v120_v5  ;;  %v1936_v63 = vld [vmem:[#allocation2 + $0xb8] sm:$0x1]  ;;  %v1940_v5 = vld [vmem:[#allocation2 + $0x1c0] sm:$0x1] }
  0xeb   :  { %v593_v8 = vpop.f32.mrf.mxu3  ;;  %v575_v22 = vpop.f32.mrf.mxu1  ;;  %3104 = vmatpush.bf16.msrb.mxu0 %v5290_v59  ;;  %v2053_v11 = vrot.slane %v1936_v63, 1  ;;  %v1942_v59 = vld [vmem:[#allocation2 + $0x138] sm:$0xfe]  ;;  %v1944_v63 = vld [vmem:[#allocation2 + $0x1b8] sm:$0x1] }
  0xec   :  { %v5948_v24 = vadd.f32 %v593_v8, %v549_v16  ;;  %v5950_v2 = vadd.f32 %v575_v22, %v531_v51  ;;  %v2045_v51 = vsel %vm743_vm0, %v2043_v40, %v2044_v41  ;;  %v155_v16 = vmul.f32 %v5586_v39, %v121_v6  ;;  %v1937_v8 = vld [vmem:[#allocation2 + $0x180] sm:$0xfe]  ;;  %v1939_v22 = vld [vmem:[#allocation2 + $0x140] sm:$0x1] }
  0xed   :  { %v2149_v56 = vpack.c.bf16 %v2045_v51, %v2039_v49  ;;  %v188_v23 = vadd.f32 %v5474_v12, %v154_v15  ;;  %v2055_v40 = vrot.slane %v1937_v8, 1  ;;  %v2056_v41 = vrot.slane %v1939_v22, 1  ;;  %v5273_v6 = vld [vmem:[%s6490_s3 + $0x2a0] sm:$0xff]  ;;  %3148 = vmatpush.bf16.msrb.mxu1 %v5298_v61  ;;  %v1945_v22 = vld [vmem:[#allocation2 + $0x88] sm:$0xfe] }
  0xee   :  { %v189_v25 = vadd.f32 %v5611_v50, %v155_v16  ;;  %v2051_v49 = vsel %vm743_vm0, %v2049_v35, %v2050_v38  ;;  %v2059_v15 = vrot.slane %v1940_v5, 1  ;;  %2804 = vmatpush.bf16.msrb.mxu2 %v5273_v6  ;;  %v1943_v8 = vld [vmem:[#allocation2 + $0x60] sm:$0x1]  ;;  %v2067_v35 = vrot.slane %v1945_v22, 1  ;;  %v1948_v5 = vld [vmem:[#allocation2 + $0x38] sm:$0x1] }
  0xef   :  { %v536_v34 = vpop.f32.mrf.mxu0  ;;  %v244_v32 = vrot.slane %v188_v23, 7  ;;  %v2057_v51 = vsel %vm743_vm0, %v2055_v40, %v2056_v41  ;;  %v1947_v23 = vld [vmem:[#allocation2 + $0x188] sm:$0x1]  ;;  %3105 = vmatpush.bf16.msrb.mxu0 %v5289_v30  ;;  %v1634_v41 = vld [vmem:[#allocation2 + $0x138] sm:$0xff] }
  0xf0   :  { %v551_v42 = vpop.f32.mrf.mxu2  ;;  %v245_v33 = vrot.slane %v189_v25, 7  ;;  %v1633_v25 = vld [vmem:[#allocation2 + $0xd0] sm:$0xff]  ;;  %v2068_v38 = vrot.slane %v1947_v23, 1  ;;  %v5272_v6 = vld [vmem:[%s6490_s3 + $0x298] sm:$0xff]  ;;  %v1639_v23 = vld [vmem:[#allocation2 + $0x48] sm:$0xff] }
  0xf1   :  { %301 = vst [vmem:[#allocation2 + $0x1a8] sm:$0xfe] %v244_v32  ;;  %3149 = vmatpush.bf16.msrb.mxu1 %v5297_v31  ;;  %v1955_v22 = vld [vmem:[#allocation2 + $0x238] sm:$0x1] }
  0xf2   :  { %302 = vst [vmem:[#allocation2 + $0x220] sm:$0xfe] %v245_v33  ;;  %2805 = vmatpush.bf16.msrb.mxu2 %v5272_v6  ;;  %v5288_v30 = vld [vmem:[%s6490_s3 + $0x318] sm:$0xff] }
  0xf3   :  { %v595_v47 = vpop.f32.mrf.mxu3  ;;  %v578_v48 = vpop.f32.mrf.mxu1  ;;  %v5296_v31 = vld [vmem:[%s6490_s3 + $0x358] sm:$0xff]  ;;  %3106 = vmatpush.bf16.msrb.mxu0 %v5288_v30 }
  0xf4   :  { %v5962_v52 = vadd.f32 %v595_v47, %v551_v42  ;;  %v5964_v53 = vadd.f32 %v578_v48, %v534_v10  ;;  %v2041_v10 = vrot.slane %v1928_v57, 1  ;;  %v2151_v57 = vpack.c.bf16 %v2057_v51, %v2051_v49 }
  0xf5   :  { %1817 = vmatmul.bf16.vlgmr.msra.gmra.mxu2 %v1653_v43  ;;  %v1655_v43 = vpack.c.bf16 %v1631_v27, %v1629_v26  ;;  %v1635_v27 = vld [vmem:[#allocation2 + $0x88] sm:$0xff]  ;;  %3150 = vmatpush.bf16.msrb.mxu1 %v5296_v31  ;;  %v1641_v31 = vld [vmem:[#allocation2 + $0x50] sm:$0xff] }
  0xf6   :  { %1591 = vmatmul.bf16.gmra.mxu1 %v1366_v46  ;;  %v2042_v28 = vsel %vm743_vm0, %v2040_v7, %v2041_v10  ;;  %v5281_v7 = vld [vmem:[%s6490_s3 + $0x2e0] sm:$0xff]  ;;  %v2052_v10 = vrot.slane %v1934_v58, 1 }
  0xf7   :  { %v539_v60 = vpop.f32.mrf.mxu0  ;;  %v2150_v46 = vpack.c.bf16 %v2048_v29, %v2042_v28  ;;  %2848 = vmatpush.bf16.msrb.mxu3 %v5281_v7  ;;  %v2065_v7 = vrot.slane %v1944_v63, 1 }
  0xf8   :  { %1861 = vmatmul.bf16.vlgmr.msra.gmra.mxu3 %v1654_v54  ;;  %v554_v0 = vpop.f32.mrf.mxu2  ;;  %v2054_v28 = vsel %vm743_vm0, %v2052_v10, %v2053_v11  ;;  %v2071_v11 = vrot.slane %v1948_v5, 1  ;;  %v1956_v5 = vld [vmem:[#allocation2 + $0x160] sm:$0x1] }
  0xfa   :  { %2313 = vmatmul.bf16.vlgmr.msra.gmra.mxu0 %v2149_v56  ;;  %v1656_v56 = vpack.c.bf16 %v1632_v45, %v1630_v44 }
  0xfb   :  { %v598_v17 = vpop.f32.mrf.mxu3  ;;  %v580_v14 = vpop.f32.mrf.mxu1 }
  0xfc   :  { %v5977_v19 = vadd.f32 %v598_v17, %v554_v0  ;;  %v5979_v20 = vadd.f32 %v580_v14, %v536_v34  ;;  %v1938_v0 = vld [vmem:[#allocation2 + $0x190] sm:$0xfe] }
  0xfd   :  { %v2058_v13 = vrot.slane %v1938_v0, 1  ;;  %v1941_v14 = vld [vmem:[#allocation2 + $0xd0] sm:$0xfe]  ;;  %v1946_v0 = vld [vmem:[#allocation2] sm:$0xfe] }
  0xfe   :  { %v2061_v33 = vrot.slane %v1941_v14, 1  ;;  %v2070_v10 = vrot.slane %v1946_v0, 1 }
  0xff   :  { %v541_v34 = vpop.f32.mrf.mxu0  ;;  %v2060_v29 = vsel %vm743_vm0, %v2058_v13, %v2059_v15 }
 0x100   :  { %v556_v42 = vpop.f32.mrf.mxu2 }
 0x103   :  { %v600_v47 = vpop.f32.mrf.mxu3  ;;  %v583_v48 = vpop.f32.mrf.mxu1 }
 0x104   :  { %v5993_v54 = vadd.f32 %v600_v47, %v556_v42  ;;  %v5995_v55 = vadd.f32 %v583_v48, %v539_v60  ;;  %v1636_v42 = vld [vmem:[#allocation2] sm:$0xff]  ;;  %v2069_v47 = vsel %vm743_vm0, %v2067_v35, %v2068_v38 }
 0x105   :  { %1822 = vmatmul.bf16.gmra.mxu2 %v1655_v43  ;;  %v2152_v43 = vpack.c.bf16 %v2060_v29, %v2054_v28  ;;  %v1658_v51 = vpack.c.bf16 %v1636_v42, %v1634_v41  ;;  %v2072_v29 = vsel %vm743_vm0, %v2070_v10, %v2071_v11  ;;  %v1640_v41 = vld [vmem:[#allocation2 + $0x98] sm:$0xff] }
 0x106   :  { %2357 = vmatmul.bf16.vlgmr.msra.gmra.mxu1 %v2150_v46 }
 0x107   :  { %v1518_v62 = vpop.f32.mrf.mxu0 }
 0x108   :  { %1866 = vmatmul.bf16.gmra.mxu3 %v1656_v56  ;;  %v1021_v60 = vpop.f32.mrf.mxu2 }
 0x10a   :  { %2318 = vmatmul.bf16.gmra.mxu0 %v2151_v57 }
 0x10b   :  { %v1065_v16 = vpop.f32.mrf.mxu3  ;;  %v585_v17 = vpop.f32.mrf.mxu1 }
 0x10c   :  { %v1066_v18 = vadd.f32 %v1065_v16, %v1021_v60  ;;  %v6009_v21 = vadd.f32 %v585_v17, %v541_v34  ;;  %v2062_v34 = vrot.slane %v1943_v8, 1  ;;  %v1949_v16 = vld [vmem:[#allocation2 + $0x1a8] sm:$0xfe] }
 0x10d   :  { %v1953_v8 = vld [vmem:[#allocation2 + $0x48] sm:$0xfe] }
 0x10e   :  { %v1100_v26 = vadd.f32 %v1066_v18, %v5912_v3  ;;  %v1657_v3 = vpack.c.bf16 %v1635_v27, %v1633_v25  ;;  %v2063_v46 = vsel %vm743_vm0, %v2061_v33, %v2062_v34  ;;  %v1951_v18 = vld [vmem:[#allocation2 + $0x1e8] sm:$0x1]  ;;  %v2073_v33 = vrot.slane %v1949_v16, 1 }
 0x10f   :  { %v1520_v32 = vpop.f32.mrf.mxu0  ;;  %v2153_v58 = vpack.c.bf16 %v2069_v47, %v2063_v46  ;;  %v1637_v27 = vld [vmem:[#allocation2 + $0x1a8] sm:$0xff]  ;;  %v2074_v34 = vrot.slane %v1951_v18, 1  ;;  %v2079_v35 = vrot.slane %v1953_v8, 1  ;;  %v1957_v8 = vld [vmem:[#allocation2 + $0x50] sm:$0xfe] }
 0x110   :  { %v1023_v40 = vpop.f32.mrf.mxu2 }
 0x113   :  { %v1067_v44 = vpop.f32.mrf.mxu3  ;;  %v1562_v45 = vpop.f32.mrf.mxu1 }
 0x114   :  { %v1068_v48 = vadd.f32 %v1067_v44, %v1023_v40  ;;  %v1563_v49 = vadd.f32 %v1562_v45, %v1518_v62  ;;  %v5280_v62 = vld [vmem:[%s6490_s3 + $0x2d8] sm:$0xff]  ;;  %v1659_v40 = vpack.c.bf16 %v1639_v23, %v1637_v27  ;;  %v2075_v45 = vsel %vm743_vm0, %v2073_v33, %v2074_v34  ;;  %v1961_v27 = vld [vmem:[#allocation2 + $0x90] sm:$0xfe] }
 0x115   :  { %1827 = vmatmul.bf16.gmra.mxu2 %v1657_v3  ;;  %2849 = vmatpush.bf16.msrb.mxu3 %v5280_v62  ;;  %v1638_v3 = vld [vmem:[#allocation2 + $0x220] sm:$0xff]  ;;  %v107_v62 = vld [vmem:[%s6491_s0 + $0x68] sm:$0xff] }
 0x116   :  { %v1101_v56 = vadd.f32 %v1068_v48, %v5922_v37  ;;  %v6023_v57 = vadd.f32 %v1563_v49, %v1100_v26  ;;  %2362 = vmatmul.bf16.gmra.mxu1 %v2152_v43  ;;  %v2064_v37 = vrot.slane %v1942_v59, 1  ;;  %v1660_v49 = vpack.c.bf16 %v1640_v41, %v1638_v3 }
 0x117   :  { %v1523_v61 = vpop.f32.mrf.mxu0  ;;  %v2091_v41 = vrot.slane %v1961_v27, 1  ;;  %v1971_v27 = vld [vmem:[#allocation2 + $0x178] sm:$0x1] }
 0x118   :  { %1871 = vmatmul.bf16.gmra.mxu3 %v1658_v51  ;;  %v1026_v60 = vpop.f32.mrf.mxu2  ;;  %v2066_v28 = vsel %vm743_vm0, %v2064_v37, %v2065_v7  ;;  %v1950_v51 = vld [vmem:[#allocation2 + $0x220] sm:$0xfe]  ;;  %v134_v37 = vunpack.c.l.bf16 %v107_v62  ;;  %v135_v7 = vunpack.c.h.bf16 %v107_v62  ;;  %v5270_v62 = vld [vmem:[%s6490_s3 + $0x288] sm:$0xff] }
 0x119   :  { %v2154_v42 = vpack.c.bf16 %v2072_v29, %v2066_v28  ;;  %v2076_v10 = vrot.slane %v1950_v51, 1  ;;  %v1963_v28 = vld [vmem:[#allocation2 + $0x68] sm:$0x1] }
 0x11a   :  { %2323 = vmatmul.bf16.gmra.mxu0 %v2153_v58  ;;  %v1954_v58 = vld [vmem:[#allocation2 + $0x98] sm:$0xfe]  ;;  %v168_v16 = vmul.f32 %v5462_v9, %v134_v37 }
 0x11b   :  { %v1070_v13 = vpop.f32.mrf.mxu3  ;;  %v1564_v15 = vpop.f32.mrf.mxu1 }
 0x11c   :  { %v1071_v17 = vadd.f32 %v1070_v13, %v1026_v60  ;;  %v1565_v14 = vadd.f32 %v1564_v15, %v1520_v32  ;;  %v5271_v60 = vld [vmem:[%s6490_s3 + $0x290] sm:$0xff]  ;;  %v2082_v13 = vrot.slane %v1954_v58, 1  ;;  %v2083_v15 = vrot.slane %v1956_v5, 1 }
 0x11d   :  { %2806 = vmatpush.bf16.msrb.mxu2 %v5271_v60  ;;  %v202_v29 = vadd.f32 %v5474_v12, %v168_v16  ;;  %v5295_v12 = vld [vmem:[%s6490_s3 + $0x350] sm:$0xff] }
 0x11e   :  { %v1102_v25 = vadd.f32 %v1071_v17, %v5940_v4  ;;  %v6032_v26 = vadd.f32 %v1565_v14, %v1101_v56  ;;  %v2080_v4 = vrot.slane %v1955_v22, 1  ;;  %v1952_v56 = vld [vmem:[#allocation2 + $0x1c8] sm:$0x1]  ;;  %v169_v17 = vmul.f32 %v5586_v39, %v135_v7  ;;  %3151 = vmatpush.bf16.msrb.mxu1 %v5295_v12  ;;  %v1960_v7 = vld [vmem:[#allocation2 + $0x1b0] sm:$0x1] }
 0x11f   :  { %v1525_v32 = vpop.f32.mrf.mxu0  ;;  %v2077_v11 = vrot.slane %v1952_v56, 1  ;;  %v2084_v34 = vsel %vm743_vm0, %v2082_v13, %v2083_v15  ;;  %v2089_v13 = vrot.slane %v1960_v7, 1 }
 0x120   :  { %v1028_v38 = vpop.f32.mrf.mxu2  ;;  %v2081_v46 = vsel %vm743_vm0, %v2079_v35, %v2080_v4  ;;  %v203_v30 = vadd.f32 %v5611_v50, %v169_v17  ;;  %v1643_v35 = vld [vmem:[#allocation2 + $0x90] sm:$0xff]  ;;  %v258_v4 = vrot.slane %v202_v29, 7 }
 0x121   :  { %v2155_v0 = vpack.c.bf16 %v2081_v46, %v2075_v45  ;;  %v2078_v33 = vsel %vm743_vm0, %v2076_v10, %v2077_v11  ;;  %v1644_v45 = vld [vmem:[#allocation2 + $0x130] sm:$0xff]  ;;  %2807 = vmatpush.bf16.msrb.mxu2 %v5270_v62  ;;  %v1970_v62 = vld [vmem:[#allocation2 + $0x128] sm:$0xfe] }
 0x122   :  { %v259_v50 = vrot.slane %v203_v30, 7  ;;  %315 = vst [vmem:[#allocation2 + $0x1a0] sm:$0xfe] %v258_v4  ;;  %v2156_v46 = vpack.c.bf16 %v2084_v34, %v2078_v33  ;;  %v1964_v10 = vld [vmem:[#allocation2 + $0x230] sm:$0x1] }
 0x123   :  { %v1072_v43 = vpop.f32.mrf.mxu3  ;;  %v1567_v44 = vpop.f32.mrf.mxu1  ;;  %v2095_v16 = vrot.slane %v1964_v10, 1  ;;  %v1647_v29 = vld [vmem:[#allocation2 + $0x10] sm:$0xff] }
 0x124   :  { %v1073_v47 = vadd.f32 %v1072_v43, %v1028_v38  ;;  %v1568_v48 = vadd.f32 %v1567_v44, %v1523_v61  ;;  %v5279_v61 = vld [vmem:[%s6490_s3 + $0x2d0] sm:$0xff]  ;;  %v1642_v44 = vld [vmem:[#allocation2 + $0x100] sm:$0xff]  ;;  %316 = vst [vmem:[#allocation2 + $0x58] sm:$0xfe] %v259_v50 }
 0x125   :  { %1832 = vmatmul.bf16.gmra.mxu2 %v1659_v40  ;;  %2850 = vmatpush.bf16.msrb.mxu3 %v5279_v61  ;;  %v2085_v40 = vrot.slane %v1957_v8, 1  ;;  %v1958_v61 = vld [vmem:[#allocation2 + $0x100] sm:$0xfe] }
 0x126   :  { %v1103_v59 = vadd.f32 %v1073_v47, %v5950_v2  ;;  %v6045_v63 = vadd.f32 %v1568_v48, %v1102_v25  ;;  %2367 = vmatmul.bf16.gmra.mxu1 %v2154_v42  ;;  %v1959_v25 = vld [vmem:[#allocation2 + $0x30] sm:$0x1]  ;;  %v2092_v42 = vrot.slane %v1963_v28, 1  ;;  %v1645_v28 = vld [vmem:[#allocation2 + $0x1d8] sm:$0xff] }
 0x127   :  { %v1528_v6 = vpop.f32.mrf.mxu0  ;;  %v2086_v3 = vrot.slane %v1959_v25, 1  ;;  %v1969_v25 = vld [vmem:[#allocation2 + $0x10] sm:$0xfe] }
 0x128   :  { %1876 = vmatmul.bf16.gmra.mxu3 %v1660_v49  ;;  %v1031_v2 = vpop.f32.mrf.mxu2  ;;  %v2093_v51 = vsel %vm743_vm0, %v2091_v41, %v2092_v42  ;;  %v2103_v50 = vrot.slane %v1969_v25, 1  ;;  %v1663_v41 = vpack.c.bf16 %v1647_v29, %v1645_v28  ;;  %v1646_v42 = vld [vmem:[#allocation2 + $0x228] sm:$0xff] }
 0x129   :  { %v2087_v49 = vsel %vm743_vm0, %v2085_v40, %v2086_v3  ;;  %v5277_v40 = vld [vmem:[%s6490_s3 + $0x2c0] sm:$0xff] }
 0x12a   :  { %2328 = vmatmul.bf16.gmra.mxu0 %v2155_v0  ;;  %v2157_v60 = vpack.c.bf16 %v2093_v51, %v2087_v49  ;;  %v1651_v28 = vld [vmem:[#allocation2 + $0x1a0] sm:$0xff] }
 0x12b   :  { %v1075_v14 = vpop.f32.mrf.mxu3  ;;  %v1569_v18 = vpop.f32.mrf.mxu1 }
 0x12c   :  { %v1076_v22 = vadd.f32 %v1075_v14, %v1031_v2  ;;  %v1570_v23 = vadd.f32 %v1569_v18, %v1525_v32  ;;  %v5287_v32 = vld [vmem:[%s6490_s3 + $0x310] sm:$0xff]  ;;  %v5278_v2 = vld [vmem:[%s6490_s3 + $0x2c8] sm:$0xff]  ;;  %v1965_v18 = vld [vmem:[#allocation2 + $0x1d8] sm:$0xfe] }
 0x12d   :  { %3107 = vmatpush.bf16.msrb.mxu0 %v5287_v32  ;;  %2851 = vmatpush.bf16.msrb.mxu3 %v5278_v2  ;;  %v5269_v32 = vld [vmem:[%s6490_s3 + $0x280] sm:$0xff]  ;;  %v1972_v2 = vld [vmem:[#allocation2 + $0x208] sm:$0x1] }
 0x12e   :  { %v1104_v9 = vadd.f32 %v1076_v22, %v5964_v53  ;;  %v6063_v39 = vadd.f32 %v1570_v23, %v1103_v59  ;;  %v1661_v53 = vpack.c.bf16 %v1643_v35, %v1641_v31  ;;  %v1662_v59 = vpack.c.bf16 %v1644_v45, %v1642_v44  ;;  %v1967_v23 = vld [vmem:[#allocation2 + $0x218] sm:$0x1]  ;;  %v5294_v35 = vld [vmem:[%s6490_s3 + $0x348] sm:$0xff]  ;;  %2808 = vmatpush.bf16.msrb.mxu2 %v5269_v32 }
 0x12f   :  { %v1530_v38 = vpop.f32.mrf.mxu0  ;;  %v2098_v4 = vrot.slane %v1967_v23, 1  ;;  %3152 = vmatpush.bf16.msrb.mxu1 %v5294_v35  ;;  %v6110_v23 = vld [vmem:[#allocation2 + $0x210] sm:$0xff] }
 0x130   :  { %v1033_v43 = vpop.f32.mrf.mxu2 }
 0x131   :  { %2852 = vmatpush.bf16.msrb.mxu3 %v5277_v40 }
 0x133   :  { %v1077_v47 = vpop.f32.mrf.mxu3  ;;  %v1572_v48 = vpop.f32.mrf.mxu1 }
 0x134   :  { %v1078_v56 = vadd.f32 %v1077_v47, %v1033_v43  ;;  %v1573_v58 = vadd.f32 %v1572_v48, %v1528_v6  ;;  %v1962_v6 = vld [vmem:[#allocation2 + $0x130] sm:$0xfe]  ;;  %v1648_v43 = vld [vmem:[#allocation2 + $0x128] sm:$0xff] }
 0x135   :  { %1837 = vmatmul.bf16.gmra.mxu2 %v1661_v53  ;;  %v2094_v15 = vrot.slane %v1962_v6, 1  ;;  %v1664_v51 = vpack.c.bf16 %v1648_v43, %v1646_v42  ;;  %v5285_v6 = vld [vmem:[%s6490_s3 + $0x300] sm:$0xff] }
 0x136   :  { %v1105_v0 = vadd.f32 %v1078_v56, %v5979_v20  ;;  %v6074_v5 = vadd.f32 %v1573_v58, %v1104_v9  ;;  %2372 = vmatmul.bf16.gmra.mxu1 %v2156_v46  ;;  %v2088_v20 = vrot.slane %v1958_v61, 1  ;;  %v5286_v9 = vld [vmem:[%s6490_s3 + $0x308] sm:$0xff]  ;;  %v1968_v61 = vld [vmem:[#allocation2 + $0x200] sm:$0x1] }
 0x137   :  { %v1533_v37 = vpop.f32.mrf.mxu0  ;;  %v2096_v34 = vsel %vm743_vm0, %v2094_v15, %v2095_v16  ;;  %3108 = vmatpush.bf16.msrb.mxu0 %v5286_v9  ;;  %v2101_v10 = vrot.slane %v1968_v61, 1  ;;  %v1973_v16 = vld [vmem:[#allocation2 + $0x210] sm:$0xfe] }
 0x138   :  { %1881 = vmatmul.bf16.gmra.mxu3 %v1662_v59  ;;  %v1036_v11 = vpop.f32.mrf.mxu2  ;;  %v2090_v33 = vsel %vm743_vm0, %v2088_v20, %v2089_v13  ;;  %v5293_v20 = vld [vmem:[%s6490_s3 + $0x340] sm:$0xff]  ;;  %v2109_v35 = vrot.slane %v1973_v16, 1  ;;  %v1974_v61 = vld [vmem:[#allocation2 + $0x1d0] sm:$0xfe]  ;;  %v2428_v16 = vld [vmem:[#allocation2 + $0x158] sm:$0x3] }
 0x139   :  { %v2158_v53 = vpack.c.bf16 %v2096_v34, %v2090_v33  ;;  %3153 = vmatpush.bf16.msrb.mxu1 %v5293_v20  ;;  %v5308_v33 = vld [vmem:[%s6490_s3 + $0x3b8] sm:$0xff]  ;;  %v2422_v20 = vld [vmem:[#allocation2 + $0xf0] sm:$0xfc] }
 0x13a   :  { %2333 = vmatmul.bf16.gmra.mxu0 %v2157_v60  ;;  %v5316_v34 = vld [vmem:[%s6490_s3 + $0x3f8] sm:$0xff]  ;;  %3598 = vmatpush.bf16.msra.mxu2 %v5308_v33 }
 0x13b   :  { %v1080_v17 = vpop.f32.mrf.mxu3  ;;  %v1574_v14 = vpop.f32.mrf.mxu1  ;;  %3109 = vmatpush.bf16.msrb.mxu0 %v5285_v6  ;;  %3642 = vmatpush.bf16.msra.mxu3 %v5316_v34  ;;  %v5324_v6 = vld [vmem:[%s6490_s3 + $0x438] sm:$0xff] }
 0x13c   :  { %v1081_v8 = vadd.f32 %v1080_v17, %v1036_v11  ;;  %v1575_v22 = vadd.f32 %v1574_v14, %v1530_v38  ;;  %v2104_v38 = vrot.slane %v1971_v27, 1  ;;  %v2106_v11 = vrot.slane %v1970_v62, 1  ;;  %v1976_v62 = vld [vmem:[#allocation2 + $0xc0] sm:$0x1] }
 0x13e   :  { %v1106_v30 = vadd.f32 %v1081_v8, %v5995_v55  ;;  %v6083_v31 = vadd.f32 %v1575_v22, %v1105_v0  ;;  %v2097_v55 = vrot.slane %v1965_v18, 1  ;;  %v2105_v47 = vsel %vm743_vm0, %v2103_v50, %v2104_v38  ;;  %v1966_v0 = vld [vmem:[#allocation2 + $0x228] sm:$0xfe]  ;;  %v1975_v18 = vld [vmem:[#allocation2 + $0x168] sm:$0x1]  ;;  %v6124_v50 = vld [vmem:[#allocation2 + $0x1d0] sm:$0xff] }
 0x13f   :  { %v1535_v12 = vpop.f32.mrf.mxu0  ;;  %v1977_v8 = vld [vmem:[#allocation2 + $0x1a0] sm:$0xfe]  ;;  %v1979_v22 = vld [vmem:[#allocation2 + $0x118] sm:$0x1]  ;;  %v2110_v32 = vrot.slane %v1975_v18, 1  ;;  %v2112_v18 = vrot.slane %v1974_v61, 1  ;;  %4094 = vmatpush.bf16.msra.mxu0 %v5324_v6 }
 0x140   :  { %v1038_v3 = vpop.f32.mrf.mxu2  ;;  %v2099_v46 = vsel %vm743_vm0, %v2097_v55, %v2098_v4  ;;  %v1665_v4 = vpack.c.bf16 %v1651_v28, %v6110_v23  ;;  %v1652_v38 = vld [vmem:[#allocation2 + $0x58] sm:$0xff] }
 0x141   :  { %v2159_v59 = vpack.c.bf16 %v2105_v47, %v2099_v46  ;;  %v2111_v42 = vsel %vm743_vm0, %v2109_v35, %v2110_v32  ;;  %v2421_v46 = vld [vmem:[#allocation2 + $0xe8] sm:$0xfc]  ;;  %v2543_v35 = vrot.slane %v2428_v16, 2  ;;  %v2431_v61 = vld [vmem:[#allocation2 + $0x1f8] sm:$0x3] }
 0x142   :  { %v2434_v16 = vld [vmem:[#allocation2 + $0x190] sm:$0xfc] }
 0x143   :  { %v1082_v44 = vpop.f32.mrf.mxu3  ;;  %v1577_v45 = vpop.f32.mrf.mxu1 }
 0x144   :  { %v1083_v48 = vadd.f32 %v1082_v44, %v1038_v3  ;;  %v1578_v49 = vadd.f32 %v1577_v45, %v1533_v37  ;;  %v2100_v37 = vrot.slane %v1966_v0, 1  ;;  %v1666_v45 = vpack.c.bf16 %v1652_v38, %v6124_v50 }
 0x145   :  { %1842 = vmatmul.bf16.gmra.mxu2 %v1663_v41 }
 0x146   :  { %v1107_v56 = vadd.f32 %v1083_v48, %v6009_v21  ;;  %v6102_v58 = vadd.f32 %v1578_v49, %v1106_v30  ;;  %2377 = vmatmul.bf16.gmra.mxu1 %v2158_v53  ;;  %v2107_v21 = vrot.slane %v1972_v2, 1  ;;  %v2102_v29 = vsel %vm743_vm0, %v2100_v37, %v2101_v10  ;;  %v1978_v2 = vld [vmem:[#allocation2 + $0x58] sm:$0xfe] }
 0x147   :  { %v1538_v60 = vpop.f32.mrf.mxu0  ;;  %v2533_v37 = vrot.slane %v2421_v46, 2  ;;  %v2918_v46 = vld [vmem:[#allocation2 + $0xd8] sm:$0xff] }
 0x148   :  { %1886 = vmatmul.bf16.gmra.mxu3 %v1664_v51  ;;  %v1041_v7 = vpop.f32.mrf.mxu2  ;;  %v2108_v30 = vsel %vm743_vm0, %v2106_v11, %v2107_v21  ;;  %v2423_v51 = vld [vmem:[#allocation2 + $0x70] sm:$0x3] }
 0x149   :  { %v2160_v40 = vpack.c.bf16 %v2108_v30, %v2102_v29  ;;  %v2534_v10 = vrot.slane %v2423_v51, 2  ;;  %v2536_v30 = vrot.slane %v2422_v20, 2 }
 0x14a   :  { %2338 = vmatmul.bf16.gmra.mxu0 %v2159_v59  ;;  %v2427_v59 = vld [vmem:[#allocation2 + $0xb0] sm:$0x3] }
 0x14b   :  { %v1085_v13 = vpop.f32.mrf.mxu3  ;;  %v1579_v15 = vpop.f32.mrf.mxu1  ;;  %v2540_v21 = vrot.slane %v2427_v59, 2  ;;  %v2429_v59 = vld [vmem:[#allocation2 + $0x108] sm:$0xfc] }
 0x14c   :  { %v1086_v17 = vadd.f32 %v1085_v13, %v1041_v7  ;;  %v1580_v14 = vadd.f32 %v1579_v15, %v1535_v12  ;;  %v2115_v12 = vrot.slane %v1977_v8, 1  ;;  %v2424_v13 = vld [vmem:[#allocation2 + $0x120] sm:$0x3]  ;;  %v2426_v15 = vld [vmem:[#allocation2 + $0x18] sm:$0xfc]  ;;  %v2113_v8 = vrot.slane %v1976_v62, 1 }
 0x14d   :  { %v2537_v33 = vrot.slane %v2424_v13, 2  ;;  %v2542_v34 = vrot.slane %v2426_v15, 2  ;;  %v2433_v62 = vld [vmem:[#allocation2 + $0x180] sm:$0xfc]  ;;  %v2430_v13 = vld [vmem:[#allocation2 + $0x110] sm:$0xfc] }
 0x14e   :  { %v1108_v25 = vadd.f32 %v1086_v17, %v5920_v36  ;;  %v6113_v27 = vadd.f32 %v1580_v14, %v1107_v56  ;;  %v2116_v36 = vrot.slane %v1979_v22, 1  ;;  %v2425_v56 = vld [vmem:[#allocation2 + $0xd8] sm:$0xfc]  ;;  %v2118_v22 = vrot.slane %v1978_v2, 1  ;;  %v2432_v15 = vld [vmem:[#allocation2 + $0xb8] sm:$0x3] }
 0x14f   :  { %v1540_v9 = vpop.f32.mrf.mxu0  ;;  %v2539_v11 = vrot.slane %v2425_v56, 2  ;;  %v2114_v38 = vsel %vm743_vm0, %v2112_v18, %v2113_v8 }
 0x150   :  { %v1043_v55 = vpop.f32.mrf.mxu2  ;;  %v2117_v43 = vsel %vm743_vm0, %v2115_v12, %v2116_v36  ;;  %v2535_v36 = vsel %vm1240_vm1, %v2533_v37, %v2534_v10 }
 0x151   :  { %v2161_v49 = vpack.c.bf16 %v2117_v43, %v2111_v42  ;;  %v2538_v42 = vsel %vm1240_vm1, %v2536_v30, %v2537_v33  ;;  %v2544_v43 = vsel %vm1240_vm1, %v2542_v34, %v2543_v35 }
 0x152   :  { %v2646_v56 = vpack.c.bf16 %v2544_v43, %v2538_v42 }
 0x153   :  { %v1087_v3 = vpop.f32.mrf.mxu3  ;;  %v1582_v41 = vpop.f32.mrf.mxu1 }
 0x154   :  { %v1088_v53 = vadd.f32 %v1087_v3, %v1043_v55  ;;  %v1583_v44 = vadd.f32 %v1582_v41, %v1538_v60  ;;  %v1980_v60 = vld [vmem:[#allocation2 + $0x20] sm:$0x1]  ;;  %v2541_v55 = vsel %vm1240_vm1, %v2539_v11, %v2540_v21  ;;  %v2545_v11 = vrot.slane %v2429_v59, 2 }
 0x155   :  { %1847 = vmatmul.bf16.gmra.mxu2 %v1665_v4  ;;  %v5307_v4 = vld [vmem:[%s6490_s3 + $0x3b0] sm:$0xff]  ;;  %v2645_v41 = vpack.c.bf16 %v2541_v55, %v2535_v36  ;;  %v2546_v21 = vrot.slane %v2431_v61, 2  ;;  %v5306_v36 = vld [vmem:[%s6490_s3 + $0x3a8] sm:$0xff] }
 0x156   :  { %v1109_v47 = vadd.f32 %v1088_v53, %v5938_v1  ;;  %v6130_v48 = vadd.f32 %v1583_v44, %v1108_v25  ;;  %2382 = vmatmul.bf16.gmra.mxu1 %v2160_v40  ;;  %v5332_v1 = vld [vmem:[%s6490_s3 + $0x478] sm:$0xff]  ;;  %v2119_v25 = vrot.slane %v1980_v60, 1  ;;  %3599 = vmatpush.bf16.msra.mxu2 %v5307_v4  ;;  %v2435_v60 = vld [vmem:[#allocation2 + $0x140] sm:$0x3]  ;;  %v5314_v55 = vld [vmem:[%s6490_s3 + $0x3e8] sm:$0xff] }
 0x157   :  { %v1543_v0 = vpop.f32.mrf.mxu0  ;;  %4138 = vmatpush.bf16.msra.mxu1 %v5332_v1  ;;  %v5323_v1 = vld [vmem:[%s6490_s3 + $0x430] sm:$0xff]  ;;  %v2552_v20 = vrot.slane %v2435_v60, 2  ;;  %v2547_v35 = vsel %vm1240_vm1, %v2545_v11, %v2546_v21  ;;  %v2919_v4 = vld [vmem:[#allocation2 + $0x18] sm:$0xff]  ;;  %v5322_v60 = vld [vmem:[%s6490_s3 + $0x428] sm:$0xff] }
 0x158   :  { %1891 = vmatmul.bf16.gmra.mxu3 %v1666_v45  ;;  %v1046_v7 = vpop.f32.mrf.mxu2  ;;  %v2120_v40 = vsel %vm743_vm0, %v2118_v22, %v2119_v25  ;;  %4095 = vmatpush.bf16.msra.mxu0 %v5323_v1  ;;  %v2548_v25 = vrot.slane %v2430_v13, 2  ;;  %v2440_v13 = vld [vmem:[#allocation2 + $0x1b8] sm:$0x3] }
 0x159   :  { %v2162_v53 = vpack.c.bf16 %v2120_v40, %v2114_v38 }
 0x15a   :  { %2343 = vmatmul.bf16.gmra.mxu0 %v2161_v49  ;;  %3600 = vmatpush.bf16.msra.mxu2 %v5306_v36  ;;  %v5321_v36 = vld [vmem:[%s6490_s3 + $0x420] sm:$0xff] }
 0x15b   :  { %v1090_v17 = vpop.f32.mrf.mxu3  ;;  %v1584_v14 = vpop.f32.mrf.mxu1 }
 0x15c   :  { %v1091_v28 = vadd.f32 %v1090_v17, %v1046_v7  ;;  %v1585_v29 = vadd.f32 %v1584_v14, %v1540_v9  ;;  %v5315_v9 = vld [vmem:[%s6490_s3 + $0x3f0] sm:$0xff]  ;;  %v2436_v17 = vld [vmem:[#allocation2 + $0x1c0] sm:$0x3]  ;;  %4096 = vmatpush.bf16.msra.mxu0 %v5322_v60 }
 0x15d   :  { %3643 = vmatpush.bf16.msra.mxu3 %v5315_v9  ;;  %v2555_v30 = vrot.slane %v2436_v17, 2  ;;  %v2921_v9 = vld [vmem:[#allocation2 + $0x110] sm:$0xff] }
 0x15e   :  { %v1110_v32 = vadd.f32 %v1091_v28, %v5948_v24  ;;  %v6139_v12 = vadd.f32 %v1585_v29, %v1109_v47  ;;  %v2920_v47 = vld [vmem:[#allocation2 + $0x108] sm:$0xff]  ;;  %v2549_v28 = vrot.slane %v2432_v15, 2  ;;  %v2554_v29 = vrot.slane %v2434_v16, 2  ;;  %v2442_v15 = vld [vmem:[#allocation2] sm:$0xfc] }
 0x15f   :  { %v1545_v3 = vpop.f32.mrf.mxu0  ;;  %v2946_v6 = vpack.c.bf16 %v2920_v47, %v2918_v46  ;;  %v2444_v16 = vld [vmem:[#allocation2 + $0x38] sm:$0x3] }
 0x160   :  { %v1048_v24 = vpop.f32.mrf.mxu2  ;;  %4097 = vmatpush.bf16.msra.mxu0 %v5321_v36  ;;  %v2927_v36 = vld [vmem:[#allocation2] sm:$0xff] }
 0x161   :  { %3644 = vmatpush.bf16.msra.mxu3 %v5314_v55  ;;  %v5329_v55 = vld [vmem:[%s6490_s3 + $0x460] sm:$0xff] }
 0x163   :  { %v1092_v44 = vpop.f32.mrf.mxu3  ;;  %v1587_v45 = vpop.f32.mrf.mxu1 }
 0x164   :  { %v1093_v49 = vadd.f32 %v1092_v44, %v1048_v24  ;;  %v1588_v51 = vadd.f32 %v1587_v45, %v1543_v0  ;;  %v5331_v0 = vld [vmem:[%s6490_s3 + $0x470] sm:$0xff]  ;;  %v2556_v24 = vsel %vm1240_vm1, %v2554_v29, %v2555_v30  ;;  %v2567_v29 = vrot.slane %v2444_v16, 2 }
 0x165   :  { %2809 = vmatmul.bf16.vlgmr.msrb.gmra.mxu2 %v2645_v41  ;;  %4139 = vmatpush.bf16.msra.mxu1 %v5331_v0  ;;  %v2947_v41 = vpack.c.bf16 %v2921_v9, %v2919_v4  ;;  %v2924_v44 = vld [vmem:[#allocation2 + $0xd0] sm:$0xff]  ;;  %v2925_v9 = vld [vmem:[#allocation2 + $0x138] sm:$0xff] }
 0x166   :  { %v1111_v2 = vadd.f32 %v1093_v49, %v5962_v52  ;;  %v6154_v7 = vadd.f32 %v1588_v51, %v1110_v32  ;;  %2387 = vmatmul.bf16.gmra.mxu1 %v2162_v53  ;;  %v2551_v52 = vrot.slane %v2433_v62, 2  ;;  %v2922_v53 = vld [vmem:[#allocation2 + $0x180] sm:$0xff]  ;;  %v2437_v49 = vld [vmem:[#allocation2 + $0xd0] sm:$0xfc]  ;;  %v2443_v62 = vld [vmem:[#allocation2 + $0x188] sm:$0x3] }
 0x167   :  { %v1548_v37 = vpop.f32.mrf.mxu0  ;;  %v2439_v51 = vld [vmem:[#allocation2 + $0x60] sm:$0x3]  ;;  %v2923_v4 = vld [vmem:[#allocation2 + $0x190] sm:$0xff] }
 0x168   :  { %2853 = vmatmul.bf16.vlgmr.msrb.gmra.mxu3 %v2646_v56  ;;  %v1051_v10 = vpop.f32.mrf.mxu2  ;;  %v2553_v32 = vsel %vm1240_vm1, %v2551_v52, %v2552_v20  ;;  %v2441_v56 = vld [vmem:[#allocation2 + $0x88] sm:$0xfc]  ;;  %v2558_v11 = vrot.slane %v2439_v51, 2  ;;  %v2564_v52 = vrot.slane %v2443_v62, 2  ;;  %v2438_v20 = vld [vmem:[#allocation2 + $0x138] sm:$0xfc] }
 0x169   :  { %v2563_v21 = vrot.slane %v2441_v56, 2  ;;  %v2447_v56 = vld [vmem:[#allocation2 + $0x1e8] sm:$0x3]  ;;  %v2451_v62 = vld [vmem:[#allocation2 + $0x238] sm:$0x3] }
 0x16a   :  { %3110 = vmatmul.bf16.vlgmr.msrb.gmra.mxu0 %v2946_v6  ;;  %v5330_v6 = vld [vmem:[%s6490_s3 + $0x468] sm:$0xff] }
 0x16b   :  { %v1095_v14 = vpop.f32.mrf.mxu3  ;;  %v1589_v18 = vpop.f32.mrf.mxu1  ;;  %4140 = vmatpush.bf16.msra.mxu1 %v5330_v6 }
 0x16c   :  { %v1096_v8 = vadd.f32 %v1095_v14, %v1051_v10  ;;  %v1590_v22 = vadd.f32 %v1589_v18, %v1545_v3  ;;  %v2550_v3 = vsel %vm1240_vm1, %v2548_v25, %v2549_v28  ;;  %v2557_v10 = vrot.slane %v2437_v49, 2 }
 0x16d   :  { %v2648_v47 = vpack.c.bf16 %v2556_v24, %v2550_v3  ;;  %v2561_v25 = vrot.slane %v2440_v13, 2  ;;  %v2566_v28 = vrot.slane %v2442_v15, 2  ;;  %v2949_v24 = vpack.c.bf16 %v2925_v9, %v2923_v4 }
 0x16e   :  { %v1112_v33 = vadd.f32 %v1096_v8, %v5977_v19  ;;  %v6163_v34 = vadd.f32 %v1590_v22, %v1111_v2  ;;  %v2647_v19 = vpack.c.bf16 %v2553_v32, %v2547_v35  ;;  %v2948_v2 = vpack.c.bf16 %v2924_v44, %v2922_v53  ;;  %v2928_v53 = vld [vmem:[#allocation2 + $0x1a8] sm:$0xff] }
 0x16f   :  { %v1550_v38 = vpop.f32.mrf.mxu0  ;;  %v2560_v22 = vrot.slane %v2438_v20, 2  ;;  %v2559_v35 = vsel %vm1240_vm1, %v2557_v10, %v2558_v11  ;;  %v2565_v32 = vsel %vm1240_vm1, %v2563_v21, %v2564_v52  ;;  %4141 = vmatpush.bf16.msra.mxu1 %v5329_v55  ;;  %v2568_v3 = vsel %vm1240_vm1, %v2566_v28, %v2567_v29  ;;  %v2446_v11 = vld [vmem:[#allocation2 + $0x220] sm:$0xfc]  ;;  %v2448_v21 = vld [vmem:[#allocation2 + $0x1c8] sm:$0x3] }
 0x170   :  { %v1053_v40 = vpop.f32.mrf.mxu2  ;;  %v2576_v10 = vrot.slane %v2451_v62, 2  ;;  %v2450_v52 = vld [vmem:[#allocation2 + $0x98] sm:$0xfc]  ;;  %v2452_v20 = vld [vmem:[#allocation2 + $0x160] sm:$0x3]  ;;  %v5303_v62 = vld [vmem:[%s6490_s3 + $0x390] sm:$0xff] }
 0x171   :  { %v2929_v55 = vld [vmem:[#allocation2 + $0x220] sm:$0xff] }
 0x173   :  { %v1097_v42 = vpop.f32.mrf.mxu3  ;;  %v1592_v43 = vpop.f32.mrf.mxu1 }
 0x174   :  { %v1098_v45 = vadd.f32 %v1097_v42, %v1053_v40  ;;  %v1593_v46 = vadd.f32 %v1592_v43, %v1548_v37  ;;  %v5313_v37 = vld [vmem:[%s6490_s3 + $0x3e0] sm:$0xff]  ;;  %v2926_v43 = vld [vmem:[#allocation2 + $0x88] sm:$0xff] }
 0x175   :  { %2814 = vmatmul.bf16.gmra.mxu2 %v2647_v19  ;;  %3645 = vmatpush.bf16.msra.mxu3 %v5313_v37  ;;  %v2562_v19 = vsel %vm1240_vm1, %v2560_v22, %v2561_v25  ;;  %v2579_v22 = vrot.slane %v2452_v20, 2 }
 0x176   :  { %v1113_v59 = vadd.f32 %v1098_v45, %v5993_v54  ;;  %v6176_v61 = vadd.f32 %v1593_v46, %v1112_v33  ;;  %3154 = vmatmul.bf16.vlgmr.msrb.gmra.mxu1 %v2947_v41  ;;  %v5305_v54 = vld [vmem:[%s6490_s3 + $0x3a0] sm:$0xff]  ;;  %v2650_v46 = vpack.c.bf16 %v2568_v3, %v2562_v19 }
 0x177   :  { %v2314_v1 = vpop.f32.mrf.mxu0  ;;  %3601 = vmatpush.bf16.msra.mxu2 %v5305_v54 }
 0x178   :  { %2858 = vmatmul.bf16.gmra.mxu3 %v2648_v47  ;;  %v1818_v0 = vpop.f32.mrf.mxu2  ;;  %v2445_v47 = vld [vmem:[#allocation2 + $0x1a8] sm:$0xfc] }
 0x179   :  { %v2569_v54 = vrot.slane %v2445_v47, 2 }
 0x17a   :  { %3115 = vmatmul.bf16.gmra.mxu0 %v2948_v2  ;;  %v2950_v2 = vpack.c.bf16 %v2928_v53, %v2926_v43  ;;  %v2453_v53 = vld [vmem:[#allocation2 + $0x50] sm:$0xfc] }
 0x17b   :  { %v1862_v17 = vpop.f32.mrf.mxu3  ;;  %v1594_v14 = vpop.f32.mrf.mxu1 }
 0x17c   :  { %v1863_v18 = vadd.f32 %v1862_v17, %v1818_v0  ;;  %v1595_v8 = vadd.f32 %v1594_v14, %v1550_v38  ;;  %v5304_v0 = vld [vmem:[%s6490_s3 + $0x398] sm:$0xff]  ;;  %v2572_v14 = vrot.slane %v2446_v11, 2  ;;  %v2460_v11 = vld [vmem:[#allocation2 + $0x230] sm:$0x3] }
 0x17d   :  { %3602 = vmatpush.bf16.msra.mxu2 %v5304_v0 }
 0x17e   :  { %v1897_v30 = vadd.f32 %v1863_v18, %v6023_v57  ;;  %v6191_v33 = vadd.f32 %v1595_v8, %v1113_v59  ;;  %v2649_v57 = vpack.c.bf16 %v2565_v32, %v2559_v35  ;;  %v2449_v59 = vld [vmem:[#allocation2 + $0x48] sm:$0xfc]  ;;  %v2573_v18 = vrot.slane %v2448_v21, 2  ;;  %v5320_v35 = vld [vmem:[%s6490_s3 + $0x418] sm:$0xff] }
 0x17f   :  { %v2316_v38 = vpop.f32.mrf.mxu0  ;;  %v2575_v37 = vrot.slane %v2449_v59, 2  ;;  %v2578_v8 = vrot.slane %v2450_v52, 2  ;;  %v5328_v32 = vld [vmem:[%s6490_s3 + $0x458] sm:$0xff]  ;;  %4098 = vmatpush.bf16.msra.mxu0 %v5320_v35  ;;  %v2933_v35 = vld [vmem:[#allocation2 + $0x100] sm:$0xff] }
 0x180   :  { %v1820_v40 = vpop.f32.mrf.mxu2  ;;  %4142 = vmatpush.bf16.msra.mxu1 %v5328_v32 }
 0x181   :  { %3603 = vmatpush.bf16.msra.mxu2 %v5303_v62 }
 0x183   :  { %v1864_v41 = vpop.f32.mrf.mxu3  ;;  %v2358_v42 = vpop.f32.mrf.mxu1 }
 0x184   :  { %v1865_v44 = vadd.f32 %v1864_v41, %v1820_v40  ;;  %v2359_v45 = vadd.f32 %v2358_v42, %v2314_v1  ;;  %v5312_v1 = vld [vmem:[%s6490_s3 + $0x3d8] sm:$0xff]  ;;  %v2580_v40 = vsel %vm1240_vm1, %v2578_v8, %v2579_v22 }
 0x185   :  { %2819 = vmatmul.bf16.gmra.mxu2 %v2649_v57  ;;  %3646 = vmatpush.bf16.msra.mxu3 %v5312_v1  ;;  %v2951_v57 = vpack.c.bf16 %v2929_v55, %v2927_v36 }
 0x186   :  { %v1898_v49 = vadd.f32 %v1865_v44, %v6032_v26  ;;  %v6204_v51 = vadd.f32 %v2359_v45, %v1897_v30  ;;  %3159 = vmatmul.bf16.gmra.mxu1 %v2949_v24  ;;  %v2570_v26 = vrot.slane %v2447_v56, 2  ;;  %v2577_v30 = vsel %vm1240_vm1, %v2575_v37, %v2576_v10  ;;  %v2932_v24 = vld [vmem:[#allocation2 + $0x50] sm:$0xff]  ;;  %v6228_v56 = vld [vmem:[#allocation2 + $0xc8] sm:$0xff] }
 0x187   :  { %v2319_v60 = vpop.f32.mrf.mxu0  ;;  %v2455_v44 = vld [vmem:[#allocation2 + $0x30] sm:$0x3]  ;;  %v2457_v45 = vld [vmem:[#allocation2 + $0x90] sm:$0xfc]  ;;  %v2952_v59 = vpack.c.bf16 %v2932_v24, %v6228_v56 }
 0x188   :  { %2863 = vmatmul.bf16.gmra.mxu3 %v2650_v46  ;;  %v1823_v6 = vpop.f32.mrf.mxu2  ;;  %v2571_v29 = vsel %vm1240_vm1, %v2569_v54, %v2570_v26  ;;  %v2582_v0 = vrot.slane %v2455_v44, 2  ;;  %v2587_v1 = vrot.slane %v2457_v45, 2  ;;  %v2454_v26 = vld [vmem:[#allocation2 + $0x100] sm:$0xfc]  ;;  %v2456_v37 = vld [vmem:[#allocation2 + $0x1b0] sm:$0x3] }
 0x189   :  { %v2458_v10 = vld [vmem:[#allocation2 + $0x130] sm:$0xfc]  ;;  %v2467_v45 = vld [vmem:[#allocation2 + $0x178] sm:$0x3] }
 0x18a   :  { %3120 = vmatmul.bf16.gmra.mxu0 %v2950_v2  ;;  %v5311_v2 = vld [vmem:[%s6490_s3 + $0x3d0] sm:$0xff] }
 0x18b   :  { %v1867_v13 = vpop.f32.mrf.mxu3  ;;  %v2360_v15 = vpop.f32.mrf.mxu1  ;;  %3647 = vmatpush.bf16.msra.mxu3 %v5311_v2 }
 0x18c   :  { %v1868_v16 = vadd.f32 %v1867_v13, %v1823_v6  ;;  %v2361_v17 = vadd.f32 %v2360_v15, %v2316_v38  ;;  %v2574_v38 = vsel %vm1240_vm1, %v2572_v14, %v2573_v18  ;;  %v2584_v15 = vrot.slane %v2454_v26, 2  ;;  %v2468_v26 = vld [vmem:[#allocation2 + $0x208] sm:$0x3] }
 0x18d   :  { %v2652_v43 = vpack.c.bf16 %v2580_v40, %v2574_v38  ;;  %v2591_v14 = vrot.slane %v2460_v11, 2  ;;  %v2934_v40 = vld [vmem:[#allocation2 + $0x90] sm:$0xff] }
 0x18e   :  { %v1899_v25 = vadd.f32 %v1868_v16, %v6045_v63  ;;  %v6213_v28 = vadd.f32 %v2361_v17, %v1898_v49  ;;  %v2651_v63 = vpack.c.bf16 %v2577_v30, %v2571_v29  ;;  %v2459_v49 = vld [vmem:[#allocation2 + $0x68] sm:$0x3]  ;;  %v2585_v16 = vrot.slane %v2456_v37, 2  ;;  %v5319_v29 = vld [vmem:[%s6490_s3 + $0x410] sm:$0xff] }
 0x18f   :  { %v2321_v4 = vpop.f32.mrf.mxu0  ;;  %v2588_v54 = vrot.slane %v2459_v49, 2  ;;  %v2590_v17 = vrot.slane %v2458_v10, 2  ;;  %v5327_v30 = vld [vmem:[%s6490_s3 + $0x450] sm:$0xff]  ;;  %4099 = vmatpush.bf16.msra.mxu0 %v5319_v29  ;;  %v5302_v49 = vld [vmem:[%s6490_s3 + $0x388] sm:$0xff]  ;;  %v5301_v29 = vld [vmem:[%s6490_s3 + $0x380] sm:$0xff] }
 0x190   :  { %v1825_v9 = vpop.f32.mrf.mxu2  ;;  %4143 = vmatpush.bf16.msra.mxu1 %v5327_v30  ;;  %v2586_v55 = vsel %vm1240_vm1, %v2584_v15, %v2585_v16  ;;  %3604 = vmatpush.bf16.msra.mxu2 %v5302_v49  ;;  %v2603_v15 = vrot.slane %v2468_v26, 2  ;;  %v2935_v30 = vld [vmem:[#allocation2 + $0x130] sm:$0xff] }
 0x193   :  { %v1869_v19 = vpop.f32.mrf.mxu3  ;;  %v2363_v3 = vpop.f32.mrf.mxu1 }
 0x194   :  { %v1870_v41 = vadd.f32 %v1869_v19, %v1825_v9  ;;  %v2364_v42 = vadd.f32 %v2363_v3, %v2319_v60  ;;  %v2953_v9 = vpack.c.bf16 %v2933_v35, %v6228_v56  ;;  %3605 = vmatpush.bf16.msra.mxu2 %v5301_v29 }
 0x195   :  { %2824 = vmatmul.bf16.gmra.mxu2 %v2651_v63 }
 0x196   :  { %v1900_v46 = vadd.f32 %v1870_v41, %v6063_v39  ;;  %v6226_v47 = vadd.f32 %v2364_v42, %v1899_v25  ;;  %3164 = vmatmul.bf16.gmra.mxu1 %v2951_v57  ;;  %v2581_v39 = vrot.slane %v2453_v53, 2  ;;  %v2589_v25 = vsel %vm1240_vm1, %v2587_v1, %v2588_v54  ;;  %v2936_v57 = vld [vmem:[#allocation2 + $0x1d8] sm:$0xff]  ;;  %v2464_v1 = vld [vmem:[#allocation2 + $0x200] sm:$0x3]  ;;  %v2466_v54 = vld [vmem:[#allocation2 + $0x128] sm:$0xfc] }
 0x197   :  { %v2324_v60 = vpop.f32.mrf.mxu0  ;;  %v2461_v41 = vld [vmem:[#allocation2 + $0x1d8] sm:$0xfc]  ;;  %v2463_v42 = vld [vmem:[#allocation2 + $0x218] sm:$0x3] }
 0x198   :  { %2868 = vmatmul.bf16.gmra.mxu3 %v2652_v43  ;;  %v1828_v6 = vpop.f32.mrf.mxu2  ;;  %v2583_v22 = vsel %vm1240_vm1, %v2581_v39, %v2582_v0  ;;  %v2465_v43 = vld [vmem:[#allocation2 + $0x10] sm:$0xfc]  ;;  %v2600_v39 = vrot.slane %v2467_v45, 2  ;;  %v2462_v0 = vld [vmem:[#allocation2 + $0x228] sm:$0xfc] }
 0x199   :  { %v2475_v45 = vld [vmem:[#allocation2 + $0x118] sm:$0x3] }
 0x19a   :  { %3125 = vmatmul.bf16.gmra.mxu0 %v2952_v59  ;;  %v5310_v59 = vld [vmem:[%s6490_s3 + $0x3c8] sm:$0xff] }
 0x19b   :  { %v1872_v21 = vpop.f32.mrf.mxu3  ;;  %v2365_v52 = vpop.f32.mrf.mxu1  ;;  %3648 = vmatpush.bf16.msra.mxu3 %v5310_v59 }
 0x19c   :  { %v1873_v20 = vadd.f32 %v1872_v21, %v1828_v6  ;;  %v2366_v13 = vadd.f32 %v2365_v52, %v2321_v4  ;;  %v2592_v4 = vsel %vm1240_vm1, %v2590_v17, %v2591_v14  ;;  %v2594_v6 = vrot.slane %v2463_v42, 2 }
 0x19d   :  { %v2654_v24 = vpack.c.bf16 %v2592_v4, %v2586_v55  ;;  %v2596_v52 = vrot.slane %v2462_v0, 2  ;;  %v2472_v0 = vld [vmem:[#allocation2 + $0xc0] sm:$0x3] }
 0x19e   :  { %v1901_v18 = vadd.f32 %v1873_v20, %v6074_v5  ;;  %v6238_v8 = vadd.f32 %v2366_v13, %v1900_v46  ;;  %v2653_v5 = vpack.c.bf16 %v2589_v25, %v2583_v22  ;;  %v2954_v46 = vpack.c.bf16 %v2936_v57, %v2934_v40  ;;  %v5318_v22 = vld [vmem:[%s6490_s3 + $0x408] sm:$0xff]  ;;  %v2938_v40 = vld [vmem:[#allocation2 + $0x10] sm:$0xff] }
 0x19f   :  { %v2326_v32 = vpop.f32.mrf.mxu0  ;;  %v2597_v20 = vrot.slane %v2464_v1, 2  ;;  %v2602_v13 = vrot.slane %v2466_v54, 2  ;;  %v5326_v25 = vld [vmem:[%s6490_s3 + $0x448] sm:$0xff]  ;;  %4100 = vmatpush.bf16.msra.mxu0 %v5318_v22  ;;  %v2474_v1 = vld [vmem:[#allocation2 + $0x58] sm:$0xfc] }
 0x1a0   :  { %v1830_v36 = vpop.f32.mrf.mxu2  ;;  %4144 = vmatpush.bf16.msra.mxu1 %v5326_v25  ;;  %v2476_v54 = vld [vmem:[#allocation2 + $0x20] sm:$0x3] }
 0x1a1   :  { %v2598_v55 = vsel %vm1240_vm1, %v2596_v52, %v2597_v20  ;;  %v2604_v4 = vsel %vm1240_vm1, %v2602_v13, %v2603_v15  ;;  %v2614_v52 = vrot.slane %v2474_v1, 2  ;;  %v2615_v20 = vrot.slane %v2476_v54, 2 }
 0x1a3   :  { %v1874_v63 = vpop.f32.mrf.mxu3  ;;  %v2368_v38 = vpop.f32.mrf.mxu1 }
 0x1a4   :  { %v1875_v19 = vadd.f32 %v1874_v63, %v1830_v36  ;;  %v2369_v3 = vadd.f32 %v2368_v38, %v2324_v60  ;;  %v2593_v60 = vrot.slane %v2461_v41, 2 }
 0x1a5   :  { %2829 = vmatmul.bf16.gmra.mxu2 %v2653_v5 }
 0x1a6   :  { %v1902_v53 = vadd.f32 %v1875_v19, %v6083_v31  ;;  %v6252_v44 = vadd.f32 %v2369_v3, %v1901_v18  ;;  %3169 = vmatmul.bf16.gmra.mxu1 %v2953_v9  ;;  %v2599_v31 = vrot.slane %v2465_v43, 2  ;;  %v2595_v14 = vsel %vm1240_vm1, %v2593_v60, %v2594_v6  ;;  %v2471_v43 = vld [vmem:[#allocation2 + $0x168] sm:$0x3] }
 0x1a7   :  { %v2329_v62 = vpop.f32.mrf.mxu0  ;;  %v2656_v3 = vpack.c.bf16 %v2604_v4, %v2598_v55  ;;  %v2606_v60 = vrot.slane %v2471_v43, 2 }
 0x1a8   :  { %2873 = vmatmul.bf16.gmra.mxu3 %v2654_v24  ;;  %v1833_v2 = vpop.f32.mrf.mxu2  ;;  %v2601_v18 = vsel %vm1240_vm1, %v2599_v31, %v2600_v39  ;;  %v2469_v24 = vld [vmem:[#allocation2 + $0x210] sm:$0xfc]  ;;  %v2612_v31 = vrot.slane %v2475_v45, 2 }
 0x1a9   :  { %v2655_v5 = vpack.c.bf16 %v2601_v18, %v2595_v14  ;;  %v2470_v39 = vld [vmem:[#allocation2 + $0x1d0] sm:$0xfc]  ;;  %v2939_v18 = vld [vmem:[#allocation2 + $0x128] sm:$0xff] }
 0x1aa   :  { %3130 = vmatmul.bf16.gmra.mxu0 %v2954_v46  ;;  %v2956_v46 = vpack.c.bf16 %v6110_v23, %v2938_v40 }
 0x1ab   :  { %v1877_v37 = vpop.f32.mrf.mxu3  ;;  %v2370_v10 = vpop.f32.mrf.mxu1 }
 0x1ac   :  { %v1878_v11 = vadd.f32 %v1877_v37, %v1833_v2  ;;  %v2371_v21 = vadd.f32 %v2370_v10, %v2326_v32  ;;  %v5309_v32 = vld [vmem:[%s6490_s3 + $0x3c0] sm:$0xff] }
 0x1ad   :  { %3649 = vmatpush.bf16.msra.mxu3 %v5309_v32  ;;  %v5325_v2 = vld [vmem:[%s6490_s3 + $0x440] sm:$0xff] }
 0x1ae   :  { %v1903_v16 = vadd.f32 %v1878_v11, %v6102_v58  ;;  %v6261_v17 = vadd.f32 %v2371_v21, %v1902_v53  ;;  %v2937_v58 = vld [vmem:[#allocation2 + $0x228] sm:$0xff]  ;;  %v2473_v53 = vld [vmem:[#allocation2 + $0x1a0] sm:$0xfc]  ;;  %4145 = vmatpush.bf16.msra.mxu1 %v5325_v2  ;;  %v2608_v11 = vrot.slane %v2470_v39, 2  ;;  %v2609_v21 = vrot.slane %v2472_v0, 2 }
 0x1af   :  { %v2331_v35 = vpop.f32.mrf.mxu0  ;;  %v2955_v9 = vpack.c.bf16 %v2937_v58, %v2935_v30  ;;  %v2611_v6 = vrot.slane %v2473_v53, 2  ;;  %v2616_v58 = vsel %vm1240_vm1, %v2614_v52, %v2615_v20  ;;  %v3718_v39 = vld [vmem:[#allocation2 + $0x108] sm:$0xfc]  ;;  %v3720_v0 = vld [vmem:[#allocation2 + $0x1f8] sm:$0x3] }
 0x1b0   :  { %v1835_v36 = vpop.f32.mrf.mxu2  ;;  %v2610_v30 = vsel %vm1240_vm1, %v2608_v11, %v2609_v21  ;;  %v2943_v52 = vld [vmem:[#allocation2 + $0x58] sm:$0xff] }
 0x1b1   :  { %v2613_v14 = vsel %vm1240_vm1, %v2611_v6, %v2612_v31  ;;  %v2658_v4 = vpack.c.bf16 %v2616_v58, %v2610_v30  ;;  %v3716_v31 = vld [vmem:[#allocation2 + $0xb0] sm:$0x3] }
 0x1b3   :  { %v1879_v63 = vpop.f32.mrf.mxu3  ;;  %v2373_v38 = vpop.f32.mrf.mxu1 }
 0x1b4   :  { %v1880_v57 = vadd.f32 %v1879_v63, %v1835_v36  ;;  %v2374_v19 = vadd.f32 %v2373_v38, %v2329_v62  ;;  %v5317_v62 = vld [vmem:[%s6490_s3 + $0x400] sm:$0xff] }
 0x1b5   :  { %2834 = vmatmul.bf16.gmra.mxu2 %v2655_v5  ;;  %4101 = vmatpush.bf16.msra.mxu0 %v5317_v62  ;;  %v2942_v5 = vld [vmem:[#allocation2 + $0x1a0] sm:$0xff] }
 0x1b6   :  { %v1904_v41 = vadd.f32 %v1880_v57, %v6113_v27  ;;  %v6280_v42 = vadd.f32 %v2374_v19, %v1903_v16  ;;  %3174 = vmatmul.bf16.gmra.mxu1 %v2955_v9  ;;  %v2605_v27 = vrot.slane %v2469_v24, 2  ;;  %v3218_v9 = vld [vmem:[#allocation2 + $0xd8] sm:$0xfe]  ;;  %v2958_v40 = vpack.c.bf16 %v6228_v56, %v2942_v5  ;;  %v3220_v57 = vld [vmem:[#allocation2 + $0xb0] sm:$0x1] }
 0x1b7   :  { %v2334_v49 = vpop.f32.mrf.mxu0  ;;  %v3222_v19 = vld [vmem:[#allocation2 + $0x108] sm:$0xfe]  ;;  %v3331_v43 = vrot.slane %v3220_v57, 1  ;;  %v3230_v57 = vld [vmem:[#allocation2 + $0xd0] sm:$0xfe] }
 0x1b8   :  { %2878 = vmatmul.bf16.gmra.mxu3 %v2656_v3  ;;  %v1838_v59 = vpop.f32.mrf.mxu2  ;;  %v2607_v16 = vsel %vm1240_vm1, %v2605_v27, %v2606_v60  ;;  %v3224_v3 = vld [vmem:[#allocation2 + $0x1f8] sm:$0x1]  ;;  %v3336_v53 = vrot.slane %v3222_v19, 1  ;;  %v3714_v27 = vld [vmem:[#allocation2 + $0xd8] sm:$0xfc] }
 0x1b9   :  { %v2657_v29 = vpack.c.bf16 %v2613_v14, %v2607_v16  ;;  %v3337_v45 = vrot.slane %v3224_v3, 1  ;;  %v3827_v16 = vrot.slane %v3716_v31, 2  ;;  %v3832_v14 = vrot.slane %v3718_v39, 2  ;;  %v3232_v19 = vld [vmem:[#allocation2 + $0x60] sm:$0x1] }
 0x1ba   :  { %3135 = vmatmul.bf16.gmra.mxu0 %v2956_v46  ;;  %v3219_v46 = vld [vmem:[#allocation2 + $0x18] sm:$0xfe] }
 0x1bb   :  { %v1882_v23 = vpop.f32.mrf.mxu3  ;;  %v2375_v26 = vpop.f32.mrf.mxu1  ;;  %v3333_v1 = vrot.slane %v3219_v46, 1  ;;  %v3338_v21 = vsel %vm743_vm0, %v3336_v53, %v3337_v45  ;;  %v3715_v3 = vld [vmem:[#allocation2 + $0x18] sm:$0xfc]  ;;  %v3721_v53 = vld [vmem:[#allocation2 + $0xb8] sm:$0x3] }
 0x1bc   :  { %v1883_v37 = vadd.f32 %v1882_v23, %v1838_v59  ;;  %v2376_v10 = vadd.f32 %v2375_v26, %v2331_v35  ;;  %v2957_v35 = vpack.c.bf16 %v6124_v50, %v2939_v18  ;;  %v3223_v59 = vld [vmem:[#allocation2 + $0x110] sm:$0xfe]  ;;  %v3833_v18 = vrot.slane %v3720_v0, 2 }
 0x1bd   :  { %v3339_v23 = vrot.slane %v3223_v59, 1  ;;  %v3348_v59 = vrot.slane %v3230_v57, 1  ;;  %v3836_v31 = vrot.slane %v3721_v53, 2  ;;  %v3238_v53 = vld [vmem:[#allocation2 + $0x1a8] sm:$0xfe] }
 0x1be   :  { %v1905_v13 = vadd.f32 %v1883_v37, %v6130_v48  ;;  %v6290_v15 = vadd.f32 %v2376_v10, %v1904_v41  ;;  %v3330_v41 = vrot.slane %v3218_v9, 1  ;;  %v3228_v9 = vld [vmem:[#allocation2 + $0x140] sm:$0x1] }
 0x1bf   :  { %v2336_v22 = vpop.f32.mrf.mxu0  ;;  %v3343_v46 = vrot.slane %v3228_v9, 1 }
 0x1c0   :  { %v1840_v25 = vpop.f32.mrf.mxu2  ;;  %v3332_v11 = vsel %vm743_vm0, %v3330_v41, %v3331_v43  ;;  %v3717_v41 = vld [vmem:[#allocation2 + $0x158] sm:$0x3]  ;;  %v3719_v43 = vld [vmem:[#allocation2 + $0x110] sm:$0xfc] }
 0x1c3   :  { %v1884_v32 = vpop.f32.mrf.mxu3  ;;  %v2378_v36 = vpop.f32.mrf.mxu1 }
 0x1c4   :  { %v1885_v48 = vadd.f32 %v1884_v32, %v1840_v25  ;;  %v2379_v55 = vadd.f32 %v2378_v36, %v2334_v49  ;;  %v3221_v49 = vld [vmem:[#allocation2 + $0x158] sm:$0x1]  ;;  %v3442_v25 = vpack.c.bf16 %v3338_v21, %v3332_v11  ;;  %v3834_v36 = vsel %vm1240_vm1, %v3832_v14, %v3833_v18  ;;  %v3724_v11 = vld [vmem:[#allocation2 + $0x140] sm:$0x3]  ;;  %v3726_v21 = vld [vmem:[#allocation2 + $0xd0] sm:$0xfc] }
 0x1c5   :  { %2839 = vmatmul.bf16.gmra.mxu2 %v2657_v29  ;;  %v3334_v54 = vrot.slane %v3221_v49, 1  ;;  %v3227_v49 = vld [vmem:[#allocation2 + $0x190] sm:$0xfe] }
 0x1c6   :  { %v1906_v63 = vadd.f32 %v1885_v48, %v6139_v12  ;;  %v6298_v38 = vadd.f32 %v2379_v55, %v1905_v13  ;;  %3179 = vmatmul.bf16.gmra.mxu1 %v2957_v35  ;;  %v3225_v12 = vld [vmem:[#allocation2 + $0xb8] sm:$0x1]  ;;  %v3826_v13 = vrot.slane %v3714_v27, 2  ;;  %v3829_v27 = vrot.slane %v3715_v3, 2 }
 0x1c7   :  { %v2339_v24 = vpop.f32.mrf.mxu0  ;;  %v3340_v26 = vrot.slane %v3225_v12, 1  ;;  %v3335_v29 = vsel %vm743_vm0, %v3333_v1, %v3334_v54  ;;  %v3349_v12 = vrot.slane %v3232_v19, 1  ;;  %v3345_v1 = vrot.slane %v3227_v49, 1  ;;  %v3722_v54 = vld [vmem:[#allocation2 + $0x180] sm:$0xfc] }
 0x1c8   :  { %2883 = vmatmul.bf16.gmra.mxu3 %v2658_v4  ;;  %v1843_v50 = vpop.f32.mrf.mxu2  ;;  %v3828_v32 = vsel %vm1240_vm1, %v3826_v13, %v3827_v16  ;;  %v3226_v4 = vld [vmem:[#allocation2 + $0x180] sm:$0xfe] }
 0x1c9   :  { %v3341_v30 = vsel %vm743_vm0, %v3339_v23, %v3340_v26  ;;  %v3350_v13 = vsel %vm743_vm0, %v3348_v59, %v3349_v12  ;;  %v3723_v59 = vld [vmem:[#allocation2 + $0x190] sm:$0xfc] }
 0x1ca   :  { %3140 = vmatmul.bf16.gmra.mxu0 %v2958_v40  ;;  %v3443_v55 = vpack.c.bf16 %v3341_v30, %v3335_v29 }
 0x1cb   :  { %v1887_v62 = vpop.f32.mrf.mxu3  ;;  %v2380_v2 = vpop.f32.mrf.mxu1 }
 0x1cc   :  { %v1888_v60 = vadd.f32 %v1887_v62, %v1843_v50  ;;  %v2381_v6 = vadd.f32 %v2380_v2, %v2336_v22  ;;  %v3229_v62 = vld [vmem:[#allocation2 + $0x1c0] sm:$0x1]  ;;  %v3233_v2 = vld [vmem:[#allocation2 + $0x1b8] sm:$0x1] }
 0x1cd   :  { %v3346_v16 = vrot.slane %v3229_v62, 1  ;;  %v3352_v18 = vrot.slane %v3233_v2, 1  ;;  %v3725_v62 = vld [vmem:[#allocation2 + $0x1c0] sm:$0x3]  ;;  %v3729_v2 = vld [vmem:[#allocation2 + $0x1b8] sm:$0x3] }
 0x1ce   :  { %v1907_v37 = vadd.f32 %v1888_v60, %v6154_v7  ;;  %v6302_v10 = vadd.f32 %v2381_v6, %v1906_v63  ;;  %v2959_v7 = vpack.c.bf16 %v6228_v56, %v2943_v52  ;;  %v3938_v56 = vpack.c.bf16 %v3834_v36, %v3828_v32  ;;  %v3728_v52 = vld [vmem:[#allocation2 + $0x60] sm:$0x3] }
 0x1cf   :  { %v2341_v20 = vpop.f32.mrf.mxu0  ;;  %v3830_v60 = vrot.slane %v3717_v41, 2  ;;  %v3835_v6 = vrot.slane %v3719_v43, 2  ;;  %v3845_v32 = vrot.slane %v3728_v52, 2  ;;  %v3234_v41 = vld [vmem:[#allocation2 + $0x88] sm:$0xfe] }
 0x1d0   :  { %v1845_v22 = vpop.f32.mrf.mxu2  ;;  %v3236_v43 = vld [vmem:[#allocation2 + $0x188] sm:$0x1] }
 0x1d1   :  { %v3831_v29 = vsel %vm1240_vm1, %v3829_v27, %v3830_v60  ;;  %v3837_v30 = vsel %vm1240_vm1, %v3835_v6, %v3836_v31  ;;  %v3355_v60 = vrot.slane %v3236_v43, 1  ;;  %v3360_v6 = vrot.slane %v3238_v53, 1 }
 0x1d3   :  { %v1889_v58 = vpop.f32.mrf.mxu3  ;;  %v2383_v35 = vpop.f32.mrf.mxu1 }
 0x1d4   :  { %v1890_v5 = vadd.f32 %v1889_v58, %v1845_v22  ;;  %v2384_v48 = vadd.f32 %v2383_v35, %v2339_v24  ;;  %v3342_v24 = vrot.slane %v3226_v4, 1  ;;  %v3839_v58 = vrot.slane %v3724_v11, 2 }
 0x1d5   :  { %3606 = vmatmul.bf16.vlgmr.msra.gmra.mxu2 %v3442_v25  ;;  %v3844_v35 = vrot.slane %v3726_v21, 2  ;;  %v3939_v4 = vpack.c.bf16 %v3837_v30, %v3831_v29  ;;  %v3734_v29 = vld [vmem:[#allocation2 + $0x1a8] sm:$0xfc]  ;;  %v3736_v30 = vld [vmem:[#allocation2 + $0x1e8] sm:$0x3] }
 0x1d6   :  { %v1908_v63 = vadd.f32 %v1890_v5, %v6163_v34  ;;  %v6312_v40 = vadd.f32 %v2384_v48, %v1907_v37  ;;  %3184 = vmatmul.bf16.gmra.mxu1 %v2959_v7  ;;  %v3231_v34 = vld [vmem:[#allocation2 + $0x138] sm:$0xfe]  ;;  %v3344_v37 = vsel %vm743_vm0, %v3342_v24, %v3343_v46  ;;  %v3347_v48 = vsel %vm743_vm0, %v3345_v1, %v3346_v16  ;;  %v3239_v1 = vld [vmem:[#allocation2 + $0x220] sm:$0xfe] }
 0x1d7   :  { %v2344_v50 = vpop.f32.mrf.mxu0  ;;  %v3351_v14 = vrot.slane %v3231_v34, 1  ;;  %v3444_v5 = vpack.c.bf16 %v3350_v13, %v3344_v37  ;;  %v3846_v57 = vsel %vm1240_vm1, %v3844_v35, %v3845_v32  ;;  %v3727_v34 = vld [vmem:[#allocation2 + $0x138] sm:$0xfc]  ;;  %v3848_v37 = vrot.slane %v3729_v2, 2  ;;  %v3730_v13 = vld [vmem:[#allocation2 + $0x88] sm:$0xfc] }
 0x1d8   :  { %3650 = vmatmul.bf16.vlgmr.msra.gmra.mxu3 %v3443_v55  ;;  %v1848_v45 = vpop.f32.mrf.mxu2  ;;  %v3363_v35 = vrot.slane %v3239_v1, 1  ;;  %v3735_v1 = vld [vmem:[#allocation2 + $0x220] sm:$0xfc] }
 0x1d9   :  { %v3353_v55 = vsel %vm743_vm0, %v3351_v14, %v3352_v18 }
 0x1da   :  { %4102 = vmatmul.bf16.vlgmr.msra.gmra.mxu0 %v3938_v56  ;;  %v3445_v3 = vpack.c.bf16 %v3353_v55, %v3347_v48 }
 0x1db   :  { %v1892_v39 = vpop.f32.mrf.mxu3  ;;  %v2385_v0 = vpop.f32.mrf.mxu1 }
 0x1dc   :  { %v1893_v23 = vadd.f32 %v1892_v39, %v1848_v45  ;;  %v2386_v26 = vadd.f32 %v2385_v0, %v2341_v20  ;;  %v3838_v20 = vrot.slane %v3722_v54, 2  ;;  %v3240_v45 = vld [vmem:[#allocation2 + $0x1e8] sm:$0x1]  ;;  %v3235_v39 = vld [vmem:[#allocation2] sm:$0xfe] }
 0x1dd   :  { %v3361_v31 = vrot.slane %v3240_v45, 1  ;;  %v3237_v0 = vld [vmem:[#allocation2 + $0x38] sm:$0x1]  ;;  %v3241_v54 = vld [vmem:[#allocation2 + $0x1c8] sm:$0x1]  ;;  %v3357_v52 = vrot.slane %v3235_v39, 1 }
 0x1de   :  { %v1909_v22 = vadd.f32 %v1893_v23, %v6176_v61  ;;  %v6317_v25 = vadd.f32 %v2386_v26, %v1908_v63  ;;  %v3840_v63 = vsel %vm1240_vm1, %v3838_v20, %v3839_v58  ;;  %v3842_v23 = vrot.slane %v3725_v62, 2  ;;  %v3242_v62 = vld [vmem:[#allocation2 + $0x80] sm:$0xfe] }
 0x1df   :  { %v2346_v7 = vpop.f32.mrf.mxu0  ;;  %v3940_v49 = vpack.c.bf16 %v3846_v57, %v3840_v63  ;;  %v3847_v26 = vrot.slane %v3727_v34, 2  ;;  %v3362_v20 = vsel %vm743_vm0, %v3360_v6, %v3361_v31  ;;  %v3358_v58 = vrot.slane %v3237_v0, 1  ;;  %v3244_v34 = vld [vmem:[#allocation2 + $0x78] sm:$0x1]  ;;  %v3731_v31 = vld [vmem:[#allocation2] sm:$0xfc] }
 0x1e0   :  { %v1850_v36 = vpop.f32.mrf.mxu2  ;;  %v3364_v32 = vrot.slane %v3241_v54, 1  ;;  %v3857_v63 = vrot.slane %v3736_v30, 2  ;;  %v3733_v0 = vld [vmem:[#allocation2 + $0x38] sm:$0x3]  ;;  %v3737_v54 = vld [vmem:[#allocation2 + $0x1c8] sm:$0x3] }
 0x1e1   :  { %v3849_v55 = vsel %vm1240_vm1, %v3847_v26, %v3848_v37  ;;  %v3243_v26 = vld [vmem:[#allocation2 + $0xf8] sm:$0xfe] }
 0x1e2   :  { %v3369_v30 = vrot.slane %v3243_v26, 1 }
 0x1e3   :  { %v1894_v9 = vpop.f32.mrf.mxu3  ;;  %v2388_v61 = vpop.f32.mrf.mxu1 }
 0x1e4   :  { %v1895_v19 = vadd.f32 %v1894_v9, %v1850_v36  ;;  %v2389_v56 = vadd.f32 %v2388_v61, %v2344_v50  ;;  %v3354_v50 = vrot.slane %v3234_v41, 1  ;;  %v3856_v61 = vrot.slane %v3734_v29, 2 }
 0x1e5   :  { %3611 = vmatmul.bf16.gmra.mxu2 %v3444_v5 }
 0x1e6   :  { %v1910_v24 = vadd.f32 %v1895_v19, %v6191_v33  ;;  %v6326_v46 = vadd.f32 %v2389_v56, %v1909_v22  ;;  %4146 = vmatmul.bf16.vlgmr.msra.gmra.mxu1 %v3939_v4  ;;  %v3841_v33 = vrot.slane %v3723_v59, 2  ;;  %v3356_v18 = vsel %vm743_vm0, %v3354_v50, %v3355_v60  ;;  %v3732_v22 = vld [vmem:[#allocation2 + $0x188] sm:$0x3]  ;;  %v3246_v50 = vld [vmem:[#allocation2 + $0x50] sm:$0xfe] }
 0x1e7   :  { %v3111_v12 = vpop.f32.mrf.mxu0  ;;  %v3851_v9 = vrot.slane %v3732_v22, 2  ;;  %v3446_v19 = vpack.c.bf16 %v3362_v20, %v3356_v18  ;;  %v3359_v56 = vsel %vm743_vm0, %v3357_v52, %v3358_v58  ;;  %v3858_v45 = vsel %vm1240_vm1, %v3856_v61, %v3857_v63  ;;  %v3248_v60 = vld [vmem:[#allocation2 + $0x30] sm:$0x1]  ;;  %v3738_v20 = vld [vmem:[#allocation2 + $0x80] sm:$0xfc] }
 0x1e8   :  { %3655 = vmatmul.bf16.gmra.mxu3 %v3445_v3  ;;  %v2810_v27 = vpop.f32.mrf.mxu2  ;;  %v3843_v48 = vsel %vm1240_vm1, %v3841_v33, %v3842_v23  ;;  %v3365_v3 = vsel %vm743_vm0, %v3363_v35, %v3364_v32  ;;  %v3367_v23 = vrot.slane %v3244_v34, 1  ;;  %v3372_v37 = vrot.slane %v3246_v50, 1  ;;  %v3249_v52 = vld [vmem:[#allocation2 + $0x1b0] sm:$0x1] }
 0x1e9   :  { %v3941_v41 = vpack.c.bf16 %v3849_v55, %v3843_v48  ;;  %v3447_v59 = vpack.c.bf16 %v3365_v3, %v3359_v56  ;;  %v3860_v18 = vrot.slane %v3737_v54, 2  ;;  %v3742_v48 = vld [vmem:[#allocation2 + $0x50] sm:$0xfc]  ;;  %v3744_v55 = vld [vmem:[#allocation2 + $0x30] sm:$0x3]  ;;  %v3376_v63 = vrot.slane %v3249_v52, 1 }
 0x1ea   :  { %4107 = vmatmul.bf16.gmra.mxu0 %v3940_v49  ;;  %v3745_v52 = vld [vmem:[#allocation2 + $0x1b0] sm:$0x3] }
 0x1eb   :  { %v2854_v11 = vpop.f32.mrf.mxu3  ;;  %v2390_v21 = vpop.f32.mrf.mxu1 }
 0x1ec   :  { %v2855_v16 = vadd.f32 %v2854_v11, %v2810_v27  ;;  %v2391_v14 = vadd.f32 %v2390_v21, %v2346_v7  ;;  %v3850_v7 = vrot.slane %v3730_v13, 2  ;;  %v3373_v11 = vrot.slane %v3248_v60, 1  ;;  %v3245_v21 = vld [vmem:[#allocation2 + $0x170] sm:$0x1] }
 0x1ed   :  { %v3853_v13 = vrot.slane %v3731_v31, 2 }
 0x1ee   :  { %v2889_v36 = vadd.f32 %v2855_v16, %v6204_v51  ;;  %v6331_v5 = vadd.f32 %v2391_v14, %v1910_v24  ;;  %v3852_v53 = vsel %vm1240_vm1, %v3850_v7, %v3851_v9  ;;  %v3854_v16 = vrot.slane %v3733_v0, 2  ;;  %v3250_v0 = vld [vmem:[#allocation2 + $0x90] sm:$0xfe] }
 0x1ef   :  { %v3113_v4 = vpop.f32.mrf.mxu0  ;;  %v3942_v6 = vpack.c.bf16 %v3858_v45, %v3852_v53  ;;  %v3859_v14 = vrot.slane %v3735_v1, 2  ;;  %v3374_v7 = vsel %vm743_vm0, %v3372_v37, %v3373_v11  ;;  %v3370_v9 = vrot.slane %v3245_v21, 1  ;;  %v3252_v1 = vld [vmem:[#allocation2 + $0x68] sm:$0x1]  ;;  %v3739_v37 = vld [vmem:[#allocation2 + $0xf8] sm:$0xfc] }
 0x1f0   :  { %v2812_v57 = vpop.f32.mrf.mxu2  ;;  %v3855_v56 = vsel %vm1240_vm1, %v3853_v13, %v3854_v16  ;;  %v3869_v53 = vrot.slane %v3744_v55, 2  ;;  %v3741_v21 = vld [vmem:[#allocation2 + $0x170] sm:$0x3]  ;;  %v3379_v16 = vrot.slane %v3252_v1, 1 }
 0x1f1   :  { %v3861_v3 = vsel %vm1240_vm1, %v3859_v14, %v3860_v18  ;;  %v3251_v14 = vld [vmem:[#allocation2 + $0x130] sm:$0xfe] }
 0x1f2   :  { %v3381_v55 = vrot.slane %v3251_v14, 1 }
 0x1f3   :  { %v2856_v43 = vpop.f32.mrf.mxu3  ;;  %v3155_v51 = vpop.f32.mrf.mxu1 }
 0x1f4   :  { %v2857_v24 = vadd.f32 %v2856_v43, %v2812_v57  ;;  %v3156_v49 = vadd.f32 %v3155_v51, %v3111_v12  ;;  %v3366_v12 = vrot.slane %v3242_v62, 1  ;;  %v3868_v51 = vrot.slane %v3742_v48, 2 }
 0x1f5   :  { %3616 = vmatmul.bf16.gmra.mxu2 %v3446_v19  ;;  %v3943_v62 = vpack.c.bf16 %v3861_v3, %v3855_v56  ;;  %v3750_v56 = vld [vmem:[#allocation2 + $0x1d8] sm:$0xfc]  ;;  %v3752_v3 = vld [vmem:[#allocation2 + $0x218] sm:$0x3] }
 0x1f6   :  { %v2890_v2 = vadd.f32 %v2857_v24, %v6213_v28  ;;  %v6340_v27 = vadd.f32 %v3156_v49, %v2889_v36  ;;  %4151 = vmatmul.bf16.gmra.mxu1 %v3941_v41  ;;  %v3247_v28 = vld [vmem:[#allocation2 + $0x100] sm:$0xfe]  ;;  %v3368_v32 = vsel %vm743_vm0, %v3366_v12, %v3367_v23  ;;  %v3740_v36 = vld [vmem:[#allocation2 + $0x78] sm:$0x3]  ;;  %v3371_v49 = vsel %vm743_vm0, %v3369_v30, %v3370_v9  ;;  %v3257_v30 = vld [vmem:[#allocation2 + $0x200] sm:$0x1] }
 0x1f7   :  { %v3116_v39 = vpop.f32.mrf.mxu0  ;;  %v3375_v61 = vrot.slane %v3247_v28, 1  ;;  %v3863_v43 = vrot.slane %v3740_v36, 2  ;;  %v3448_v24 = vpack.c.bf16 %v3374_v7, %v3368_v32  ;;  %v3870_v50 = vsel %vm1240_vm1, %v3868_v51, %v3869_v53  ;;  %v3254_v12 = vld [vmem:[#allocation2 + $0x1d8] sm:$0xfe]  ;;  %v3256_v23 = vld [vmem:[#allocation2 + $0x218] sm:$0x1] }
 0x1f8   :  { %3660 = vmatmul.bf16.gmra.mxu3 %v3447_v59  ;;  %v2815_v33 = vpop.f32.mrf.mxu2  ;;  %v3743_v28 = vld [vmem:[#allocation2 + $0x100] sm:$0xfc]  ;;  %v3384_v18 = vrot.slane %v3254_v12, 1  ;;  %v3872_v32 = vrot.slane %v3745_v52, 2  ;;  %v3746_v7 = vld [vmem:[#allocation2 + $0x90] sm:$0xfc] }
 0x1f9   :  { %v3377_v59 = vsel %vm743_vm0, %v3375_v61, %v3376_v63  ;;  %v3388_v53 = vrot.slane %v3257_v30, 1  ;;  %v3753_v30 = vld [vmem:[#allocation2 + $0x200] sm:$0x3] }
 0x1fa   :  { %4112 = vmatmul.bf16.gmra.mxu0 %v3942_v6  ;;  %v3449_v31 = vpack.c.bf16 %v3377_v59, %v3371_v49 }
 0x1fb   :  { %v2859_v22 = vpop.f32.mrf.mxu3  ;;  %v3157_v29 = vpop.f32.mrf.mxu1 }
 0x1fc   :  { %v2860_v58 = vadd.f32 %v2859_v22, %v2815_v33  ;;  %v3158_v35 = vadd.f32 %v3157_v29, %v3113_v4  ;;  %v3862_v4 = vrot.slane %v3738_v20, 2  ;;  %v3385_v22 = vrot.slane %v3256_v23, 1  ;;  %v3253_v29 = vld [vmem:[#allocation2 + $0x230] sm:$0x1] }
 0x1fd   :  { %v3865_v20 = vrot.slane %v3739_v37, 2 }
 0x1fe   :  { %v2891_v57 = vadd.f32 %v2860_v58, %v6226_v47  ;;  %v6345_v19 = vadd.f32 %v3158_v35, %v2890_v2  ;;  %v3864_v2 = vsel %vm1240_vm1, %v3862_v4, %v3863_v43  ;;  %v3866_v58 = vrot.slane %v3741_v21, 2  ;;  %v3258_v21 = vld [vmem:[#allocation2 + $0x10] sm:$0xfe] }
 0x1ff   :  { %v3118_v41 = vpop.f32.mrf.mxu0  ;;  %v3944_v26 = vpack.c.bf16 %v3870_v50, %v3864_v2  ;;  %v3871_v35 = vrot.slane %v3743_v28, 2  ;;  %v3386_v4 = vsel %vm743_vm0, %v3384_v18, %v3385_v22  ;;  %v3382_v43 = vrot.slane %v3253_v29, 1  ;;  %v3260_v28 = vld [vmem:[#allocation2 + $0x178] sm:$0x1]  ;;  %v3747_v18 = vld [vmem:[#allocation2 + $0x130] sm:$0xfc] }
 0x200   :  { %v2817_v45 = vpop.f32.mrf.mxu2  ;;  %v3867_v49 = vsel %vm1240_vm1, %v3865_v20, %v3866_v58  ;;  %v3881_v2 = vrot.slane %v3752_v3, 2  ;;  %v3749_v29 = vld [vmem:[#allocation2 + $0x230] sm:$0x3]  ;;  %v3391_v58 = vrot.slane %v3260_v28, 1 }
 0x201   :  { %v3873_v59 = vsel %vm1240_vm1, %v3871_v35, %v3872_v32  ;;  %v3259_v35 = vld [vmem:[#allocation2 + $0x128] sm:$0xfe] }
 0x202   :  { %v3393_v3 = vrot.slane %v3259_v35, 1 }
 0x203   :  { %v2861_v34 = vpop.f32.mrf.mxu3  ;;  %v3160_v47 = vpop.f32.mrf.mxu1 }
 0x204   :  { %v2862_v60 = vadd.f32 %v2861_v34, %v2817_v45  ;;  %v3161_v6 = vadd.f32 %v3160_v47, %v3116_v39  ;;  %v3378_v39 = vrot.slane %v3250_v0, 1  ;;  %v3880_v47 = vrot.slane %v3750_v56, 2 }
 0x205   :  { %3621 = vmatmul.bf16.gmra.mxu2 %v3448_v24  ;;  %v3945_v0 = vpack.c.bf16 %v3873_v59, %v3867_v49  ;;  %v3758_v49 = vld [vmem:[#allocation2 + $0x210] sm:$0xfc]  ;;  %v3760_v59 = vld [vmem:[#allocation2 + $0x168] sm:$0x3] }
 0x206   :  { %v2892_v54 = vadd.f32 %v2862_v60, %v6238_v8  ;;  %v6354_v33 = vadd.f32 %v3161_v6, %v2891_v57  ;;  %4156 = vmatmul.bf16.gmra.mxu1 %v3943_v62  ;;  %v3255_v8 = vld [vmem:[#allocation2 + $0x228] sm:$0xfe]  ;;  %v3380_v63 = vsel %vm743_vm0, %v3378_v39, %v3379_v16  ;;  %v3383_v6 = vsel %vm743_vm0, %v3381_v55, %v3382_v43  ;;  %v3262_v39 = vld [vmem:[#allocation2 + $0x210] sm:$0xfe]  ;;  %v3264_v16 = vld [vmem:[#allocation2 + $0x168] sm:$0x1] }
 0x207   :  { %v3121_v11 = vpop.f32.mrf.mxu0  ;;  %v3748_v57 = vld [vmem:[#allocation2 + $0x68] sm:$0x3]  ;;  %v3387_v51 = vrot.slane %v3255_v8, 1  ;;  %v3450_v60 = vpack.c.bf16 %v3386_v4, %v3380_v63  ;;  %v3882_v12 = vsel %vm1240_vm1, %v3880_v47, %v3881_v2  ;;  %v3751_v8 = vld [vmem:[#allocation2 + $0x228] sm:$0xfc]  ;;  %v3396_v32 = vrot.slane %v3262_v39, 1 }
 0x208   :  { %3665 = vmatmul.bf16.gmra.mxu3 %v3449_v31  ;;  %v2820_v13 = vpop.f32.mrf.mxu2  ;;  %v3875_v34 = vrot.slane %v3748_v57, 2  ;;  %v3265_v55 = vld [vmem:[#allocation2 + $0xc0] sm:$0x1]  ;;  %v3884_v63 = vrot.slane %v3753_v30, 2  ;;  %v3754_v4 = vld [vmem:[#allocation2 + $0x10] sm:$0xfc] }
 0x209   :  { %v3389_v31 = vsel %vm743_vm0, %v3387_v51, %v3388_v53  ;;  %v3400_v2 = vrot.slane %v3265_v55, 1  ;;  %v3761_v55 = vld [vmem:[#allocation2 + $0xc0] sm:$0x3] }
 0x20a   :  { %4117 = vmatmul.bf16.gmra.mxu0 %v3944_v26  ;;  %v3451_v37 = vpack.c.bf16 %v3389_v31, %v3383_v6 }
 0x20b   :  { %v2864_v36 = vpop.f32.mrf.mxu3  ;;  %v3162_v48 = vpop.f32.mrf.mxu1 }
 0x20c   :  { %v2865_v9 = vadd.f32 %v2864_v36, %v2820_v13  ;;  %v3163_v61 = vadd.f32 %v3162_v48, %v3118_v41  ;;  %v3874_v41 = vrot.slane %v3746_v7, 2  ;;  %v3397_v36 = vrot.slane %v3264_v16, 1  ;;  %v3261_v48 = vld [vmem:[#allocation2 + $0x208] sm:$0x1] }
 0x20d   :  { %v3877_v7 = vrot.slane %v3747_v18, 2 }
 0x20e   :  { %v2893_v45 = vadd.f32 %v2865_v9, %v6252_v44  ;;  %v6359_v24 = vadd.f32 %v3163_v61, %v2892_v54  ;;  %v3876_v54 = vsel %vm1240_vm1, %v3874_v41, %v3875_v34  ;;  %v3878_v9 = vrot.slane %v3749_v29, 2  ;;  %v3266_v29 = vld [vmem:[#allocation2 + $0x1a0] sm:$0xfe] }
 0x20f   :  { %v3123_v62 = vpop.f32.mrf.mxu0  ;;  %v3946_v14 = vpack.c.bf16 %v3882_v12, %v3876_v54  ;;  %v3883_v61 = vrot.slane %v3751_v8, 2  ;;  %v3398_v41 = vsel %vm743_vm0, %v3396_v32, %v3397_v36  ;;  %v3394_v34 = vrot.slane %v3261_v48, 1  ;;  %v3268_v8 = vld [vmem:[#allocation2 + $0x118] sm:$0x1]  ;;  %v3755_v32 = vld [vmem:[#allocation2 + $0x128] sm:$0xfc] }
 0x210   :  { %v2822_v50 = vpop.f32.mrf.mxu2  ;;  %v3879_v6 = vsel %vm1240_vm1, %v3877_v7, %v3878_v9  ;;  %v3893_v54 = vrot.slane %v3760_v59, 2  ;;  %v3757_v48 = vld [vmem:[#allocation2 + $0x208] sm:$0x3]  ;;  %v3403_v9 = vrot.slane %v3268_v8, 1 }
 0x211   :  { %v3885_v31 = vsel %vm1240_vm1, %v3883_v61, %v3884_v63  ;;  %v3267_v61 = vld [vmem:[#allocation2 + $0x58] sm:$0xfe] }
 0x212   :  { %v3405_v59 = vrot.slane %v3267_v61, 1  ;;  %v3765_v61 = vld [vmem:[#allocation2 + $0x20] sm:$0x3] }
 0x213   :  { %v2866_v1 = vpop.f32.mrf.mxu3  ;;  %v3165_v44 = vpop.f32.mrf.mxu1 }
 0x214   :  { %v2867_v23 = vadd.f32 %v2866_v1, %v2822_v50  ;;  %v3166_v26 = vadd.f32 %v3165_v44, %v3121_v11  ;;  %v3390_v11 = vrot.slane %v3258_v21, 1  ;;  %v3892_v44 = vrot.slane %v3758_v49, 2 }
 0x215   :  { %3626 = vmatmul.bf16.gmra.mxu2 %v3450_v60  ;;  %v3947_v21 = vpack.c.bf16 %v3885_v31, %v3879_v6  ;;  %v3766_v6 = vld [vmem:[#allocation2 + $0x148] sm:$0xfc]  ;;  %v3768_v31 = vld [vmem:[#allocation2 + $0x150] sm:$0x3] }
 0x216   :  { %v2894_v52 = vadd.f32 %v2867_v23, %v6261_v17  ;;  %v6368_v13 = vadd.f32 %v3166_v26, %v2893_v45  ;;  %4161 = vmatmul.bf16.gmra.mxu1 %v3945_v0  ;;  %v3263_v17 = vld [vmem:[#allocation2 + $0x1d0] sm:$0xfe]  ;;  %v3392_v53 = vsel %vm743_vm0, %v3390_v11, %v3391_v58  ;;  %v3756_v45 = vld [vmem:[#allocation2 + $0x178] sm:$0x3]  ;;  %v3395_v26 = vsel %vm743_vm0, %v3393_v3, %v3394_v34  ;;  %v3270_v11 = vld [vmem:[#allocation2 + $0x148] sm:$0xfe] }
 0x217   :  { %v3126_v22 = vpop.f32.mrf.mxu0  ;;  %v3399_v47 = vrot.slane %v3263_v17, 1  ;;  %v3887_v1 = vrot.slane %v3756_v45, 2  ;;  %v3452_v23 = vpack.c.bf16 %v3398_v41, %v3392_v53  ;;  %v3894_v39 = vsel %vm1240_vm1, %v3892_v44, %v3893_v54  ;;  %v3272_v58 = vld [vmem:[#allocation2 + $0x150] sm:$0x1]  ;;  %v3759_v17 = vld [vmem:[#allocation2 + $0x1d0] sm:$0xfc] }
 0x218   :  { %3670 = vmatmul.bf16.gmra.mxu3 %v3451_v37  ;;  %v2825_v20 = vpop.f32.mrf.mxu2  ;;  %v3408_v63 = vrot.slane %v3270_v11, 1  ;;  %v3273_v3 = vld [vmem:[#allocation2 + $0xa0] sm:$0x1]  ;;  %v3896_v53 = vrot.slane %v3761_v55, 2  ;;  %v3762_v41 = vld [vmem:[#allocation2 + $0x1a0] sm:$0xfc] }
 0x219   :  { %v3401_v37 = vsel %vm743_vm0, %v3399_v47, %v3400_v2  ;;  %v3412_v54 = vrot.slane %v3273_v3, 1 }
 0x21a   :  { %4122 = vmatmul.bf16.gmra.mxu0 %v3946_v14  ;;  %v3453_v18 = vpack.c.bf16 %v3401_v37, %v3395_v26 }
 0x21b   :  { %v2869_v57 = vpop.f32.mrf.mxu3  ;;  %v3167_v56 = vpop.f32.mrf.mxu1 }
 0x21c   :  { %v2870_v43 = vadd.f32 %v2869_v57, %v2825_v20  ;;  %v3168_v51 = vadd.f32 %v3167_v56, %v3123_v62  ;;  %v3886_v62 = vrot.slane %v3754_v4, 2  ;;  %v3409_v57 = vrot.slane %v3272_v58, 1  ;;  %v3269_v56 = vld [vmem:[#allocation2 + $0x20] sm:$0x1] }
 0x21d   :  { %v3889_v4 = vrot.slane %v3755_v32, 2 }
 0x21e   :  { %v2895_v50 = vadd.f32 %v2870_v43, %v6280_v42  ;;  %v6373_v60 = vadd.f32 %v3168_v51, %v2894_v52  ;;  %v3888_v52 = vsel %vm1240_vm1, %v3886_v62, %v3887_v1  ;;  %v3890_v43 = vrot.slane %v3757_v48, 2 }
 0x21f   :  { %v3128_v0 = vpop.f32.mrf.mxu0  ;;  %v3948_v35 = vpack.c.bf16 %v3894_v39, %v3888_v52  ;;  %v3895_v51 = vrot.slane %v3759_v17, 2  ;;  %v3410_v62 = vsel %vm743_vm0, %v3408_v63, %v3409_v57  ;;  %v3406_v1 = vrot.slane %v3269_v56, 1  ;;  %v3767_v63 = vld [vmem:[#allocation2 + $0xa8] sm:$0xfc]  ;;  %v3769_v57 = vld [vmem:[#allocation2 + $0xa0] sm:$0x3] }
 0x220   :  { %v2827_v12 = vpop.f32.mrf.mxu2  ;;  %v3891_v26 = vsel %vm1240_vm1, %v3889_v4, %v3890_v43  ;;  %v3905_v52 = vrot.slane %v3768_v31, 2  ;;  %v3907_v4 = vrot.slane %v3767_v63, 2  ;;  %v3908_v43 = vrot.slane %v3769_v57, 2 }
 0x221   :  { %v3897_v37 = vsel %vm1240_vm1, %v3895_v51, %v3896_v53 }
 0x223   :  { %v2871_v28 = vpop.f32.mrf.mxu3  ;;  %v3170_v42 = vpop.f32.mrf.mxu1 }
 0x224   :  { %v2872_v16 = vadd.f32 %v2871_v28, %v2827_v12  ;;  %v3171_v14 = vadd.f32 %v3170_v42, %v3126_v22  ;;  %v3402_v22 = vrot.slane %v3266_v29, 1  ;;  %v3904_v42 = vrot.slane %v3766_v6, 2 }
 0x225   :  { %3631 = vmatmul.bf16.gmra.mxu2 %v3452_v23  ;;  %v3949_v29 = vpack.c.bf16 %v3897_v37, %v3891_v26 }
 0x226   :  { %v2896_v30 = vadd.f32 %v2872_v16, %v6290_v15  ;;  %v6382_v20 = vadd.f32 %v3171_v14, %v2895_v50  ;;  %4166 = vmatmul.bf16.gmra.mxu1 %v3947_v21  ;;  %v3271_v15 = vld [vmem:[#allocation2 + $0xa8] sm:$0xfe]  ;;  %v3404_v2 = vsel %vm743_vm0, %v3402_v22, %v3403_v9  ;;  %v3764_v50 = vld [vmem:[#allocation2 + $0x118] sm:$0x3]  ;;  %v3407_v14 = vsel %vm743_vm0, %v3405_v59, %v3406_v1  ;;  %v3763_v22 = vld [vmem:[#allocation2 + $0x58] sm:$0xfc] }
 0x227   :  { %v3131_v36 = vpop.f32.mrf.mxu0  ;;  %v3411_v44 = vrot.slane %v3271_v15, 1  ;;  %v3899_v28 = vrot.slane %v3764_v50, 2  ;;  %v3454_v16 = vpack.c.bf16 %v3410_v62, %v3404_v2  ;;  %v3906_v11 = vsel %vm1240_vm1, %v3904_v42, %v3905_v52 }
 0x228   :  { %3675 = vmatmul.bf16.gmra.mxu3 %v3453_v18  ;;  %v2830_v7 = vpop.f32.mrf.mxu2  ;;  %v3901_v3 = vrot.slane %v3763_v22, 2  ;;  %v3909_v59 = vsel %vm1240_vm1, %v3907_v4, %v3908_v43 }
 0x229   :  { %v3413_v18 = vsel %vm743_vm0, %v3411_v44, %v3412_v54 }
 0x22a   :  { %4127 = vmatmul.bf16.gmra.mxu0 %v3948_v35  ;;  %v3455_v32 = vpack.c.bf16 %v3413_v18, %v3407_v14 }
 0x22b   :  { %v2874_v45 = vpop.f32.mrf.mxu3  ;;  %v3172_v49 = vpop.f32.mrf.mxu1 }
 0x22c   :  { %v2875_v34 = vadd.f32 %v2874_v45, %v2830_v7  ;;  %v3173_v47 = vadd.f32 %v3172_v49, %v3128_v0  ;;  %v3898_v0 = vrot.slane %v3762_v41, 2 }
 0x22e   :  { %v2897_v12 = vadd.f32 %v2875_v34, %v6298_v38  ;;  %v6387_v23 = vadd.f32 %v3173_v47, %v2896_v30  ;;  %v3900_v30 = vsel %vm1240_vm1, %v3898_v0, %v3899_v28 }
 0x22f   :  { %v3133_v21 = vpop.f32.mrf.mxu0  ;;  %v3950_v55 = vpack.c.bf16 %v3906_v11, %v3900_v30 }
 0x230   :  { %v2832_v39 = vpop.f32.mrf.mxu2 }
 0x233   :  { %v2876_v8 = vpop.f32.mrf.mxu3  ;;  %v3175_v38 = vpop.f32.mrf.mxu1 }
 0x234   :  { %v2877_v58 = vadd.f32 %v2876_v8, %v2832_v39  ;;  %v3176_v35 = vadd.f32 %v3175_v38, %v3131_v36  ;;  %v3902_v36 = vrot.slane %v3765_v61, 2 }
 0x235   :  { %3636 = vmatmul.bf16.gmra.mxu2 %v3454_v16 }
 0x236   :  { %v2898_v48 = vadd.f32 %v2877_v58, %v6302_v10  ;;  %v6396_v17 = vadd.f32 %v3176_v35, %v2897_v12  ;;  %4171 = vmatmul.bf16.gmra.mxu1 %v3949_v29  ;;  %v3903_v49 = vsel %vm1240_vm1, %v3901_v3, %v3902_v36 }
 0x237   :  { %v3136_v7 = vpop.f32.mrf.mxu0  ;;  %v3951_v47 = vpack.c.bf16 %v3909_v59, %v3903_v49 }
 0x238   :  { %3680 = vmatmul.bf16.gmra.mxu3 %v3455_v32  ;;  %v2835_v9 = vpop.f32.mrf.mxu2 }
 0x23a   :  { %4132 = vmatmul.bf16.gmra.mxu0 %v3950_v55 }
 0x23b   :  { %v2879_v56 = vpop.f32.mrf.mxu3  ;;  %v3177_v15 = vpop.f32.mrf.mxu1 }
 0x23c   :  { %v2880_v51 = vadd.f32 %v2879_v56, %v2835_v9  ;;  %v3178_v10 = vadd.f32 %v3177_v15, %v3133_v21  ;;  %v4312_v9 = vlaneseq }
 0x23e   :  { %v2899_v53 = vadd.f32 %v2880_v51, %v6312_v40  ;;  %v6399_v45 = vadd.f32 %v3178_v10, %v2898_v48  ;;  %v6421_v15 = vshrl.u32 %v4312_v9, 7 }
 0x23f   :  { %v3138_v41 = vpop.f32.mrf.mxu0 }
 0x240   :  { %v2837_v34 = vpop.f32.mrf.mxu2  ;;  %v4314_v36 = vadd.s32 8, %v6421_v15  ;;  %v4331_v10 = vand.u32 7, %v6421_v15 }
 0x242   :  { %v4338_v59 = vand.u32 7, %v4314_v36  ;;  %vm4495_vm3 = vcmp.lt.s32.totalorder %v4331_v10, 7 }
 0x243   :  { %v2881_v2 = vpop.f32.mrf.mxu3  ;;  %v3180_v50 = vpop.f32.mrf.mxu1 }
 0x244   :  { %v2882_v6 = vadd.f32 %v2881_v2, %v2837_v34  ;;  %v3181_v31 = vadd.f32 %v3180_v50, %v3136_v7  ;;  %vm4496_vm5 = vcmp.lt.s32.totalorder %v4338_v59, 7 }
 0x246   :  { %v2900_v62 = vadd.f32 %v2882_v6, %v6317_v25  ;;  %v6404_v1 = vadd.f32 %v3181_v31, %v2899_v53  ;;  %4176 = vmatmul.bf16.gmra.mxu1 %v3951_v47  ;;  %v4315_v6 = vadd.s32 16, %v6421_v15 }
 0x247   :  { %v3141_v44 = vpop.f32.mrf.mxu0 }
 0x248   :  { %v2840_v40 = vpop.f32.mrf.mxu2 }
 0x24b   :  { %v2884_v54 = vpop.f32.mrf.mxu3  ;;  %v3182_v12 = vpop.f32.mrf.mxu1 }
 0x24c   :  { %v2885_v26 = vadd.f32 %v2884_v54, %v2840_v40  ;;  %v3183_v37 = vadd.f32 %v3182_v12, %v3138_v41 }
 0x24e   :  { %v2901_v21 = vadd.f32 %v2885_v26, %v6326_v46  ;;  %v6407_v0 = vadd.f32 %v3183_v37, %v2900_v62 }
 0x24f   :  { %v3143_v28 = vpop.f32.mrf.mxu0 }
 0x250   :  { %v2842_v42 = vpop.f32.mrf.mxu2 }
 0x253   :  { %v2886_v52 = vpop.f32.mrf.mxu3  ;;  %v3185_v39 = vpop.f32.mrf.mxu1 }
 0x254   :  { %v2887_v16 = vadd.f32 %v2886_v52, %v2842_v42  ;;  %v3186_v14 = vadd.f32 %v3185_v39, %v3141_v44 }
 0x256   :  { %v2902_v25 = vadd.f32 %v2887_v16, %v6331_v5  ;;  %v6410_v18 = vadd.f32 %v3186_v14, %v2901_v21  ;;  %v6418_v5 = vld [vmem:[%s6494_s4] ss:$0 sm:$0xff]  ;;  %v4345_v21 = vand.u32 7, %v4315_v6 }
 0x257   :  { %v4103_v29 = vpop.f32.mrf.mxu0 }
 0x258   :  { %v3607_v8 = vpop.f32.mrf.mxu2  ;;  %vm4497_vm7 = vcmp.lt.s32.totalorder %v4345_v21, 7 }
 0x25b   :  { %v3651_v38 = vpop.f32.mrf.mxu3  ;;  %v3187_v30 = vpop.f32.mrf.mxu1 }
 0x25c   :  { %v3188_v11 = vadd.f32 %v3187_v30, %v3143_v28  ;;  %v3652_v35 = vadd.f32 %v3651_v38, %v3607_v8  ;;  %v4316_v38 = vadd.s32 24, %v6421_v15 }
 0x25e   :  { %v6412_v58 = vadd.f32 %v3188_v11, %v2902_v25  ;;  %v3686_v7 = vadd.f32 %v3652_v35, %v6340_v27  ;;  %v4352_v9 = vand.u32 7, %v4316_v38 }
 0x25f   :  { %v4105_v46 = vpop.f32.mrf.mxu0 }
 0x260   :  { %v3609_v32 = vpop.f32.mrf.mxu2  ;;  %vm4498_vm9 = vcmp.lt.s32.totalorder %v4352_v9, 7 }
 0x263   :  { %v3653_v48 = vpop.f32.mrf.mxu3  ;;  %v4147_v55 = vpop.f32.mrf.mxu1 }
 0x264   :  { %v4148_v22 = vadd.f32 %v4147_v55, %v4103_v29  ;;  %v3654_v57 = vadd.f32 %v3653_v48, %v3609_v32 }
 0x266   :  { %v4182_v61 = vadd.f32 %v4148_v22, %v3686_v7  ;;  %v3687_v27 = vadd.f32 %v3654_v57, %v6345_v19 }
 0x267   :  { %v4108_v63 = vpop.f32.mrf.mxu0 }
 0x268   :  { %v4228_v56 = vadd.f32 %v6418_v5, %v4182_v61  ;;  %v3612_v3 = vpop.f32.mrf.mxu2 }
 0x26a   :  { %v4256_v51 = vmul.f32 0.2, %v4228_v56  ;;  %vm4242_vm2 = vcmp.ge.f32.partialorder %v4228_v56, 0.0 }
 0x26b   :  { %v3656_v4 = vpop.f32.mrf.mxu3  ;;  %v4149_v43 = vpop.f32.mrf.mxu1 }
 0x26c   :  { %v4150_v53 = vadd.f32 %v4149_v43, %v4105_v46  ;;  %v4270_v34 = vsel %vm4242_vm2, %v4228_v56, %v4256_v51  ;;  %v3657_v47 = vadd.f32 %v3656_v4, %v3612_v3  ;;  %v4317_v4 = vadd.s32 32, %v6421_v15 }
 0x26d   :  { %v4537_v19 = vsel %vm4495_vm3, %v4270_v34, 0.0 }
 0x26e   :  { %v4183_v49 = vadd.f32 %v4150_v53, %v3687_v27  ;;  %v3688_v40 = vadd.f32 %v3657_v47, %v6354_v33  ;;  %v4571_v28 = vmul.f32 %v4537_v19, %v4537_v19  ;;  %v4359_v47 = vand.u32 7, %v4317_v4 }
 0x26f   :  { %v4110_v41 = vpop.f32.mrf.mxu0 }
 0x270   :  { %v4229_v2 = vadd.f32 %v6418_v5, %v4183_v49  ;;  %v3614_v50 = vpop.f32.mrf.mxu2  ;;  %vm4499_vm11 = vcmp.lt.s32.totalorder %v4359_v47, 7 }
 0x272   :  { %vm4243_vm4 = vcmp.ge.f32.partialorder %v4229_v2, 0.0  ;;  %v4257_v31 = vmul.f32 0.2, %v4229_v2 }
 0x273   :  { %v3658_v62 = vpop.f32.mrf.mxu3  ;;  %v4152_v44 = vpop.f32.mrf.mxu1 }
 0x274   :  { %v4271_v54 = vsel %vm4243_vm4, %v4229_v2, %v4257_v31  ;;  %v4153_v12 = vadd.f32 %v4152_v44, %v4108_v63  ;;  %v3659_v25 = vadd.f32 %v3658_v62, %v3614_v50  ;;  %v4318_v62 = vadd.s32 40, %v6421_v15 }
 0x275   :  { %v5336_v26 = vpack.c.bf16 %v4271_v54, %v4270_v34  ;;  %v4538_v37 = vsel %vm4496_vm5, %v4271_v54, 0.0 }
 0x276   :  { %v4551_v42 = vadd.f32 %v4538_v37, %v4537_v19  ;;  %v4572_v52 = vmul.f32 %v4538_v37, %v4538_v37  ;;  %v4184_v39 = vadd.f32 %v4153_v12, %v3688_v40  ;;  %v3689_v46 = vadd.f32 %v3659_v25, %v6359_v24 }
 0x277   :  { %5337 = vst [vmem:[%s6495_s5] sm:$0xff] %v5336_v26   ;;  %v4113_v16 = vpop.f32.mrf.mxu0 }
 0x278   :  { %v4585_v14 = vadd.f32 %v4572_v52, %v4571_v28  ;;  %v4230_v29 = vadd.f32 %v6418_v5, %v4184_v39  ;;  %v3617_v8 = vpop.f32.mrf.mxu2  ;;  %v4366_v52 = vand.u32 7, %v4318_v62 }
 0x27a   :  { %vm4244_vm6 = vcmp.ge.f32.partialorder %v4230_v29, 0.0  ;;  %v4258_v33 = vmul.f32 0.2, %v4230_v29  ;;  %vm4500_vm13 = vcmp.lt.s32.totalorder %v4366_v52, 7 }
 0x27b   :  { %v3661_v30 = vpop.f32.mrf.mxu3  ;;  %v4154_v11 = vpop.f32.mrf.mxu1 }
 0x27c   :  { %v4272_v35 = vsel %vm4244_vm6, %v4230_v29, %v4258_v33  ;;  %v4155_v32 = vadd.f32 %v4154_v11, %v4110_v41  ;;  %v3662_v57 = vadd.f32 %v3661_v30, %v3617_v8  ;;  %v4319_v33 = vadd.s32 48, %v6421_v15 }
 0x27d   :  { %v4539_v48 = vsel %vm4497_vm7, %v4272_v35, 0.0 }
 0x27e   :  { %v4552_v55 = vadd.f32 %v4551_v42, %v4539_v48  ;;  %v4573_v7 = vmul.f32 %v4539_v48, %v4539_v48  ;;  %v4185_v22 = vadd.f32 %v4155_v32, %v3689_v46  ;;  %v3690_v27 = vadd.f32 %v3662_v57, %v6368_v13 }
 0x27f   :  { %v4115_v61 = vpop.f32.mrf.mxu0 }
 0x280   :  { %v4586_v63 = vadd.f32 %v4585_v14, %v4573_v7  ;;  %v4231_v56 = vadd.f32 %v6418_v5, %v4185_v22  ;;  %v3619_v3 = vpop.f32.mrf.mxu2  ;;  %v4373_v22 = vand.u32 7, %v4319_v33 }
 0x282   :  { %vm4245_vm8 = vcmp.ge.f32.partialorder %v4231_v56, 0.0  ;;  %v4259_v36 = vmul.f32 0.2, %v4231_v56  ;;  %vm4501_vm15 = vcmp.lt.s32.totalorder %v4373_v22, 7 }
 0x283   :  { %v3663_v43 = vpop.f32.mrf.mxu3  ;;  %v4157_v24 = vpop.f32.mrf.mxu1 }
 0x284   :  { %v4273_v51 = vsel %vm4245_vm8, %v4231_v56, %v4259_v36  ;;  %v4158_v10 = vadd.f32 %v4157_v24, %v4113_v16  ;;  %v3664_v6 = vadd.f32 %v3663_v43, %v3619_v3  ;;  %v4320_v3 = vadd.s32 56, %v6421_v15 }
 0x285   :  { %v5341_v53 = vpack.c.bf16 %v4273_v51, %v4272_v35  ;;  %v4540_v49 = vsel %vm4498_vm9, %v4273_v51, 0.0 }
 0x286   :  { %v4553_v59 = vadd.f32 %v4552_v55, %v4540_v49  ;;  %v4574_v41 = vmul.f32 %v4540_v49, %v4540_v49  ;;  %v4186_v34 = vadd.f32 %v4158_v10, %v3690_v27  ;;  %v3691_v54 = vadd.f32 %v3664_v6, %v6373_v60 }
 0x287   :  { %5368 = vst [vmem:[%s6495_s5 + $0x8] sm:$0xff] %v5341_v53   ;;  %v4118_v2 = vpop.f32.mrf.mxu0 }
 0x288   :  { %v4587_v50 = vadd.f32 %v4586_v63, %v4574_v41  ;;  %v4232_v31 = vadd.f32 %v6418_v5, %v4186_v34  ;;  %v3622_v19 = vpop.f32.mrf.mxu2 }
 0x28a   :  { %vm4246_vm10 = vcmp.ge.f32.partialorder %v4232_v31, 0.0  ;;  %v4260_v13 = vmul.f32 0.2, %v4232_v31 }
 0x28b   :  { %v3666_v44 = vpop.f32.mrf.mxu3  ;;  %v4159_v40 = vpop.f32.mrf.mxu1 }
 0x28c   :  { %v4274_v12 = vsel %vm4246_vm10, %v4232_v31, %v4260_v13  ;;  %v4160_v26 = vadd.f32 %v4159_v40, %v4115_v61  ;;  %v3667_v14 = vadd.f32 %v3666_v44, %v3622_v19  ;;  %v4321_v31 = vadd.s32 64, %v6421_v15 }
 0x28d   :  { %v4541_v37 = vsel %vm4499_vm11, %v4274_v12, 0.0 }
 0x28e   :  { %v4554_v21 = vadd.f32 %v4553_v59, %v4541_v37  ;;  %v4575_v28 = vmul.f32 %v4541_v37, %v4541_v37  ;;  %v4187_v42 = vadd.f32 %v4160_v26, %v3691_v54  ;;  %v3692_v30 = vadd.f32 %v3667_v14, %v6382_v20 }
 0x28f   :  { %v4120_v39 = vpop.f32.mrf.mxu0  ;;  %v4380_v59 = vand.u32 7, %v4320_v3 }
 0x290   :  { %v4588_v16 = vadd.f32 %v4587_v50, %v4575_v28  ;;  %v4233_v25 = vadd.f32 %v6418_v5, %v4187_v42  ;;  %v3624_v29 = vpop.f32.mrf.mxu2 }
 0x291   :  { %vm4502_vm1 = vcmp.lt.s32.totalorder %v4380_v59, 7  ;;  %v4324_v59 = vadd.s32 88, %v6421_v15 }
 0x292   :  { %vm4247_vm12 = vcmp.ge.f32.partialorder %v4233_v25, 0.0  ;;  %v4261_v8 = vmul.f32 0.2, %v4233_v25 }
 0x293   :  { %v3668_v38 = vpop.f32.mrf.mxu3  ;;  %v4162_v60 = vpop.f32.mrf.mxu1 }
 0x294   :  { %v4275_v11 = vsel %vm4247_vm12, %v4233_v25, %v4261_v8  ;;  %v4163_v46 = vadd.f32 %v4162_v60, %v4118_v2  ;;  %v3669_v63 = vadd.f32 %v3668_v38, %v3624_v29 }
 0x295   :  { %v5346_v35 = vpack.c.bf16 %v4275_v11, %v4274_v12  ;;  %v4542_v32 = vsel %vm4500_vm13, %v4275_v11, 0.0 }
 0x296   :  { %v4555_v48 = vadd.f32 %v4554_v21, %v4542_v32  ;;  %v4576_v55 = vmul.f32 %v4542_v32, %v4542_v32  ;;  %v4188_v7 = vadd.f32 %v4163_v46, %v3692_v30  ;;  %v3693_v43 = vadd.f32 %v3669_v63, %v6387_v23 }
 0x297   :  { %5369 = vst [vmem:[%s6495_s5 + $0x10] sm:$0xff] %v5346_v35   ;;  %v4123_v9 = vpop.f32.mrf.mxu0  ;;  %v4387_v21 = vand.u32 7, %v4321_v31 }
 0x298   :  { %v4589_v61 = vadd.f32 %v4588_v16, %v4576_v55  ;;  %v4234_v57 = vadd.f32 %v6418_v5, %v4188_v7  ;;  %v3627_v56 = vpop.f32.mrf.mxu2 }
 0x299   :  { %vm4503_vm3 = vcmp.lt.s32.totalorder %v4387_v21, 7 }
 0x29a   :  { %vm4248_vm14 = vcmp.ge.f32.partialorder %v4234_v57, 0.0  ;;  %v4262_v20 = vmul.f32 0.2, %v4234_v57 }
 0x29b   :  { %v3671_v36 = vpop.f32.mrf.mxu3  ;;  %v4164_v4 = vpop.f32.mrf.mxu1 }
 0x29c   :  { %v4276_v24 = vsel %vm4248_vm14, %v4234_v57, %v4262_v20  ;;  %v4165_v27 = vadd.f32 %v4164_v4, %v4120_v39  ;;  %v3672_v34 = vadd.f32 %v3671_v36, %v3627_v56 }
 0x29d   :  { %v4543_v51 = vsel %vm4501_vm15, %v4276_v24, 0.0 }
 0x29e   :  { %v4556_v10 = vadd.f32 %v4555_v48, %v4543_v51  ;;  %v4577_v53 = vmul.f32 %v4543_v51, %v4543_v51  ;;  %v4189_v49 = vadd.f32 %v4165_v27, %v3693_v43  ;;  %v3694_v13 = vadd.f32 %v3672_v34, %v6396_v17 }
 0x29f   :  { %v4125_v50 = vpop.f32.mrf.mxu0  ;;  %v4322_v17 = vadd.s32 72, %v6421_v15 }
 0x2a0   :  { %v4590_v41 = vadd.f32 %v4589_v61, %v4577_v53  ;;  %v4235_v47 = vadd.f32 %v6418_v5, %v4189_v49  ;;  %v3629_v2 = vpop.f32.mrf.mxu2 }
 0x2a1   :  { %v4394_v35 = vand.u32 7, %v4322_v17 }
 0x2a2   :  { %vm4249_vm0 = vcmp.ge.f32.partialorder %v4235_v47, 0.0  ;;  %v4263_v6 = vmul.f32 0.2, %v4235_v47 }
 0x2a3   :  { %v3673_v19 = vpop.f32.mrf.mxu3  ;;  %v4167_v23 = vpop.f32.mrf.mxu1  ;;  %vm4504_vm5 = vcmp.lt.s32.totalorder %v4394_v35, 7 }
 0x2a4   :  { %v4277_v62 = vsel %vm4249_vm0, %v4235_v47, %v4263_v6  ;;  %v4168_v44 = vadd.f32 %v4167_v23, %v4123_v9  ;;  %v3674_v42 = vadd.f32 %v3673_v19, %v3629_v2  ;;  %v4323_v9 = vadd.s32 80, %v6421_v15 }
 0x2a5   :  { %v5351_v40 = vpack.c.bf16 %v4277_v62, %v4276_v24  ;;  %v4544_v54 = vsel %vm4502_vm1, %v4277_v62, 0.0 }
 0x2a6   :  { %v4557_v12 = vadd.f32 %v4556_v10, %v4544_v54  ;;  %v4578_v26 = vmul.f32 %v4544_v54, %v4544_v54  ;;  %v4190_v37 = vadd.f32 %v4168_v44, %v3694_v13  ;;  %v3695_v8 = vadd.f32 %v3674_v42, %v6399_v45 }
 0x2a7   :  { %5370 = vst [vmem:[%s6495_s5 + $0x18] sm:$0xff] %v5351_v40   ;;  %v4128_v14 = vpop.f32.mrf.mxu0  ;;  %v4401_v27 = vand.u32 7, %v4323_v9  ;;  %v4408_v13 = vand.u32 7, %v4324_v59 }
 0x2a8   :  { %v4591_v28 = vadd.f32 %v4590_v41, %v4578_v26  ;;  %v4236_v52 = vadd.f32 %v6418_v5, %v4190_v37  ;;  %v3632_v39 = vpop.f32.mrf.mxu2  ;;  %v4325_v26 = vadd.s32 96, %v6421_v15 }
 0x2a9   :  { %vm4505_vm7 = vcmp.lt.s32.totalorder %v4401_v27, 7  ;;  %vm4506_vm9 = vcmp.lt.s32.totalorder %v4408_v13, 7 }
 0x2aa   :  { %vm4250_vm2 = vcmp.ge.f32.partialorder %v4236_v52, 0.0  ;;  %v4264_v16 = vmul.f32 0.2, %v4236_v52 }
 0x2ab   :  { %v3676_v25 = vpop.f32.mrf.mxu3  ;;  %v4169_v29 = vpop.f32.mrf.mxu1 }
 0x2ac   :  { %v4278_v33 = vsel %vm4250_vm2, %v4236_v52, %v4264_v16  ;;  %v4170_v38 = vadd.f32 %v4169_v29, %v4125_v50  ;;  %v3677_v48 = vadd.f32 %v3676_v25, %v3632_v39  ;;  %v4415_v29 = vand.u32 7, %v4325_v26 }
 0x2ad   :  { %v4545_v60 = vsel %vm4503_vm3, %v4278_v33, 0.0 }
 0x2ae   :  { %v4558_v30 = vadd.f32 %v4557_v12, %v4545_v60  ;;  %v4579_v11 = vmul.f32 %v4545_v60, %v4545_v60  ;;  %v4191_v46 = vadd.f32 %v4170_v38, %v3695_v8  ;;  %v3696_v45 = vadd.f32 %v3677_v48, %v6404_v1 }
 0x2af   :  { %v4130_v36 = vpop.f32.mrf.mxu0  ;;  %vm4507_vm11 = vcmp.lt.s32.totalorder %v4415_v29, 7 }
 0x2b0   :  { %v4592_v32 = vadd.f32 %v4591_v28, %v4579_v11  ;;  %v4237_v55 = vadd.f32 %v6418_v5, %v4191_v46  ;;  %v3634_v7 = vpop.f32.mrf.mxu2 }
 0x2b2   :  { %vm4251_vm4 = vcmp.ge.f32.partialorder %v4237_v55, 0.0  ;;  %v4265_v22 = vmul.f32 0.2, %v4237_v55 }
 0x2b3   :  { %v3678_v61 = vpop.f32.mrf.mxu3  ;;  %v4172_v63 = vpop.f32.mrf.mxu1 }
 0x2b4   :  { %v4279_v57 = vsel %vm4251_vm4, %v4237_v55, %v4265_v22  ;;  %v4173_v56 = vadd.f32 %v4172_v63, %v4128_v14  ;;  %v3679_v10 = vadd.f32 %v3678_v61, %v3634_v7 }
 0x2b5   :  { %v5356_v20 = vpack.c.bf16 %v4279_v57, %v4278_v33  ;;  %v4546_v3 = vsel %vm4504_vm5, %v4279_v57, 0.0 }
 0x2b6   :  { %v4559_v4 = vadd.f32 %v4558_v30, %v4546_v3  ;;  %v4580_v43 = vmul.f32 %v4546_v3, %v4546_v3  ;;  %v4192_v24 = vadd.f32 %v4173_v56, %v3696_v45  ;;  %v3697_v47 = vadd.f32 %v3679_v10, %v6407_v0 }
 0x2b7   :  { %5371 = vst [vmem:[%s6495_s5 + $0x20] sm:$0xff] %v5356_v20   ;;  %v4133_v62 = vpop.f32.mrf.mxu0  ;;  %v4326_v30 = vadd.s32 104, %v6421_v15 }
 0x2b8   :  { %v4593_v51 = vadd.f32 %v4592_v32, %v4580_v43  ;;  %v4238_v53 = vadd.f32 %v6418_v5, %v4192_v24  ;;  %v3637_v1 = vpop.f32.mrf.mxu2 }
 0x2b9   :  { %v4422_v9 = vand.u32 7, %v4326_v30 }
 0x2ba   :  { %vm4252_vm6 = vcmp.ge.f32.partialorder %v4238_v53, 0.0  ;;  %v4266_v49 = vmul.f32 0.2, %v4238_v53 }
 0x2bb   :  { %v3681_v41 = vpop.f32.mrf.mxu3  ;;  %v4174_v34 = vpop.f32.mrf.mxu1  ;;  %vm4508_vm13 = vcmp.lt.s32.totalorder %v4422_v9, 7 }
 0x2bc   :  { %v4280_v2 = vsel %vm4252_vm6, %v4238_v53, %v4266_v49  ;;  %v4175_v50 = vadd.f32 %v4174_v34, %v4130_v36  ;;  %v3682_v40 = vadd.f32 %v3681_v41, %v3637_v1 }
 0x2bd   :  { %v4547_v6 = vsel %vm4505_vm7, %v4280_v2, 0.0 }
 0x2be   :  { %v4560_v31 = vadd.f32 %v4559_v4, %v4547_v6  ;;  %v4581_v19 = vmul.f32 %v4547_v6, %v4547_v6  ;;  %v4193_v23 = vadd.f32 %v4175_v50, %v3697_v47  ;;  %v3698_v0 = vadd.f32 %v3682_v40, %v6410_v18 }
 0x2bf   :  { %v4135_v60 = vpop.f32.mrf.mxu0 }
 0x2c0   :  { %v4594_v44 = vadd.f32 %v4593_v51, %v4581_v19  ;;  %v4239_v54 = vadd.f32 %v6418_v5, %v4193_v23  ;;  %v3639_v39 = vpop.f32.mrf.mxu2 }
 0x2c2   :  { %vm4253_vm8 = vcmp.ge.f32.partialorder %v4239_v54, 0.0  ;;  %v4267_v12 = vmul.f32 0.2, %v4239_v54 }
 0x2c3   :  { %v4177_v37 = vpop.f32.mrf.mxu1  ;;  %v3683_v16 = vpop.f32.mrf.mxu3 }
 0x2c4   :  { %v4281_v21 = vsel %vm4253_vm8, %v4239_v54, %v4267_v12  ;;  %v4178_v28 = vadd.f32 %v4177_v37, %v4133_v62  ;;  %v3684_v33 = vadd.f32 %v3683_v16, %v3639_v39 }
 0x2c5   :  { %v5361_v42 = vpack.c.bf16 %v4281_v21, %v4280_v2  ;;  %v4548_v52 = vsel %vm4506_vm9, %v4281_v21, 0.0 }
 0x2c6   :  { %v4561_v17 = vadd.f32 %v4560_v31, %v4548_v52  ;;  %v4582_v14 = vmul.f32 %v4548_v52, %v4548_v52  ;;  %v4194_v25 = vadd.f32 %v4178_v28, %v3698_v0  ;;  %v3699_v46 = vadd.f32 %v3684_v33, %v6412_v58 }
 0x2c7   :  { %5372 = vst [vmem:[%s6495_s5 + $0x28] sm:$0xff] %v5361_v42  }
 0x2c8   :  { %v4595_v8 = vadd.f32 %v4594_v44, %v4582_v14  ;;  %v4240_v38 = vadd.f32 %v6418_v5, %v4194_v25 }
 0x2ca   :  { %vm4254_vm10 = vcmp.ge.f32.partialorder %v4240_v38, 0.0  ;;  %v4268_v18 = vmul.f32 0.2, %v4240_v38 }
 0x2cb   :  { %v4179_v11 = vpop.f32.mrf.mxu1 }
 0x2cc   :  { %v4282_v35 = vsel %vm4254_vm10, %v4240_v38, %v4268_v18  ;;  %v4180_v32 = vadd.f32 %v4179_v11, %v4135_v60 }
 0x2cd   :  { %v4549_v48 = vsel %vm4507_vm11, %v4282_v35, 0.0 }
 0x2ce   :  { %v4562_v55 = vadd.f32 %v4561_v17, %v4549_v48  ;;  %v4583_v7 = vmul.f32 %v4549_v48, %v4549_v48  ;;  %v4195_v22 = vadd.f32 %v4180_v32, %v3699_v46 }
 0x2d0   :  { %v4596_v61 = vadd.f32 %v4595_v8, %v4583_v7  ;;  %v4241_v63 = vadd.f32 %v6418_v5, %v4195_v22 }
 0x2d2   :  { %vm4255_vm12 = vcmp.ge.f32.partialorder %v4241_v63, 0.0  ;;  %v4269_v45 = vmul.f32 0.2, %v4241_v63 }
 0x2d4   :  { %v4283_v57 = vsel %vm4255_vm12, %v4241_v63, %v4269_v45 }
 0x2d5   :  { %v5366_v56 = vpack.c.bf16 %v4283_v57, %v4282_v35  ;;  %v4550_v20 = vsel %vm4508_vm13, %v4283_v57, 0.0 }
 0x2d6   :  { %v4563_v15 = vadd.f32 %v4562_v55, %v4550_v20  ;;  %v4584_v3 = vmul.f32 %v4550_v20, %v4550_v20 }
 0x2d7   :  { %5373 = vst [vmem:[%s6495_s5 + $0x30] sm:$0xff] %v5366_v56  }
 0x2d8   :  { %v4564_v58 = vrot.slane %v4563_v15, 4  ;;  %v4597_v36 = vadd.f32 %v4596_v61, %v4584_v3 }
 0x2da   :  { %v4565_v4 = vadd.f32 %v4564_v58, %v4563_v15  ;;  %v4598_v43 = vrot.slane %v4597_v36, 4 }
 0x2dc   :  { %v4566_v24 = vrot.slane %v4565_v4, 2  ;;  %v4599_v27 = vadd.f32 %v4598_v43, %v4597_v36 }
 0x2de   :  { %v4567_v51 = vadd.f32 %v4566_v24, %v4565_v4  ;;  %v4600_v5 = vrot.slane %v4599_v27, 2 }
 0x2e0   :  { %v4568_v10 = vrot.slane %v4567_v51, 1  ;;  %v4601_v53 = vadd.f32 %v4600_v5, %v4599_v27 }
 0x2e2   :  { %v4569_v49 = vadd.f32 %v4568_v10, %v4567_v51  ;;  %v4602_v1 = vrot.slane %v4601_v53, 1 }
 0x2e4   :  { %4570 = vst [vmem:[%s6496_s6] sm:$0x1] %v4569_v49  ;;  %v4603_v59 = vadd.f32 %v4602_v1, %v4601_v53 }
 0x2e6   :  { %4604 = vst [vmem:[%s6496_s6 + $0x1] sm:$0x1] %v4603_v59 }

</bundles_post_ra>
